<compile_context>
chip_gen: v6e
topology: v6e:2x2x1
jax: 0.10.0
libtpu: 0.0.40
codegen_flags: <defaults>
</compile_context>

<pallas_src>
import numpy as np
import jax
import jax.numpy as jnp
from jax.experimental import pallas as pl
from jax.experimental.pallas import tpu as pltpu

# ----------------------------- configuration ------------------------------------
N, NC, NDF, ISIZE = 2, 1, 4, 128          # batch, in-channels, ndf, signal length
K, STRIDE, PAD = 4, 2, 1                  # encoder conv hyper-params
EPS = 1e-5
NEG_SLOPE = 0.2

# per-layer (Cin, Cout, Lin, Lout)
LAYERS = []
_cin, _lin = NC, ISIZE
for _mult in (1, 2, 4, 8, 16):
    _cout, _lout = NDF * _mult, _lin // 2
    LAYERS.append((_cin, _cout, _lin, _lout))
    _cin, _lin = _cout, _lout
FEAT_C, FEAT_L = LAYERS[-1][1], LAYERS[-1][3]      # ndf*16 = 64, 4
assert FEAT_L == K, "classifier Conv1d(k=4,s=1,p=0) must cover the whole feature length"
FEAT_D = FEAT_C * FEAT_L                           # 256 (lane-dense feat width)


# --------------------------- host-side helpers (glue) ----------------------------
def make_sel(l_in, l_out, k_taps, stride, pad):
    """sel[k, j, l] = 1 iff j == stride*l + k - pad (the im2col selection tensor)."""
    sel = np.zeros((k_taps, l_in, l_out), np.float32)
    for k in range(k_taps):
        for l in range(l_out):
            j = stride * l + k - pad
            if 0 <= j < l_in:
                sel[k, j, l] = 1.0
    return jnp.asarray(sel)


# ------------------------------- kernel body -------------------------------------
def _lrelu(h):
    return jnp.where(h > 0, h, NEG_SLOPE * h)


def disc_rec_kernel(x_ref,
                    w1,
                    w2, bm2, g2, b2,
                    w3, bm3, g3, b3,
                    w4, bm4, g4, b4,
                    w5, bm5, g5, b5,
                    wc, bc,
                    cls_ref, feat_ref):
    def conv(h, w_ref):
        # one dense MXU matmul per layer: (N, Cin*Lin) @ (Cin*Lin, Cout*Lout), bf16
        # operands with f32 accumulation.
        return jnp.dot(h.astype(jnp.bfloat16), w_ref[...],
                       preferred_element_type=jnp.float32)

    def bn(h, bm_ref, g_ref, b_ref):
        # train-mode BatchNorm1d on the lane-dense (N, C*L) layout.  bm is the
        # block-diagonal per-channel averaging matrix (C*L, C*L) with entries
        # 1/(N*L), so `hsum @ bm` is the per-channel mean broadcast back to every
        # (channel, length) position.  Stats stay in f32.
        hsum = jnp.sum(h, axis=0, keepdims=True)            # (1, C*L)
        hsq = jnp.sum(h * h, axis=0, keepdims=True)         # (1, C*L)
        mean = jnp.dot(hsum, bm_ref[...], preferred_element_type=jnp.float32)
        ex2 = jnp.dot(hsq, bm_ref[...], preferred_element_type=jnp.float32)
        var = ex2 - mean * mean                             # biased variance
        return (h - mean) * jax.lax.rsqrt(var + EPS) * g_ref[...] + b_ref[...]

    x = x_ref[...]                                          # (N, NC*ISIZE) f32
    h = _lrelu(conv(x, w1))
    h = _lrelu(bn(conv(h, w2), bm2, g2, b2))
    h = _lrelu(bn(conv(h, w3), bm3, g3, b3))
    h = _lrelu(bn(conv(h, w4), bm4, g4, b4))
    feat = _lrelu(bn(conv(h, w5), bm5, g5, b5))
    feat_ref[...] = feat.astype(feat_ref.dtype)             # lane-dense (N, 256)

    # classifier: Conv1d(ndf*16, 1, 4, 1, 0) over the full length-4 window == one
    # (N, 256) x (256, 1) matmul, plus bias (SMEM scalar) and sigmoid.
    logits = jnp.dot(feat, wc[...], preferred_element_type=jnp.float32) + bc[0, 0]
    cls_ref[...] = jax.nn.sigmoid(logits).astype(cls_ref.dtype)


# ------------------------------- pallas wrapper -----------------------------------
def _full_spec(shape):
    nd = len(shape)
    return pl.BlockSpec(shape, lambda i, _nd=nd: (0,) * _nd)


def discriminator_rec(x, flat_params):
    x_flat = x.reshape(N, NC * ISIZE)                       # lane-dense input
    ins = [x_flat] + list(flat_params)
    in_specs = [_full_spec(a.shape) for a in ins[:-1]]
    in_specs.append(pl.BlockSpec(memory_space=pltpu.MemorySpace.SMEM))  # bc scalar
    out_shapes = (jax.ShapeDtypeStruct((N, 1), jnp.float32),
                  jax.ShapeDtypeStruct((N, FEAT_D), jnp.float32))
    cls, feat_flat = pl.pallas_call(
        disc_rec_kernel,
        out_shape=out_shapes,
        grid_spec=pltpu.PrefetchScalarGridSpec(
            num_scalar_prefetch=0,
            grid=(1,),
            in_specs=in_specs,
            out_specs=[_full_spec((N, 1)), _full_spec((N, FEAT_D))],
        ),
        compiler_params=pltpu.CompilerParams(dimension_semantics=("arbitrary",)),
    )(*ins)
    # matches classifier.view(-1,1).squeeze(1); feat back to NCL (N, ndf*16, 4)
    return cls.reshape(-1), feat_flat.reshape(N, FEAT_C, FEAT_L)


# ------------------------------ parameter init ------------------------------------
def init_params(key):
    n_bn = len(LAYERS) - 1
    keys = jax.random.split(key, len(LAYERS) + 2 * n_bn + 2)
    ki = 0
    w_torch, w_dense = [], []
    gammas, betas = [], []
    g_flat, b_flat, bn_mats = [], [], []
    for i, (cin, cout, lin, lout) in enumerate(LAYERS):
        # bf16-representable init => the bf16 cast of the dense fold below is exact,
        # and the f32 reference uses numerically identical weights.
        w = 0.02 * jax.random.normal(keys[ki], (cout, cin, K), jnp.float32)
        w = w.astype(jnp.bfloat16).astype(jnp.float32)
        ki += 1
        w_torch.append(w)                                   # PyTorch (O, I, K)
        sel = make_sel(lin, lout, K, STRIDE, PAD)
        # dense fold: W_dense[(ci,j),(co,l)] = sum_k w[co,ci,k] * sel[k,j,l]
        wd = jnp.einsum('oik,kjl->ijol', w, sel).reshape(cin * lin, cout * lout)
        w_dense.append(wd.astype(jnp.bfloat16))
        if i > 0:                                           # BN on layers 2..5
            g = 1.0 + 0.02 * jax.random.normal(keys[ki], (cout,), jnp.float32); ki += 1
            b = 0.02 * jax.random.normal(keys[ki], (cout,), jnp.float32); ki += 1
            gammas.append(g.reshape(1, cout, 1))
            betas.append(b.reshape(1, cout, 1))
            g_flat.append(jnp.repeat(g, lout).reshape(1, cout * lout))
            b_flat.append(jnp.repeat(b, lout).reshape(1, cout * lout))
            bm = np.kron(np.eye(cout, dtype=np.float32),
                         np.full((lout, lout), 1.0 / (N * lout), np.float32))
            bn_mats.append(jnp.asarray(bm))                 # (C*L, C*L) averaging
    wc = 0.02 * jax.random.normal(keys[ki], (1, FEAT_C, K), jnp.float32); ki += 1
    bc = 0.02 * jax.random.normal(keys[ki], (1, 1), jnp.float32); ki += 1

    flat = [w_dense[0]]
    for i in range(1, len(LAYERS)):
        flat += [w_dense[i], bn_mats[i - 1], g_flat[i - 1], b_flat[i - 1]]
    flat += [wc.reshape(FEAT_D, 1), bc]
    ref = dict(w_torch=w_torch, gamma=gammas, beta=betas, wc=wc, bc=bc)
    return flat, ref


# ------------------------------ pure-JAX reference ---------------------------------
def reference_forward(x, ref):
    h = x
    for i in range(len(LAYERS)):
        h = jax.lax.conv_general_dilated(
            h, ref["w_torch"][i], window_strides=(STRIDE,), padding=[(PAD, PAD)],
            dimension_numbers=("NCH", "OIH", "NCH"))
        if i > 0:
            mean = jnp.mean(h, axis=(0, 2), keepdims=True)
            var = jnp.mean((h - mean) ** 2, axis=(0, 2), keepdims=True)
            h = (h - mean) * jax.lax.rsqrt(var + EPS) * ref["gamma"][i - 1] + ref["beta"][i - 1]
        h = jnp.where(h > 0, h, NEG_SLOPE * h)
    feat = h
    logits = jnp.sum(feat * ref["wc"], axis=(1, 2)) + ref["bc"][0, 0]
    return jax.nn.sigmoid(logits), feat


# ----------------------------------- main -------------------------------------------
if __name__ == "__main__":
    key = jax.random.PRNGKey(0)
    k_x, k_p = jax.random.split(key)
    x = jax.random.normal(k_x, (N, NC, ISIZE), jnp.float32)

    flat_params, ref_params = init_params(k_p)

    cls, feat = discriminator_rec(x, flat_params)
    cls = jax.block_until_ready(cls)
    feat = jax.block_until_ready(feat)

    assert cls.shape == (N,) and feat.shape == (N, FEAT_C, FEAT_L)

    cls_ref, feat_ref = reference_forward(x, ref_params)
    np.testing.assert_allclose(np.asarray(cls), np.asarray(cls_ref), rtol=2e-2, atol=2e-2)
    np.testing.assert_allclose(np.asarray(feat), np.asarray(feat_ref), rtol=2e-2, atol=2e-2)

    print("KERNEL_OK")
</pallas_src>

<mosaic_0001>
module attributes {stable_mosaic.version = 11 : i64} {
  func.func @disc_rec_kernel(%arg0: i32, %arg1: memref<2x128xf32, #tpu.memory_space<vmem>>, %arg2: memref<128x256xbf16, #tpu.memory_space<vmem>>, %arg3: memref<256x256xbf16, #tpu.memory_space<vmem>>, %arg4: memref<256x256xf32, #tpu.memory_space<vmem>>, %arg5: memref<1x256xf32, #tpu.memory_space<vmem>>, %arg6: memref<1x256xf32, #tpu.memory_space<vmem>>, %arg7: memref<256x256xbf16, #tpu.memory_space<vmem>>, %arg8: memref<256x256xf32, #tpu.memory_space<vmem>>, %arg9: memref<1x256xf32, #tpu.memory_space<vmem>>, %arg10: memref<1x256xf32, #tpu.memory_space<vmem>>, %arg11: memref<256x256xbf16, #tpu.memory_space<vmem>>, %arg12: memref<256x256xf32, #tpu.memory_space<vmem>>, %arg13: memref<1x256xf32, #tpu.memory_space<vmem>>, %arg14: memref<1x256xf32, #tpu.memory_space<vmem>>, %arg15: memref<256x256xbf16, #tpu.memory_space<vmem>>, %arg16: memref<256x256xf32, #tpu.memory_space<vmem>>, %arg17: memref<1x256xf32, #tpu.memory_space<vmem>>, %arg18: memref<1x256xf32, #tpu.memory_space<vmem>>, %arg19: memref<256x1xf32, #tpu.memory_space<vmem>>, %arg20: memref<1x1xf32, #tpu.memory_space<smem>>, %arg21: memref<2x1xf32, #tpu.memory_space<vmem>>, %arg22: memref<2x256xf32, #tpu.memory_space<vmem>>) attributes {dimension_semantics = [#tpu.dimension_semantics<arbitrary>], iteration_bounds = array<i64: 1>, scalar_prefetch = 0 : i64, scratch_operands = 0 : i64, tpu.core_type = #tpu.core_type<tc>, window_params = [{pipeline_mode = #tpu.pipeline_mode<synchronous>, transform_indices = @transform_0, window_bounds = array<i64: 2, 128>}, {pipeline_mode = #tpu.pipeline_mode<synchronous>, transform_indices = @transform_1, window_bounds = array<i64: 128, 256>}, {pipeline_mode = #tpu.pipeline_mode<synchronous>, transform_indices = @transform_2, window_bounds = array<i64: 256, 256>}, {pipeline_mode = #tpu.pipeline_mode<synchronous>, transform_indices = @transform_3, window_bounds = array<i64: 256, 256>}, {pipeline_mode = #tpu.pipeline_mode<synchronous>, transform_indices = @transform_4, window_bounds = array<i64: 1, 256>}, {pipeline_mode = #tpu.pipeline_mode<synchronous>, transform_indices = @transform_5, window_bounds = array<i64: 1, 256>}, {pipeline_mode = #tpu.pipeline_mode<synchronous>, transform_indices = @transform_6, window_bounds = array<i64: 256, 256>}, {pipeline_mode = #tpu.pipeline_mode<synchronous>, transform_indices = @transform_7, window_bounds = array<i64: 256, 256>}, {pipeline_mode = #tpu.pipeline_mode<synchronous>, transform_indices = @transform_8, window_bounds = array<i64: 1, 256>}, {pipeline_mode = #tpu.pipeline_mode<synchronous>, transform_indices = @transform_9, window_bounds = array<i64: 1, 256>}, {pipeline_mode = #tpu.pipeline_mode<synchronous>, transform_indices = @transform_10, window_bounds = array<i64: 256, 256>}, {pipeline_mode = #tpu.pipeline_mode<synchronous>, transform_indices = @transform_11, window_bounds = array<i64: 256, 256>}, {pipeline_mode = #tpu.pipeline_mode<synchronous>, transform_indices = @transform_12, window_bounds = array<i64: 1, 256>}, {pipeline_mode = #tpu.pipeline_mode<synchronous>, transform_indices = @transform_13, window_bounds = array<i64: 1, 256>}, {pipeline_mode = #tpu.pipeline_mode<synchronous>, transform_indices = @transform_14, window_bounds = array<i64: 256, 256>}, {pipeline_mode = #tpu.pipeline_mode<synchronous>, transform_indices = @transform_15, window_bounds = array<i64: 256, 256>}, {pipeline_mode = #tpu.pipeline_mode<synchronous>, transform_indices = @transform_16, window_bounds = array<i64: 1, 256>}, {pipeline_mode = #tpu.pipeline_mode<synchronous>, transform_indices = @transform_17, window_bounds = array<i64: 1, 256>}, {pipeline_mode = #tpu.pipeline_mode<synchronous>, transform_indices = @transform_18, window_bounds = array<i64: 256, 1>}, {transform_indices = @transform_19, window_bounds = array<i64: 1, 1>}, {pipeline_mode = #tpu.pipeline_mode<synchronous>, transform_indices = @transform_20, window_bounds = array<i64: 2, 1>}, {pipeline_mode = #tpu.pipeline_mode<synchronous>, transform_indices = @transform_21, window_bounds = array<i64: 2, 256>}]} {
    %c0 = arith.constant 0 : index
    %c0_0 = arith.constant 0 : index
    %0 = vector.load %arg1[%c0, %c0_0] : memref<2x128xf32, #tpu.memory_space<vmem>>, vector<2x128xf32>
    %1 = arith.truncf %0 : vector<2x128xf32> to vector<2x128xbf16>
    %c0_1 = arith.constant 0 : index
    %c0_2 = arith.constant 0 : index
    %2 = vector.load %arg2[%c0_1, %c0_2] : memref<128x256xbf16, #tpu.memory_space<vmem>>, vector<128x256xbf16>
    %cst = arith.constant dense<0.000000e+00> : vector<2x256xf32>
    %3 = tpu.matmul %1, %2, %cst {dimension_numbers = #tpu.dot_dimension_numbers<[1], [0], [0], [1], [0, 0, 1, 1], [], []>} : vector<2x128xbf16>, vector<128x256xbf16>, vector<2x256xf32> -> vector<2x256xf32>
    %cst_3 = arith.constant 0.000000e+00 : f32
    %4 = vector.broadcast %cst_3 : f32 to vector<2x256xf32>
    %5 = arith.cmpf ogt, %3, %4 : vector<2x256xf32>
    %cst_4 = arith.constant 2.000000e-01 : f32
    %6 = vector.broadcast %cst_4 : f32 to vector<2x256xf32>
    %7 = arith.mulf %6, %3 : vector<2x256xf32>
    %8 = arith.select %5, %3, %7 : vector<2x256xi1>, vector<2x256xf32>
    %9 = arith.truncf %8 : vector<2x256xf32> to vector<2x256xbf16>
    %c0_5 = arith.constant 0 : index
    %c0_6 = arith.constant 0 : index
    %10 = vector.load %arg3[%c0_5, %c0_6] : memref<256x256xbf16, #tpu.memory_space<vmem>>, vector<256x256xbf16>
    %cst_7 = arith.constant dense<0.000000e+00> : vector<2x256xf32>
    %11 = tpu.matmul %9, %10, %cst_7 {dimension_numbers = #tpu.dot_dimension_numbers<[1], [0], [0], [1], [0, 0, 1, 1], [], []>} : vector<2x256xbf16>, vector<256x256xbf16>, vector<2x256xf32> -> vector<2x256xf32>
    %cst_8 = arith.constant dense<0.000000e+00> : vector<256xf32>
    %12 = vector.multi_reduction <add>, %11, %cst_8 [0] : vector<2x256xf32> to vector<256xf32>
    %13 = vector.shape_cast %12 : vector<256xf32> to vector<1x256xf32>
    %14 = arith.mulf %11, %11 : vector<2x256xf32>
    %cst_9 = arith.constant dense<0.000000e+00> : vector<256xf32>
    %15 = vector.multi_reduction <add>, %14, %cst_9 [0] : vector<2x256xf32> to vector<256xf32>
    %16 = vector.shape_cast %15 : vector<256xf32> to vector<1x256xf32>
    %c0_10 = arith.constant 0 : index
    %c0_11 = arith.constant 0 : index
    %17 = vector.load %arg4[%c0_10, %c0_11] : memref<256x256xf32, #tpu.memory_space<vmem>>, vector<256x256xf32>
    %cst_12 = arith.constant dense<0.000000e+00> : vector<1x256xf32>
    %18 = tpu.matmul %13, %17, %cst_12 {dimension_numbers = #tpu.dot_dimension_numbers<[1], [0], [0], [1], [0, 0, 1, 1], [], []>} : vector<1x256xf32>, vector<256x256xf32>, vector<1x256xf32> -> vector<1x256xf32>
    %c0_13 = arith.constant 0 : index
    %c0_14 = arith.constant 0 : index
    %19 = vector.load %arg4[%c0_13, %c0_14] : memref<256x256xf32, #tpu.memory_space<vmem>>, vector<256x256xf32>
    %cst_15 = arith.constant dense<0.000000e+00> : vector<1x256xf32>
    %20 = tpu.matmul %16, %19, %cst_15 {dimension_numbers = #tpu.dot_dimension_numbers<[1], [0], [0], [1], [0, 0, 1, 1], [], []>} : vector<1x256xf32>, vector<256x256xf32>, vector<1x256xf32> -> vector<1x256xf32>
    %21 = arith.mulf %18, %18 : vector<1x256xf32>
    %22 = arith.subf %20, %21 : vector<1x256xf32>
    %23 = vector.broadcast %18 : vector<1x256xf32> to vector<2x256xf32>
    %24 = arith.subf %11, %23 : vector<2x256xf32>
    %cst_16 = arith.constant 9.99999974E-6 : f32
    %25 = vector.broadcast %cst_16 : f32 to vector<1x256xf32>
    %26 = arith.addf %22, %25 : vector<1x256xf32>
    %27 = math.rsqrt %26 : vector<1x256xf32>
    %28 = vector.broadcast %27 : vector<1x256xf32> to vector<2x256xf32>
    %29 = arith.mulf %24, %28 : vector<2x256xf32>
    %c0_17 = arith.constant 0 : index
    %c0_18 = arith.constant 0 : index
    %30 = vector.load %arg5[%c0_17, %c0_18] : memref<1x256xf32, #tpu.memory_space<vmem>>, vector<1x256xf32>
    %31 = vector.broadcast %30 : vector<1x256xf32> to vector<2x256xf32>
    %32 = arith.mulf %29, %31 : vector<2x256xf32>
    %c0_19 = arith.constant 0 : index
    %c0_20 = arith.constant 0 : index
    %33 = vector.load %arg6[%c0_19, %c0_20] : memref<1x256xf32, #tpu.memory_space<vmem>>, vector<1x256xf32>
    %34 = vector.broadcast %33 : vector<1x256xf32> to vector<2x256xf32>
    %35 = arith.addf %32, %34 : vector<2x256xf32>
    %cst_21 = arith.constant 0.000000e+00 : f32
    %36 = vector.broadcast %cst_21 : f32 to vector<2x256xf32>
    %37 = arith.cmpf ogt, %35, %36 : vector<2x256xf32>
    %cst_22 = arith.constant 2.000000e-01 : f32
    %38 = vector.broadcast %cst_22 : f32 to vector<2x256xf32>
    %39 = arith.mulf %38, %35 : vector<2x256xf32>
    %40 = arith.select %37, %35, %39 : vector<2x256xi1>, vector<2x256xf32>
    %41 = arith.truncf %40 : vector<2x256xf32> to vector<2x256xbf16>
    %c0_23 = arith.constant 0 : index
    %c0_24 = arith.constant 0 : index
    %42 = vector.load %arg7[%c0_23, %c0_24] : memref<256x256xbf16, #tpu.memory_space<vmem>>, vector<256x256xbf16>
    %cst_25 = arith.constant dense<0.000000e+00> : vector<2x256xf32>
    %43 = tpu.matmul %41, %42, %cst_25 {dimension_numbers = #tpu.dot_dimension_numbers<[1], [0], [0], [1], [0, 0, 1, 1], [], []>} : vector<2x256xbf16>, vector<256x256xbf16>, vector<2x256xf32> -> vector<2x256xf32>
    %cst_26 = arith.constant dense<0.000000e+00> : vector<256xf32>
    %44 = vector.multi_reduction <add>, %43, %cst_26 [0] : vector<2x256xf32> to vector<256xf32>
    %45 = vector.shape_cast %44 : vector<256xf32> to vector<1x256xf32>
    %46 = arith.mulf %43, %43 : vector<2x256xf32>
    %cst_27 = arith.constant dense<0.000000e+00> : vector<256xf32>
    %47 = vector.multi_reduction <add>, %46, %cst_27 [0] : vector<2x256xf32> to vector<256xf32>
    %48 = vector.shape_cast %47 : vector<256xf32> to vector<1x256xf32>
    %c0_28 = arith.constant 0 : index
    %c0_29 = arith.constant 0 : index
    %49 = vector.load %arg8[%c0_28, %c0_29] : memref<256x256xf32, #tpu.memory_space<vmem>>, vector<256x256xf32>
    %cst_30 = arith.constant dense<0.000000e+00> : vector<1x256xf32>
    %50 = tpu.matmul %45, %49, %cst_30 {dimension_numbers = #tpu.dot_dimension_numbers<[1], [0], [0], [1], [0, 0, 1, 1], [], []>} : vector<1x256xf32>, vector<256x256xf32>, vector<1x256xf32> -> vector<1x256xf32>
    %c0_31 = arith.constant 0 : index
    %c0_32 = arith.constant 0 : index
    %51 = vector.load %arg8[%c0_31, %c0_32] : memref<256x256xf32, #tpu.memory_space<vmem>>, vector<256x256xf32>
    %cst_33 = arith.constant dense<0.000000e+00> : vector<1x256xf32>
    %52 = tpu.matmul %48, %51, %cst_33 {dimension_numbers = #tpu.dot_dimension_numbers<[1], [0], [0], [1], [0, 0, 1, 1], [], []>} : vector<1x256xf32>, vector<256x256xf32>, vector<1x256xf32> -> vector<1x256xf32>
    %53 = arith.mulf %50, %50 : vector<1x256xf32>
    %54 = arith.subf %52, %53 : vector<1x256xf32>
    %55 = vector.broadcast %50 : vector<1x256xf32> to vector<2x256xf32>
    %56 = arith.subf %43, %55 : vector<2x256xf32>
    %cst_34 = arith.constant 9.99999974E-6 : f32
    %57 = vector.broadcast %cst_34 : f32 to vector<1x256xf32>
    %58 = arith.addf %54, %57 : vector<1x256xf32>
    %59 = math.rsqrt %58 : vector<1x256xf32>
    %60 = vector.broadcast %59 : vector<1x256xf32> to vector<2x256xf32>
    %61 = arith.mulf %56, %60 : vector<2x256xf32>
    %c0_35 = arith.constant 0 : index
    %c0_36 = arith.constant 0 : index
    %62 = vector.load %arg9[%c0_35, %c0_36] : memref<1x256xf32, #tpu.memory_space<vmem>>, vector<1x256xf32>
    %63 = vector.broadcast %62 : vector<1x256xf32> to vector<2x256xf32>
    %64 = arith.mulf %61, %63 : vector<2x256xf32>
    %c0_37 = arith.constant 0 : index
    %c0_38 = arith.constant 0 : index
    %65 = vector.load %arg10[%c0_37, %c0_38] : memref<1x256xf32, #tpu.memory_space<vmem>>, vector<1x256xf32>
    %66 = vector.broadcast %65 : vector<1x256xf32> to vector<2x256xf32>
    %67 = arith.addf %64, %66 : vector<2x256xf32>
    %cst_39 = arith.constant 0.000000e+00 : f32
    %68 = vector.broadcast %cst_39 : f32 to vector<2x256xf32>
    %69 = arith.cmpf ogt, %67, %68 : vector<2x256xf32>
    %cst_40 = arith.constant 2.000000e-01 : f32
    %70 = vector.broadcast %cst_40 : f32 to vector<2x256xf32>
    %71 = arith.mulf %70, %67 : vector<2x256xf32>
    %72 = arith.select %69, %67, %71 : vector<2x256xi1>, vector<2x256xf32>
    %73 = arith.truncf %72 : vector<2x256xf32> to vector<2x256xbf16>
    %c0_41 = arith.constant 0 : index
    %c0_42 = arith.constant 0 : index
    %74 = vector.load %arg11[%c0_41, %c0_42] : memref<256x256xbf16, #tpu.memory_space<vmem>>, vector<256x256xbf16>
    %cst_43 = arith.constant dense<0.000000e+00> : vector<2x256xf32>
    %75 = tpu.matmul %73, %74, %cst_43 {dimension_numbers = #tpu.dot_dimension_numbers<[1], [0], [0], [1], [0, 0, 1, 1], [], []>} : vector<2x256xbf16>, vector<256x256xbf16>, vector<2x256xf32> -> vector<2x256xf32>
    %cst_44 = arith.constant dense<0.000000e+00> : vector<256xf32>
    %76 = vector.multi_reduction <add>, %75, %cst_44 [0] : vector<2x256xf32> to vector<256xf32>
    %77 = vector.shape_cast %76 : vector<256xf32> to vector<1x256xf32>
    %78 = arith.mulf %75, %75 : vector<2x256xf32>
    %cst_45 = arith.constant dense<0.000000e+00> : vector<256xf32>
    %79 = vector.multi_reduction <add>, %78, %cst_45 [0] : vector<2x256xf32> to vector<256xf32>
    %80 = vector.shape_cast %79 : vector<256xf32> to vector<1x256xf32>
    %c0_46 = arith.constant 0 : index
    %c0_47 = arith.constant 0 : index
    %81 = vector.load %arg12[%c0_46, %c0_47] : memref<256x256xf32, #tpu.memory_space<vmem>>, vector<256x256xf32>
    %cst_48 = arith.constant dense<0.000000e+00> : vector<1x256xf32>
    %82 = tpu.matmul %77, %81, %cst_48 {dimension_numbers = #tpu.dot_dimension_numbers<[1], [0], [0], [1], [0, 0, 1, 1], [], []>} : vector<1x256xf32>, vector<256x256xf32>, vector<1x256xf32> -> vector<1x256xf32>
    %c0_49 = arith.constant 0 : index
    %c0_50 = arith.constant 0 : index
    %83 = vector.load %arg12[%c0_49, %c0_50] : memref<256x256xf32, #tpu.memory_space<vmem>>, vector<256x256xf32>
    %cst_51 = arith.constant dense<0.000000e+00> : vector<1x256xf32>
    %84 = tpu.matmul %80, %83, %cst_51 {dimension_numbers = #tpu.dot_dimension_numbers<[1], [0], [0], [1], [0, 0, 1, 1], [], []>} : vector<1x256xf32>, vector<256x256xf32>, vector<1x256xf32> -> vector<1x256xf32>
    %85 = arith.mulf %82, %82 : vector<1x256xf32>
    %86 = arith.subf %84, %85 : vector<1x256xf32>
    %87 = vector.broadcast %82 : vector<1x256xf32> to vector<2x256xf32>
    %88 = arith.subf %75, %87 : vector<2x256xf32>
    %cst_52 = arith.constant 9.99999974E-6 : f32
    %89 = vector.broadcast %cst_52 : f32 to vector<1x256xf32>
    %90 = arith.addf %86, %89 : vector<1x256xf32>
    %91 = math.rsqrt %90 : vector<1x256xf32>
    %92 = vector.broadcast %91 : vector<1x256xf32> to vector<2x256xf32>
    %93 = arith.mulf %88, %92 : vector<2x256xf32>
    %c0_53 = arith.constant 0 : index
    %c0_54 = arith.constant 0 : index
    %94 = vector.load %arg13[%c0_53, %c0_54] : memref<1x256xf32, #tpu.memory_space<vmem>>, vector<1x256xf32>
    %95 = vector.broadcast %94 : vector<1x256xf32> to vector<2x256xf32>
    %96 = arith.mulf %93, %95 : vector<2x256xf32>
    %c0_55 = arith.constant 0 : index
    %c0_56 = arith.constant 0 : index
    %97 = vector.load %arg14[%c0_55, %c0_56] : memref<1x256xf32, #tpu.memory_space<vmem>>, vector<1x256xf32>
    %98 = vector.broadcast %97 : vector<1x256xf32> to vector<2x256xf32>
    %99 = arith.addf %96, %98 : vector<2x256xf32>
    %cst_57 = arith.constant 0.000000e+00 : f32
    %100 = vector.broadcast %cst_57 : f32 to vector<2x256xf32>
    %101 = arith.cmpf ogt, %99, %100 : vector<2x256xf32>
    %cst_58 = arith.constant 2.000000e-01 : f32
    %102 = vector.broadcast %cst_58 : f32 to vector<2x256xf32>
    %103 = arith.mulf %102, %99 : vector<2x256xf32>
    %104 = arith.select %101, %99, %103 : vector<2x256xi1>, vector<2x256xf32>
    %105 = arith.truncf %104 : vector<2x256xf32> to vector<2x256xbf16>
    %c0_59 = arith.constant 0 : index
    %c0_60 = arith.constant 0 : index
    %106 = vector.load %arg15[%c0_59, %c0_60] : memref<256x256xbf16, #tpu.memory_space<vmem>>, vector<256x256xbf16>
    %cst_61 = arith.constant dense<0.000000e+00> : vector<2x256xf32>
    %107 = tpu.matmul %105, %106, %cst_61 {dimension_numbers = #tpu.dot_dimension_numbers<[1], [0], [0], [1], [0, 0, 1, 1], [], []>} : vector<2x256xbf16>, vector<256x256xbf16>, vector<2x256xf32> -> vector<2x256xf32>
    %cst_62 = arith.constant dense<0.000000e+00> : vector<256xf32>
    %108 = vector.multi_reduction <add>, %107, %cst_62 [0] : vector<2x256xf32> to vector<256xf32>
    %109 = vector.shape_cast %108 : vector<256xf32> to vector<1x256xf32>
    %110 = arith.mulf %107, %107 : vector<2x256xf32>
    %cst_63 = arith.constant dense<0.000000e+00> : vector<256xf32>
    %111 = vector.multi_reduction <add>, %110, %cst_63 [0] : vector<2x256xf32> to vector<256xf32>
    %112 = vector.shape_cast %111 : vector<256xf32> to vector<1x256xf32>
    %c0_64 = arith.constant 0 : index
    %c0_65 = arith.constant 0 : index
    %113 = vector.load %arg16[%c0_64, %c0_65] : memref<256x256xf32, #tpu.memory_space<vmem>>, vector<256x256xf32>
    %cst_66 = arith.constant dense<0.000000e+00> : vector<1x256xf32>
    %114 = tpu.matmul %109, %113, %cst_66 {dimension_numbers = #tpu.dot_dimension_numbers<[1], [0], [0], [1], [0, 0, 1, 1], [], []>} : vector<1x256xf32>, vector<256x256xf32>, vector<1x256xf32> -> vector<1x256xf32>
    %c0_67 = arith.constant 0 : index
    %c0_68 = arith.constant 0 : index
    %115 = vector.load %arg16[%c0_67, %c0_68] : memref<256x256xf32, #tpu.memory_space<vmem>>, vector<256x256xf32>
    %cst_69 = arith.constant dense<0.000000e+00> : vector<1x256xf32>
    %116 = tpu.matmul %112, %115, %cst_69 {dimension_numbers = #tpu.dot_dimension_numbers<[1], [0], [0], [1], [0, 0, 1, 1], [], []>} : vector<1x256xf32>, vector<256x256xf32>, vector<1x256xf32> -> vector<1x256xf32>
    %117 = arith.mulf %114, %114 : vector<1x256xf32>
    %118 = arith.subf %116, %117 : vector<1x256xf32>
    %119 = vector.broadcast %114 : vector<1x256xf32> to vector<2x256xf32>
    %120 = arith.subf %107, %119 : vector<2x256xf32>
    %cst_70 = arith.constant 9.99999974E-6 : f32
    %121 = vector.broadcast %cst_70 : f32 to vector<1x256xf32>
    %122 = arith.addf %118, %121 : vector<1x256xf32>
    %123 = math.rsqrt %122 : vector<1x256xf32>
    %124 = vector.broadcast %123 : vector<1x256xf32> to vector<2x256xf32>
    %125 = arith.mulf %120, %124 : vector<2x256xf32>
    %c0_71 = arith.constant 0 : index
    %c0_72 = arith.constant 0 : index
    %126 = vector.load %arg17[%c0_71, %c0_72] : memref<1x256xf32, #tpu.memory_space<vmem>>, vector<1x256xf32>
    %127 = vector.broadcast %126 : vector<1x256xf32> to vector<2x256xf32>
    %128 = arith.mulf %125, %127 : vector<2x256xf32>
    %c0_73 = arith.constant 0 : index
    %c0_74 = arith.constant 0 : index
    %129 = vector.load %arg18[%c0_73, %c0_74] : memref<1x256xf32, #tpu.memory_space<vmem>>, vector<1x256xf32>
    %130 = vector.broadcast %129 : vector<1x256xf32> to vector<2x256xf32>
    %131 = arith.addf %128, %130 : vector<2x256xf32>
    %cst_75 = arith.constant 0.000000e+00 : f32
    %132 = vector.broadcast %cst_75 : f32 to vector<2x256xf32>
    %133 = arith.cmpf ogt, %131, %132 : vector<2x256xf32>
    %cst_76 = arith.constant 2.000000e-01 : f32
    %134 = vector.broadcast %cst_76 : f32 to vector<2x256xf32>
    %135 = arith.mulf %134, %131 : vector<2x256xf32>
    %136 = arith.select %133, %131, %135 : vector<2x256xi1>, vector<2x256xf32>
    %c0_77 = arith.constant 0 : index
    %c0_78 = arith.constant 0 : index
    %137 = vector.load %arg22[%c0_77, %c0_78] : memref<2x256xf32, #tpu.memory_space<vmem>>, vector<2x256xf32>
    tpu.vector_store %arg22[%c0_77, %c0_78], %136 {strides = array<i32>} : memref<2x256xf32, #tpu.memory_space<vmem>>, vector<2x256xf32>,
    %c0_79 = arith.constant 0 : index
    %c0_80 = arith.constant 0 : index
    %138 = vector.load %arg19[%c0_79, %c0_80] : memref<256x1xf32, #tpu.memory_space<vmem>>, vector<256x1xf32>
    %cst_81 = arith.constant dense<0.000000e+00> : vector<2x1xf32>
    %139 = tpu.matmul %136, %138, %cst_81 {dimension_numbers = #tpu.dot_dimension_numbers<[1], [0], [0], [1], [0, 0, 1, 1], [], []>} : vector<2x256xf32>, vector<256x1xf32>, vector<2x1xf32> -> vector<2x1xf32>
    %c0_82 = arith.constant 0 : index
    %c0_83 = arith.constant 0 : index
    %140 = memref.load %arg20[%c0_82, %c0_83] : memref<1x1xf32, #tpu.memory_space<smem>>
    %141 = vector.broadcast %140 : f32 to vector<2x1xf32>
    %142 = arith.addf %139, %141 : vector<2x1xf32>
    %143 = arith.negf %142 : vector<2x1xf32>
    %144 = math.exp %143 : vector<2x1xf32>
    %cst_84 = arith.constant 1.000000e+00 : f32
    %145 = vector.broadcast %cst_84 : f32 to vector<2x1xf32>
    %146 = arith.addf %145, %144 : vector<2x1xf32>
    %147 = arith.divf %145, %146 : vector<2x1xf32>
    %c0_85 = arith.constant 0 : index
    %c0_86 = arith.constant 0 : index
    %148 = vector.load %arg21[%c0_85, %c0_86] : memref<2x1xf32, #tpu.memory_space<vmem>>, vector<2x1xf32>
    tpu.vector_store %arg21[%c0_85, %c0_86], %147 {strides = array<i32>} : memref<2x1xf32, #tpu.memory_space<vmem>>, vector<2x1xf32>,
    return
  }
  func.func @transform_0(%arg0: i32) -> (i32, i32) {
    %c0_i32 = arith.constant 0 : i32
    %c0_i32_0 = arith.constant 0 : i32
    %c0_i32_1 = arith.constant 0 : i32
    return %c0_i32, %c0_i32_0 : i32, i32
  }
  func.func @transform_1(%arg0: i32) -> (i32, i32) {
    %c0_i32 = arith.constant 0 : i32
    %c0_i32_0 = arith.constant 0 : i32
    %c0_i32_1 = arith.constant 0 : i32
    return %c0_i32, %c0_i32_0 : i32, i32
  }
  func.func @transform_2(%arg0: i32) -> (i32, i32) {
    %c0_i32 = arith.constant 0 : i32
    %c0_i32_0 = arith.constant 0 : i32
    %c0_i32_1 = arith.constant 0 : i32
    return %c0_i32, %c0_i32_0 : i32, i32
  }
  func.func @transform_3(%arg0: i32) -> (i32, i32) {
    %c0_i32 = arith.constant 0 : i32
    %c0_i32_0 = arith.constant 0 : i32
    %c0_i32_1 = arith.constant 0 : i32
    return %c0_i32, %c0_i32_0 : i32, i32
  }
  func.func @transform_4(%arg0: i32) -> (i32, i32) {
    %c0_i32 = arith.constant 0 : i32
    %c0_i32_0 = arith.constant 0 : i32
    %c0_i32_1 = arith.constant 0 : i32
    return %c0_i32, %c0_i32_0 : i32, i32
  }
  func.func @transform_5(%arg0: i32) -> (i32, i32) {
    %c0_i32 = arith.constant 0 : i32
    %c0_i32_0 = arith.constant 0 : i32
    %c0_i32_1 = arith.constant 0 : i32
    return %c0_i32, %c0_i32_0 : i32, i32
  }
  func.func @transform_6(%arg0: i32) -> (i32, i32) {
    %c0_i32 = arith.constant 0 : i32
    %c0_i32_0 = arith.constant 0 : i32
    %c0_i32_1 = arith.constant 0 : i32
    return %c0_i32, %c0_i32_0 : i32, i32
  }
  func.func @transform_7(%arg0: i32) -> (i32, i32) {
    %c0_i32 = arith.constant 0 : i32
    %c0_i32_0 = arith.constant 0 : i32
    %c0_i32_1 = arith.constant 0 : i32
    return %c0_i32, %c0_i32_0 : i32, i32
  }
  func.func @transform_8(%arg0: i32) -> (i32, i32) {
    %c0_i32 = arith.constant 0 : i32
    %c0_i32_0 = arith.constant 0 : i32
    %c0_i32_1 = arith.constant 0 : i32
    return %c0_i32, %c0_i32_0 : i32, i32
  }
  func.func @transform_9(%arg0: i32) -> (i32, i32) {
    %c0_i32 = arith.constant 0 : i32
    %c0_i32_0 = arith.constant 0 : i32
    %c0_i32_1 = arith.constant 0 : i32
    return %c0_i32, %c0_i32_0 : i32, i32
  }
  func.func @transform_10(%arg0: i32) -> (i32, i32) {
    %c0_i32 = arith.constant 0 : i32
    %c0_i32_0 = arith.constant 0 : i32
    %c0_i32_1 = arith.constant 0 : i32
    return %c0_i32, %c0_i32_0 : i32, i32
  }
  func.func @transform_11(%arg0: i32) -> (i32, i32) {
    %c0_i32 = arith.constant 0 : i32
    %c0_i32_0 = arith.constant 0 : i32
    %c0_i32_1 = arith.constant 0 : i32
    return %c0_i32, %c0_i32_0 : i32, i32
  }
  func.func @transform_12(%arg0: i32) -> (i32, i32) {
    %c0_i32 = arith.constant 0 : i32
    %c0_i32_0 = arith.constant 0 : i32
    %c0_i32_1 = arith.constant 0 : i32
    return %c0_i32, %c0_i32_0 : i32, i32
  }
  func.func @transform_13(%arg0: i32) -> (i32, i32) {
    %c0_i32 = arith.constant 0 : i32
    %c0_i32_0 = arith.constant 0 : i32
    %c0_i32_1 = arith.constant 0 : i32
    return %c0_i32, %c0_i32_0 : i32, i32
  }
  func.func @transform_14(%arg0: i32) -> (i32, i32) {
    %c0_i32 = arith.constant 0 : i32
    %c0_i32_0 = arith.constant 0 : i32
    %c0_i32_1 = arith.constant 0 : i32
    return %c0_i32, %c0_i32_0 : i32, i32
  }
  func.func @transform_15(%arg0: i32) -> (i32, i32) {
    %c0_i32 = arith.constant 0 : i32
    %c0_i32_0 = arith.constant 0 : i32
    %c0_i32_1 = arith.constant 0 : i32
    return %c0_i32, %c0_i32_0 : i32, i32
  }
  func.func @transform_16(%arg0: i32) -> (i32, i32) {
    %c0_i32 = arith.constant 0 : i32
    %c0_i32_0 = arith.constant 0 : i32
    %c0_i32_1 = arith.constant 0 : i32
    return %c0_i32, %c0_i32_0 : i32, i32
  }
  func.func @transform_17(%arg0: i32) -> (i32, i32) {
    %c0_i32 = arith.constant 0 : i32
    %c0_i32_0 = arith.constant 0 : i32
    %c0_i32_1 = arith.constant 0 : i32
    return %c0_i32, %c0_i32_0 : i32, i32
  }
  func.func @transform_18(%arg0: i32) -> (i32, i32) {
    %c0_i32 = arith.constant 0 : i32
    %c0_i32_0 = arith.constant 0 : i32
    %c0_i32_1 = arith.constant 0 : i32
    return %c0_i32, %c0_i32_0 : i32, i32
  }
  func.func @transform_19(%arg0: i32) -> (i32, i32) {
    %c0_i32 = arith.constant 0 : i32
    %c0_i32_0 = arith.constant 0 : i32
    %c0_i32_1 = arith.constant 0 : i32
    return %c0_i32, %c0_i32_0 : i32, i32
  }
  func.func @transform_20(%arg0: i32) -> (i32, i32) {
    %c0_i32 = arith.constant 0 : i32
    %c0_i32_0 = arith.constant 0 : i32
    %c0_i32_1 = arith.constant 0 : i32
    return %c0_i32, %c0_i32_0 : i32, i32
  }
  func.func @transform_21(%arg0: i32) -> (i32, i32) {
    %c0_i32 = arith.constant 0 : i32
    %c0_i32_0 = arith.constant 0 : i32
    %c0_i32_1 = arith.constant 0 : i32
    return %c0_i32, %c0_i32_0 : i32, i32
  }
}

</mosaic_0001>

<bundles_post_ra>
// kernel: tpu_custom_call.1
= control target key start
LH: loop header
LB: loop body
LE: loop exit
PB: predicated region body
PF: predicated region fallthrough
CT: control target
= control target key end

     0   :  { %s4459_s0 = inlined_call_operand.vmem [shape: f32[2,128], index: 0, kind: input, shape index: {}]   ;;  %s4460_s1 = inlined_call_operand.hbm [shape: bf16[128,256], index: 1, kind: input, shape index: {}]   ;;  %s4461_s2 = inlined_call_operand.vmem [shape: bf16[256,256], index: 2, kind: input, shape index: {}]   ;;  %s4462_s3 = inlined_call_operand.hbm [shape: f32[256,256], index: 3, kind: input, shape index: {}]   ;;  %s4463_s4 = inlined_call_operand.vmem [shape: f32[1,256], index: 4, kind: input, shape index: {}]   ;;  %s4464_s5 = inlined_call_operand.vmem [shape: f32[1,256], index: 5, kind: input, shape index: {}]   ;;  %s4465_s6 = inlined_call_operand.hbm [shape: bf16[256,256], index: 6, kind: input, shape index: {}]   ;;  %s4466_s7 = inlined_call_operand.hbm [shape: f32[256,256], index: 7, kind: input, shape index: {}]   ;;  %s4467_s8 = inlined_call_operand.vmem [shape: f32[1,256], index: 8, kind: input, shape index: {}]   ;;  %s4468_s9 = inlined_call_operand.vmem [shape: f32[1,256], index: 9, kind: input, shape index: {}]   ;;  %s4469_s10 = inlined_call_operand.hbm [shape: bf16[256,256], index: 10, kind: input, shape index: {}]   ;;  %s4470_s11 = inlined_call_operand.hbm [shape: f32[256,256], index: 11, kind: input, shape index: {}]   ;;  %s4471_s12 = inlined_call_operand.vmem [shape: f32[1,256], index: 12, kind: input, shape index: {}]   ;;  %s4472_s13 = inlined_call_operand.vmem [shape: f32[1,256], index: 13, kind: input, shape index: {}]   ;;  %s4473_s14 = inlined_call_operand.hbm [shape: bf16[256,256], index: 14, kind: input, shape index: {}]   ;;  %s4474_s15 = inlined_call_operand.hbm [shape: f32[256,256], index: 15, kind: input, shape index: {}]   ;;  %s4475_s16 = inlined_call_operand.vmem [shape: f32[1,256], index: 16, kind: input, shape index: {}]   ;;  %s4476_s17 = inlined_call_operand.vmem [shape: f32[1,256], index: 17, kind: input, shape index: {}]   ;;  %s4477_s18 = inlined_call_operand.vmem [shape: f32[256,1], index: 18, kind: input, shape index: {}]   ;;  %s4478_s19 = inlined_call_operand.<no memory space> [shape: f32[1,1], index: 19, kind: input, shape index: {}]   ;;  %s4479_s20 = inlined_call_operand.vmem [shape: f32[2,1], index: 20, kind: output, shape index: {0}]   ;;  %s4480_s21 = inlined_call_operand.hbm [shape: f32[2,256], index: 21, kind: output, shape index: {1}]  }
   0x1   :  { %4503 = sst [smem:[#allocation31_spill]] %s4459_s0 }
   0x2   :  { %4504 = sst [smem:[#allocation32_spill]] %s4460_s1 }
   0x3   :  { %4505 = sst [smem:[#allocation33_spill]] %s4461_s2 }
   0x4   :  { %4506 = sst [smem:[#allocation34_spill]] %s4462_s3 }
   0x5   :  { %4507 = sst [smem:[#allocation35_spill]] %s4463_s4 }
   0x6   :  { %4508 = sst [smem:[#allocation36_spill]] %s4464_s5 }
   0x7   :  { %28 = vsyncpa [#allocation4], 0 }
   0x8   :  { %29 = vsyncpa [#allocation7], 0 }
   0x9   :  { %30 = vsyncpa [#allocation10], 0 }
   0xa   :  { %31 = vsyncpa [#allocation13], 0 }
   0xb   :  { %32 = vsyncpa [#allocation16], 0 }
   0xc   :  { %33 = vsyncpa [#allocation5], 0  ;;  %s3227_s2 = smov [#allocation6]  }
   0xd   :  { %s55_s25 = sshll.u32 %s3227_s2, 4  ;;  %s56_s25 = int_to_ptr.vmem [resolvable:$true] %s55_s25 }
   0xe   :  { %s3043_s26 = scalar_lea.vmem %s56_s25, 8192  ;;  %p3048_p1 = scmp.lt.s32.totalorder %s56_s25, %s56_s25 }
   0xf   :  { %p3044_p0 = scmp.ne.s32.totalorder %s56_s25, %s3043_s26  ;;  %p3049_p2 = scmp.lt.s32.totalorder %s3043_s26, %s3043_s26 }
  0x11   :  { %p3050_p3 = por %p3049_p2, %p3048_p1 }
  0x13   :  { %p3051_p4 = pnand %p3050_p3, %p3044_p0 }
  0x15   :  { %3054 = shalt.err (!%p3051_p4)
}
  0x16   :  { %s3228_s27 = smov 256   ;;  %s3229_s3 = smov 16  }
  0x17   :  { %s4509_s0 = sld [smem:[#allocation34_spill]]  ;;  %s3230_s4 = smov [#allocation9]  }
  0x18   :  { %s83_s30 = sshll.u32 %s3230_s4, 4  ;;  %s3231_s5 = smov [#allocation12]   ;;  %s84_s30 = int_to_ptr.vmem [resolvable:$true] %s83_s30 }
  0x19   :  { %s111_s22 = sshll.u32 %s3231_s5, 4  ;;  %s3063_s23 = scalar_lea.vmem %s84_s30, 8192  ;;  %s112_s22 = int_to_ptr.vmem [resolvable:$true] %s111_s22 }
  0x1a   :  { %p3064_p5 = scmp.ne.s32.totalorder %s84_s30, %s3063_s23  ;;  %p3068_p6 = scmp.lt.s32.totalorder %s84_s30, %s84_s30 }
  0x1b   :  { %p3069_p7 = scmp.lt.s32.totalorder %s3063_s23, %s3063_s23 }
  0x1d   :  { %61 = dma.hbm_to_vmem [thread:$0]  %s4509_s0, 8192, %s56_s25, [#allocation7], %s3228_s27, %s3228_s27, %s3229_s3  }
  0x1e   :  { %p3070_p8 = por %p3069_p7, %p3068_p6 }
  0x20   :  { %p3071_p9 = pnand %p3070_p8, %p3064_p5 }
  0x22   :  { %3074 = shalt.err (!%p3071_p9)
}
  0x23   :  { %89 = dma.hbm_to_vmem [thread:$0]  %s4466_s7, 8192, %s84_s30, [#allocation10], %s3228_s27, %s3228_s27, %s3229_s3  }
  0x24   :  { %s3083_s2 = scalar_lea.vmem %s112_s22, 8192  ;;  %p3088_p11 = scmp.lt.s32.totalorder %s112_s22, %s112_s22 }
  0x25   :  { %p3084_p10 = scmp.ne.s32.totalorder %s112_s22, %s3083_s2  ;;  %p3089_p12 = scmp.lt.s32.totalorder %s3083_s2, %s3083_s2 }
  0x27   :  { %p3090_p13 = por %p3089_p12, %p3088_p11 }
  0x29   :  { %p3091_p0 = pnand %p3090_p13, %p3084_p10 }
  0x2b   :  { %3094 = shalt.err (!%p3091_p0)
}
  0x2c   :  { %117 = dma.hbm_to_vmem [thread:$0]  %s4470_s11, 8192, %s112_s22, [#allocation13], %s3228_s27, %s3228_s27, %s3229_s3  }
  0x2d   :  { %s3232_s28 = smov [#allocation3]  }
  0x2e   :  { %s41_s29 = sshll.u32 %s3232_s28, 4  ;;  %s42_s29 = int_to_ptr.vmem [resolvable:$true] %s41_s29 }
  0x2f   :  { %s3103_s0 = scalar_lea.vmem %s42_s29, 2048  ;;  %p3108_p2 = scmp.lt.s32.totalorder %s42_s29, %s42_s29 }
  0x30   :  { %p3104_p1 = scmp.ne.s32.totalorder %s42_s29, %s3103_s0  ;;  %p3109_p3 = scmp.lt.s32.totalorder %s3103_s0, %s3103_s0 }
  0x32   :  { %p3110_p4 = por %p3109_p3, %p3108_p2 }
  0x34   :  { %p3111_p5 = pnand %p3110_p4, %p3104_p1 }
  0x36   :  { %3114 = shalt.err (!%p3111_p5)
}
  0x37   :  { %s3233_s7 = smov 128   ;;  %s3234_s4 = smov 8  }
  0x38   :  { %s4510_s23 = sld [smem:[#allocation32_spill]]  ;;  %s3235_s11 = smov [#allocation8]  }
  0x39   :  { %s71_s22 = sshll.u32 %s3235_s11, 4  ;;  %s3236_s1 = smov [#allocation11]   ;;  %s72_s22 = int_to_ptr.vmem [resolvable:$true] %s71_s22 }
  0x3a   :  { %s99_s24 = sshll.u32 %s3236_s1, 4  ;;  %s3123_s2 = scalar_lea.vmem %s72_s22, 4096  ;;  %s100_s24 = int_to_ptr.vmem [resolvable:$true] %s99_s24 }
  0x3b   :  { %p3124_p6 = scmp.ne.s32.totalorder %s72_s22, %s3123_s2  ;;  %p3128_p7 = scmp.lt.s32.totalorder %s72_s22, %s72_s22 }
  0x3c   :  { %p3129_p8 = scmp.lt.s32.totalorder %s3123_s2, %s3123_s2 }
  0x3e   :  { %47 = dma.hbm_to_vmem [thread:$0]  %s4510_s23, 2048, %s42_s29, [#allocation4], %s3233_s7, %s3233_s7, %s3234_s4  }
  0x3f   :  { %p3130_p9 = por %p3129_p8, %p3128_p7 }
  0x41   :  { %p3131_p10 = pnand %p3130_p9, %p3124_p6 }
  0x43   :  { %3134 = shalt.err (!%p3131_p10)
}
  0x44   :  { %77 = dma.hbm_to_vmem [thread:$0]  %s4465_s6, 4096, %s72_s22, [#allocation7], %s3233_s7, %s3233_s7, %s3234_s4  }
  0x45   :  { %s3143_s28 = scalar_lea.vmem %s100_s24, 4096  ;;  %p3148_p12 = scmp.lt.s32.totalorder %s100_s24, %s100_s24 }
  0x46   :  { %p3144_p11 = scmp.ne.s32.totalorder %s100_s24, %s3143_s28  ;;  %p3149_p13 = scmp.lt.s32.totalorder %s3143_s28, %s3143_s28 }
  0x48   :  { %p3150_p0 = por %p3149_p13, %p3148_p12 }
  0x4a   :  { %p3151_p1 = pnand %p3150_p0, %p3144_p11 }
  0x4c   :  { %3154 = shalt.err (!%p3151_p1)
}
  0x4d   :  { %105 = dma.hbm_to_vmem [thread:$0]  %s4469_s10, 4096, %s100_s24, [#allocation10], %s3233_s7, %s3233_s7, %s3234_s4  }
  0x4e   :  { %s3237_s30 = smov [#allocation14]   ;;  %s3238_s23 = smov [#allocation15]  }
  0x4f   :  { %s127_s5 = sshll.u32 %s3237_s30, 4  ;;  %s139_s11 = sshll.u32 %s3238_s23, 4  ;;  %s128_s5 = int_to_ptr.vmem [resolvable:$true] %s127_s5  ;;  %s140_s11 = int_to_ptr.vmem [resolvable:$true] %s139_s11 }
  0x50   :  { %s3163_s6 = scalar_lea.vmem %s128_s5, 4096  ;;  %p3168_p3 = scmp.lt.s32.totalorder %s128_s5, %s128_s5 }
  0x51   :  { %p3164_p2 = scmp.ne.s32.totalorder %s128_s5, %s3163_s6  ;;  %p3169_p4 = scmp.lt.s32.totalorder %s3163_s6, %s3163_s6 }
  0x53   :  { %p3170_p5 = por %p3169_p4, %p3168_p3 }
  0x55   :  { %p3171_p6 = pnand %p3170_p5, %p3164_p2 }
  0x57   :  { %3174 = shalt.err (!%p3171_p6)
}
  0x58   :  { %133 = dma.hbm_to_vmem [thread:$0]  %s4473_s14, 4096, %s128_s5, [#allocation13], %s3233_s7, %s3233_s7, %s3234_s4  }
  0x59   :  { %s3183_s10 = scalar_lea.vmem %s140_s11, 8192  ;;  %p3188_p8 = scmp.lt.s32.totalorder %s140_s11, %s140_s11 }
  0x5a   :  { %p3184_p7 = scmp.ne.s32.totalorder %s140_s11, %s3183_s10  ;;  %p3189_p9 = scmp.lt.s32.totalorder %s3183_s10, %s3183_s10 }
  0x5c   :  { %p3190_p10 = por %p3189_p9, %p3188_p8 }
  0x5e   :  { %p3191_p11 = pnand %p3190_p10, %p3184_p7 }
  0x60   :  { %3194 = shalt.err (!%p3191_p11)
}
  0x61   :  { %145 = dma.hbm_to_vmem [thread:$0]  %s4474_s15, 8192, %s140_s11, [#allocation16], %s3228_s27, %s3228_s27, %s3229_s3  }
  0x62   :  { %3215 = dma.done.wait [#allocation4], 2048  }
  0x63   :  { %3216 = vsyncadd [#allocation4], 4294965248 }
  0x64   :  { %3217 = dma.done.wait [#allocation7], 12288  }
  0x65   :  { %3218 = vsyncadd [#allocation7], 4294955008 }
  0x66   :  { %3219 = dma.done.wait [#allocation10], 12288  }
  0x67   :  { %3220 = vsyncadd [#allocation10], 4294955008 }
  0x68   :  { %3221 = dma.done.wait [#allocation13], 12288  }
  0x69   :  { %3222 = vsyncadd [#allocation13], 4294955008 }
  0x6a   :  { %3223 = dma.done.wait [#allocation16], 8192  }
  0x6b   :  { %3224 = vsyncadd [#allocation16], 4294959104  ;;  %v3239_v0 = vmov 0   ;;  %v2799_v1 = vld [vmem:[#allocation3 + $0x74] ss:$8 sps:$4 sm:$0xff]   ;;  %s4511_s27 = sld [smem:[#allocation33_spill]] }
  0x6c   :  { %309 = vmatprep.mubr.bf16.mxu0 %v3239_v0  ;;  %v2801_v2 = vld [vmem:[#allocation3 + $0x70] ss:$8 sps:$4 sm:$0xff]   ;;  %277 = vmatprep.subr.bf16.mxu0 %v2799_v1  ;;  %v2802_v3 = vld [vmem:[#allocation3 + $0x64] ss:$8 sps:$4 sm:$0xff]   ;;  %v2804_v4 = vld [vmem:[#allocation3 + $0x60] ss:$8 sps:$4 sm:$0xff]  }
  0x6d   :  { %278 = vmatpush1.bf16.msra.mxu0 %v2801_v2  ;;  %v2805_v5 = vld [vmem:[#allocation3 + $0x54] ss:$8 sps:$4 sm:$0xff]   ;;  %v2807_v6 = vld [vmem:[#allocation3 + $0x50] ss:$8 sps:$4 sm:$0xff]   ;;  %v2808_v7 = vld [vmem:[#allocation3 + $0x44] ss:$8 sps:$4 sm:$0xff]  }
  0x6e   :  { %279 = vmatprep.subr.bf16.mxu0 %v2802_v3  ;;  %v2810_v8 = vld [vmem:[#allocation3 + $0x40] ss:$8 sps:$4 sm:$0xff]   ;;  %v2811_v9 = vld [vmem:[#allocation3 + $0x34] ss:$8 sps:$4 sm:$0xff]   ;;  %v2813_v13 = vld [vmem:[#allocation3 + $0x30] ss:$8 sps:$4 sm:$0xff]  }
  0x6f   :  { %v2814_v16 = vld [vmem:[#allocation3 + $0x24] ss:$8 sps:$4 sm:$0xff]   ;;  %v2816_v17 = vld [vmem:[#allocation3 + $0x20] ss:$8 sps:$4 sm:$0xff]   ;;  %v2817_v20 = vld [vmem:[#allocation3 + $0x14] ss:$8 sps:$4 sm:$0xff]  }
  0x70   :  { %v2819_v21 = vld [vmem:[#allocation3 + $0x10] ss:$8 sps:$4 sm:$0xff]   ;;  %v2820_v24 = vld [vmem:[#allocation3 + $0x4] ss:$8 sps:$4 sm:$0xff]   ;;  %v2822_v25 = vld [vmem:[#allocation3] ss:$8 sps:$4 sm:$0xff]  }
  0x71   :  { %280 = vmatpush1.bf16.msra.mxu0 %v2804_v4  ;;  %v2823_v10 = vld [vmem:[%s4511_s27 + $0x74] ss:$8 sps:$4 sm:$0xff]   ;;  %v2825_v11 = vld [vmem:[%s4511_s27 + $0x70] ss:$8 sps:$4 sm:$0xff]   ;;  %v2826_v12 = vld [vmem:[%s4511_s27 + $0x64] ss:$8 sps:$4 sm:$0xff]  }
  0x72   :  { %281 = vmatprep.subr.bf16.mxu0 %v2805_v5  ;;  %518 = vmatprep.subr.bf16.mxu1 %v2823_v10  ;;  %v2828_v14 = vld [vmem:[%s4511_s27 + $0x60] ss:$8 sps:$4 sm:$0xff]   ;;  %v2829_v15 = vld [vmem:[%s4511_s27 + $0x54] ss:$8 sps:$4 sm:$0xff]   ;;  %v2831_v18 = vld [vmem:[%s4511_s27 + $0x50] ss:$8 sps:$4 sm:$0xff]  }
  0x73   :  { %519 = vmatpush1.bf16.msra.mxu1 %v2825_v11  ;;  %v2832_v19 = vld [vmem:[%s4511_s27 + $0x44] ss:$8 sps:$4 sm:$0xff]   ;;  %v2834_v22 = vld [vmem:[%s4511_s27 + $0x40] ss:$8 sps:$4 sm:$0xff]   ;;  %v2835_v23 = vld [vmem:[%s4511_s27 + $0x34] ss:$8 sps:$4 sm:$0xff]  }
  0x74   :  { %520 = vmatprep.subr.bf16.mxu1 %v2826_v12  ;;  %s4512_s14 = sld [smem:[#allocation31_spill]]  ;;  %v2837_v27 = vld [vmem:[%s4511_s27 + $0x30] ss:$8 sps:$4 sm:$0xff]   ;;  %v2838_v28 = vld [vmem:[%s4511_s27 + $0x24] ss:$8 sps:$4 sm:$0xff]   ;;  %vm559_vm2 = vcmask 1041408  }
  0x75   :  { %282 = vmatpush1.bf16.msra.mxu0 %v2807_v6  ;;  %v2840_v29 = vld [vmem:[%s4511_s27 + $0x20] ss:$8 sps:$4 sm:$0xff]   ;;  %v2841_v30 = vld [vmem:[%s4511_s27 + $0x14] ss:$8 sps:$4 sm:$0xff]   ;;  %v2843_v32 = vld [vmem:[%s4511_s27 + $0x10] ss:$8 sps:$4 sm:$0xff]  }
  0x76   :  { %283 = vmatprep.subr.bf16.mxu0 %v2808_v7  ;;  %v2844_v33 = vld [vmem:[%s4511_s27 + $0x4] ss:$8 sps:$4 sm:$0xff]   ;;  %v2846_v34 = vld [vmem:[%s4511_s27] ss:$8 sps:$4 sm:$0xff]   ;;  %v2847_v35 = vld [vmem:[%s4511_s27 + $0xf4] ss:$8 sps:$4 sm:$0xff]  }
  0x77   :  { %521 = vmatpush1.bf16.msra.mxu1 %v2828_v14  ;;  %v2849_v36 = vld [vmem:[%s4511_s27 + $0xf0] ss:$8 sps:$4 sm:$0xff]   ;;  %v2850_v37 = vld [vmem:[%s4511_s27 + $0xe4] ss:$8 sps:$4 sm:$0xff]   ;;  %v2852_v38 = vld [vmem:[%s4511_s27 + $0xe0] ss:$8 sps:$4 sm:$0xff]  }
  0x78   :  { %522 = vmatprep.subr.bf16.mxu1 %v2829_v15  ;;  %v2853_v39 = vld [vmem:[%s4511_s27 + $0xd4] ss:$8 sps:$4 sm:$0xff]   ;;  %v2855_v40 = vld [vmem:[%s4511_s27 + $0xd0] ss:$8 sps:$4 sm:$0xff]   ;;  %v2856_v41 = vld [vmem:[%s4511_s27 + $0xc4] ss:$8 sps:$4 sm:$0xff]  }
  0x79   :  { %284 = vmatpush1.bf16.msra.mxu0 %v2810_v8  ;;  %v2858_v42 = vld [vmem:[%s4511_s27 + $0xc0] ss:$8 sps:$4 sm:$0xff]   ;;  %v2859_v43 = vld [vmem:[%s4511_s27 + $0xb4] ss:$8 sps:$4 sm:$0xff]   ;;  %v2861_v44 = vld [vmem:[%s4511_s27 + $0xb0] ss:$8 sps:$4 sm:$0xff]  }
  0x7a   :  { %285 = vmatprep.subr.bf16.mxu0 %v2811_v9  ;;  %v179_v26 = vld [vmem:[%s4512_s14] sm:$0x3]  ;;  %v2862_v45 = vld [vmem:[%s4511_s27 + $0xa4] ss:$8 sps:$4 sm:$0xff]   ;;  %v2865_v47 = vld [vmem:[%s4511_s27 + $0x94] ss:$8 sps:$4 sm:$0xff]  }
  0x7b   :  { %523 = vmatpush1.bf16.msra.mxu1 %v2831_v18  ;;  %v180_v31 = vpack.c.bf16 %v179_v26, %v179_v26  ;;  %v2864_v46 = vld [vmem:[%s4511_s27 + $0xa0] ss:$8 sps:$4 sm:$0xff]   ;;  %v2867_v48 = vld [vmem:[%s4511_s27 + $0x90] ss:$8 sps:$4 sm:$0xff]   ;;  %v2868_v49 = vld [vmem:[%s4511_s27 + $0x84] ss:$8 sps:$4 sm:$0xff]  }
  0x7c   :  { %524 = vmatprep.subr.bf16.mxu1 %v2832_v19  ;;  %v2870_v50 = vld [vmem:[%s4511_s27 + $0x80] ss:$8 sps:$4 sm:$0xff]   ;;  %v621_v51 = vld [vmem:[#allocation6 + $0xf8] sm:$0xff]  ;;  %v3498_v52 = vld [vmem:[#allocation6 + $0xf0] sm:$0xff]  ;;  %s4520_s29 = sld [smem:[#allocation35_spill]] }
  0x7d   :  { %286 = vmatpush1.bf16.msra.mxu0 %v2813_v13  ;;  %v3500_v53 = vld [vmem:[#allocation6 + $0xe8] sm:$0xff]  ;;  %v3502_v54 = vld [vmem:[#allocation6 + $0xe0] sm:$0xff]  ;;  %v3505_v55 = vld [vmem:[#allocation6 + $0xd8] sm:$0xff]  ;;  %s4521_s5 = sld [smem:[#allocation36_spill]] }
  0x7e   :  { %287 = vmatprep.subr.bf16.mxu0 %v2814_v16  ;;  %v3508_v56 = vld [vmem:[#allocation6 + $0xd0] sm:$0xff]  ;;  %v3511_v57 = vld [vmem:[#allocation6 + $0xc8] sm:$0xff]  ;;  %v3514_v58 = vld [vmem:[#allocation6 + $0xc0] sm:$0xff] }
  0x7f   :  { %525 = vmatpush1.bf16.msra.mxu1 %v2834_v22  ;;  %v3517_v59 = vld [vmem:[#allocation6 + $0xb8] sm:$0xff]  ;;  %v3520_v60 = vld [vmem:[#allocation6 + $0xb0] sm:$0xff]  ;;  %v3523_v61 = vld [vmem:[#allocation6 + $0xa8] sm:$0xff] }
  0x80   :  { %526 = vmatprep.subr.bf16.mxu1 %v2835_v23  ;;  %v3526_v62 = vld [vmem:[#allocation6 + $0xa0] sm:$0xff]  ;;  %v3529_v63 = vld [vmem:[#allocation6 + $0x98] sm:$0xff]  ;;  %v3532_v0 = vld [vmem:[#allocation6 + $0x90] sm:$0xff] }
  0x81   :  { %288 = vmatpush1.bf16.msra.mxu0 %v2816_v17  ;;  %v3535_v1 = vld [vmem:[#allocation6 + $0x88] sm:$0xff]  ;;  %v3538_v2 = vld [vmem:[#allocation6 + $0x80] sm:$0xff]  ;;  %v3541_v3 = vld [vmem:[#allocation6 + $0x78] sm:$0xff] }
  0x82   :  { %289 = vmatprep.subr.bf16.mxu0 %v2817_v20  ;;  %v3544_v4 = vld [vmem:[#allocation6 + $0x70] sm:$0xff]  ;;  %v3547_v5 = vld [vmem:[#allocation6 + $0x68] sm:$0xff]  ;;  %v3550_v6 = vld [vmem:[#allocation6 + $0x60] sm:$0xff] }
  0x83   :  { %527 = vmatpush1.bf16.msra.mxu1 %v2837_v27  ;;  %v3553_v7 = vld [vmem:[#allocation6 + $0x58] sm:$0xff]  ;;  %v3556_v8 = vld [vmem:[#allocation6 + $0x50] sm:$0xff]  ;;  %v3559_v9 = vld [vmem:[#allocation6 + $0x48] sm:$0xff] }
  0x84   :  { %528 = vmatprep.subr.bf16.mxu1 %v2838_v28  ;;  %v3562_v10 = vld [vmem:[#allocation6 + $0x40] sm:$0xff]  ;;  %v3565_v11 = vld [vmem:[#allocation6 + $0x38] sm:$0xff]  ;;  %v3568_v12 = vld [vmem:[#allocation6 + $0x30] sm:$0xff] }
  0x85   :  { %290 = vmatpush1.bf16.msra.mxu0 %v2819_v21  ;;  %v3571_v13 = vld [vmem:[#allocation6 + $0x28] sm:$0xff]  ;;  %v3574_v14 = vld [vmem:[#allocation6 + $0x20] sm:$0xff]  ;;  %v3577_v15 = vld [vmem:[#allocation6 + $0x18] sm:$0xff] }
  0x86   :  { %291 = vmatprep.subr.bf16.mxu0 %v2820_v24  ;;  %v3580_v16 = vld [vmem:[#allocation6 + $0x10] sm:$0xff]  ;;  %v3583_v17 = vld [vmem:[#allocation6 + $0x8] sm:$0xff]  ;;  %v3586_v18 = vld [vmem:[#allocation6] sm:$0xff] }
  0x87   :  { %529 = vmatpush1.bf16.msra.mxu1 %v2840_v29  ;;  %v3589_v19 = vld [vmem:[#allocation6 + $0x1f8] sm:$0xff]  ;;  %v3592_v20 = vld [vmem:[#allocation6 + $0x1f0] sm:$0xff]  ;;  %v3595_v21 = vld [vmem:[#allocation6 + $0x1e8] sm:$0xff] }
  0x88   :  { %530 = vmatprep.subr.bf16.mxu1 %v2841_v30  ;;  %v3598_v22 = vld [vmem:[#allocation6 + $0x1e0] sm:$0xff]  ;;  %v3601_v23 = vld [vmem:[#allocation6 + $0x1d8] sm:$0xff]  ;;  %v3604_v24 = vld [vmem:[#allocation6 + $0x1d0] sm:$0xff] }
  0x89   :  { %292 = vmatpush1.bf16.msra.mxu0 %v2822_v25  ;;  %v3607_v25 = vld [vmem:[#allocation6 + $0x1c8] sm:$0xff]  ;;  %v3610_v26 = vld [vmem:[#allocation6 + $0x1c0] sm:$0xff]  ;;  %v3613_v27 = vld [vmem:[#allocation6 + $0x1b8] sm:$0xff] }
  0x8a   :  { %654 = vmatprep.subr.mxu0 %v621_v51  ;;  %v3616_v28 = vld [vmem:[#allocation6 + $0x1b0] sm:$0xff]  ;;  %v3619_v29 = vld [vmem:[#allocation6 + $0x1a8] sm:$0xff]  ;;  %v3622_v30 = vld [vmem:[#allocation6 + $0x1a0] sm:$0xff] }
  0x8b   :  { %531 = vmatpush1.bf16.msra.mxu1 %v2843_v32  ;;  %v3628_v32 = vld [vmem:[#allocation6 + $0x190] sm:$0xff] }
  0x8c   :  { %310 = vmatmul.mubr.bf16.vlgmr.msra.gmra.mxu0 %v180_v31  ;;  %532 = vmatprep.subr.bf16.mxu1 %v2844_v33  ;;  %v3625_v31 = vld [vmem:[#allocation6 + $0x198] sm:$0xff]  ;;  %v639_v33 = vld [vmem:[#allocation6 + $0x188] sm:$0xff] }
  0x8d   :  { %655 = vmatpush1.msra.mxu0 %v3498_v52 }
  0x8e   :  { %656 = vmatprep.subr.mxu0 %v3500_v53 }
  0x8f   :  { %533 = vmatpush1.bf16.msra.mxu1 %v2846_v34  ;;  %657 = vmatpush1.msra.mxu0 %v3502_v54 }
  0x90   :  { %534 = vmatprep.subr.bf16.mxu1 %v2847_v35  ;;  %658 = vmatprep.subr.mxu0 %v3505_v55 }
  0x91   :  { %659 = vmatpush1.msra.mxu0 %v3508_v56 }
  0x92   :  { %660 = vmatprep.subr.mxu0 %v3511_v57 }
  0x93   :  { %535 = vmatpush2.bf16.msra.mxu1 %v2849_v36  ;;  %661 = vmatpush1.msra.mxu0 %v3514_v58 }
  0x94   :  { %536 = vmatprep.subr.bf16.mxu1 %v2850_v37  ;;  %662 = vmatprep.subr.mxu0 %v3517_v59 }
  0x95   :  { %663 = vmatpush1.msra.mxu0 %v3520_v60 }
  0x96   :  { %664 = vmatprep.subr.mxu0 %v3523_v61 }
  0x97   :  { %537 = vmatpush2.bf16.msra.mxu1 %v2852_v38  ;;  %665 = vmatpush1.msra.mxu0 %v3526_v62 }
  0x98   :  { %538 = vmatprep.subr.bf16.mxu1 %v2853_v39  ;;  %666 = vmatprep.subr.mxu0 %v3529_v63 }
  0x99   :  { %667 = vmatpush1.msra.mxu0 %v3532_v0 }
  0x9a   :  { %668 = vmatprep.subr.mxu0 %v3535_v1 }
  0x9b   :  { %539 = vmatpush2.bf16.msra.mxu1 %v2855_v40  ;;  %669 = vmatpush1.msra.mxu0 %v3538_v2 }
  0x9c   :  { %540 = vmatprep.subr.bf16.mxu1 %v2856_v41  ;;  %670 = vmatprep.subr.mxu0 %v3541_v3 }
  0x9d   :  { %671 = vmatpush1.msra.mxu0 %v3544_v4 }
  0x9e   :  { %672 = vmatprep.subr.mxu0 %v3547_v5 }
  0x9f   :  { %541 = vmatpush2.bf16.msra.mxu1 %v2858_v42  ;;  %673 = vmatpush1.msra.mxu0 %v3550_v6 }
  0xa0   :  { %542 = vmatprep.subr.bf16.mxu1 %v2859_v43  ;;  %674 = vmatprep.subr.mxu0 %v3553_v7 }
  0xa1   :  { %675 = vmatpush1.msra.mxu0 %v3556_v8 }
  0xa2   :  { %676 = vmatprep.subr.mxu0 %v3559_v9 }
  0xa3   :  { %543 = vmatpush2.bf16.msra.mxu1 %v2861_v44  ;;  %677 = vmatpush1.msra.mxu0 %v3562_v10  ;;  %v638_v44 = vld [vmem:[#allocation6 + $0x180] sm:$0xff] }
  0xa4   :  { %544 = vmatprep.subr.bf16.mxu1 %v2862_v45  ;;  %678 = vmatprep.subr.mxu0 %v3565_v11  ;;  %v637_v45 = vld [vmem:[#allocation6 + $0x178] sm:$0xff] }
  0xa5   :  { %679 = vmatpush1.msra.mxu0 %v3568_v12 }
  0xa6   :  { %680 = vmatprep.subr.mxu0 %v3571_v13 }
  0xa7   :  { %545 = vmatpush2.bf16.msra.mxu1 %v2864_v46  ;;  %681 = vmatpush1.msra.mxu0 %v3574_v14  ;;  %v636_v46 = vld [vmem:[#allocation6 + $0x170] sm:$0xff] }
  0xa8   :  { %546 = vmatprep.subr.bf16.mxu1 %v2865_v47  ;;  %682 = vmatprep.subr.mxu0 %v3577_v15  ;;  %v635_v47 = vld [vmem:[#allocation6 + $0x168] sm:$0xff] }
  0xa9   :  { %683 = vmatpush1.msra.mxu0 %v3580_v16 }
  0xaa   :  { %684 = vmatprep.subr.mxu0 %v3583_v17 }
  0xab   :  { %547 = vmatpush2.bf16.msra.mxu1 %v2867_v48  ;;  %685 = vmatpush1.msra.mxu0 %v3586_v18  ;;  %v634_v48 = vld [vmem:[#allocation6 + $0x160] sm:$0xff] }
  0xac   :  { %548 = vmatprep.subr.bf16.mxu1 %v2868_v49  ;;  %686 = vmatprep.subr.mxu0 %v3589_v19  ;;  %v633_v49 = vld [vmem:[#allocation6 + $0x158] sm:$0xff] }
  0xad   :  { %687 = vmatpush2.msra.mxu0 %v3592_v20 }
  0xae   :  { %688 = vmatprep.subr.mxu0 %v3595_v21 }
  0xaf   :  { %549 = vmatpush2.bf16.msra.mxu1 %v2870_v50  ;;  %689 = vmatpush2.msra.mxu0 %v3598_v22  ;;  %v632_v50 = vld [vmem:[#allocation6 + $0x150] sm:$0xff] }
  0xb0   :  { %725 = vmatprep.subr.mxu1 %v621_v51  ;;  %690 = vmatprep.subr.mxu0 %v3601_v23  ;;  %v631_v51 = vld [vmem:[#allocation6 + $0x148] sm:$0xff] }
  0xb1   :  { %691 = vmatpush2.msra.mxu0 %v3604_v24 }
  0xb2   :  { %692 = vmatprep.subr.mxu0 %v3607_v25 }
  0xb3   :  { %693 = vmatpush2.msra.mxu0 %v3610_v26 }
  0xb4   :  { %694 = vmatprep.subr.mxu0 %v3613_v27 }
  0xb5   :  { %695 = vmatpush2.msra.mxu0 %v3616_v28 }
  0xb6   :  { %696 = vmatprep.subr.mxu0 %v3619_v29 }
  0xb7   :  { %697 = vmatpush2.msra.mxu0 %v3622_v30 }
  0xb8   :  { %698 = vmatprep.subr.mxu0 %v3625_v31 }
  0xb9   :  { %699 = vmatpush2.msra.mxu0 %v3628_v32 }
  0xba   :  { %700 = vmatprep.subr.mxu0 %v639_v33 }
  0xbb   :  { %701 = vmatpush2.msra.mxu0 %v638_v44 }
  0xbc   :  { %702 = vmatprep.subr.mxu0 %v637_v45 }
  0xbd   :  { %703 = vmatpush2.msra.mxu0 %v636_v46 }
  0xbe   :  { %704 = vmatprep.subr.mxu0 %v635_v47 }
  0xbf   :  { %705 = vmatpush2.msra.mxu0 %v634_v48 }
  0xc0   :  { %706 = vmatprep.subr.mxu0 %v633_v49 }
  0xc1   :  { %707 = vmatpush2.msra.mxu0 %v632_v50 }
  0xc2   :  { %708 = vmatprep.subr.mxu0 %v631_v51 }
 0x14c   :  { %v311_v34 = vpop.f32.mrf.mxu0 }
 0x14d   :  { %vm318_vm0 = vcmp.gt.f32.partialorder %v311_v34, 0.0  ;;  %v320_v35 = vmul.f32 0.2, %v311_v34 }
 0x14e   :  { %v313_v36 = vpop.f32.mrf.mxu0 }
 0x14f   :  { %v321_v37 = vmul.f32 0.2, %v313_v36  ;;  %vm319_vm1 = vcmp.gt.f32.partialorder %v313_v36, 0.0  ;;  %v322_v38 = vsel %vm318_vm0, %v311_v34, %v320_v35  ;;  %v2874_v34 = vld [vmem:[#allocation8 + $0x60] ss:$8 sps:$4 sm:$0xff]  }
 0x150   :  { %v315_v39 = vpop.f32.mrf.mxu0  ;;  %v324_v43 = vpack.c.bf16 %v322_v38, %v322_v38  ;;  %v2879_v35 = vld [vmem:[#allocation8 + $0x54] ss:$8 sps:$4 sm:$0xff]   ;;  %v2880_v38 = vld [vmem:[#allocation8 + $0x40] ss:$8 sps:$4 sm:$0xff]  }
 0x151   :  { %v323_v40 = vsel %vm319_vm1, %v313_v36, %v321_v37  ;;  %v2877_v36 = vld [vmem:[#allocation8 + $0x50] ss:$8 sps:$4 sm:$0xff]   ;;  %v2882_v37 = vld [vmem:[#allocation8 + $0x44] ss:$8 sps:$4 sm:$0xff]   ;;  %v2885_v39 = vld [vmem:[#allocation8 + $0x34] ss:$8 sps:$4 sm:$0xff]  }
 0x152   :  { %v316_v41 = vpop.f32.mrf.mxu0  ;;  %v325_v42 = vpack.c.bf16 %v323_v40, %v323_v40  ;;  %v2883_v40 = vld [vmem:[#allocation8 + $0x30] ss:$8 sps:$4 sm:$0xff]  }
 0x153   :  { %v2888_v41 = vld [vmem:[#allocation8 + $0x24] ss:$8 sps:$4 sm:$0xff]  }
 0x154   :  { %550 = vmatprep.mubr.bf16.mxu1 %v325_v42  ;;  %v2886_v42 = vld [vmem:[#allocation8 + $0x20] ss:$8 sps:$4 sm:$0xff]  }
 0x155   :  { %551 = vmatmul.mubr.bf16.vlgmr.msra.gmra.mxu1 %v324_v43  ;;  %v2891_v43 = vld [vmem:[#allocation8 + $0x14] ss:$8 sps:$4 sm:$0xff]  }
 0x156   :  { %726 = vmatpush1.msra.mxu1 %v3498_v52  ;;  %v630_v52 = vld [vmem:[#allocation6 + $0x140] sm:$0xff] }
 0x157   :  { %727 = vmatprep.subr.mxu1 %v3500_v53  ;;  %709 = vmatpush2.msra.mxu0 %v630_v52  ;;  %v629_v53 = vld [vmem:[#allocation6 + $0x138] sm:$0xff] }
 0x158   :  { %728 = vmatpush1.msra.mxu1 %v3502_v54  ;;  %710 = vmatprep.subr.mxu0 %v629_v53  ;;  %v628_v54 = vld [vmem:[#allocation6 + $0x130] sm:$0xff] }
 0x159   :  { %729 = vmatprep.subr.mxu1 %v3505_v55  ;;  %711 = vmatpush2.msra.mxu0 %v628_v54  ;;  %v627_v55 = vld [vmem:[#allocation6 + $0x128] sm:$0xff] }
 0x15a   :  { %730 = vmatpush1.msra.mxu1 %v3508_v56  ;;  %v626_v56 = vld [vmem:[#allocation6 + $0x120] sm:$0xff]  ;;  %712 = vmatprep.subr.mxu0 %v627_v55 }
 0x15b   :  { %731 = vmatprep.subr.mxu1 %v3511_v57  ;;  %v625_v57 = vld [vmem:[#allocation6 + $0x118] sm:$0xff]  ;;  %713 = vmatpush2.msra.mxu0 %v626_v56 }
 0x15c   :  { %732 = vmatpush1.msra.mxu1 %v3514_v58  ;;  %v624_v58 = vld [vmem:[#allocation6 + $0x110] sm:$0xff]  ;;  %714 = vmatprep.subr.mxu0 %v625_v57 }
 0x15d   :  { %733 = vmatprep.subr.mxu1 %v3517_v59  ;;  %v623_v59 = vld [vmem:[#allocation6 + $0x108] sm:$0xff]  ;;  %715 = vmatpush2.msra.mxu0 %v624_v58 }
 0x15e   :  { %734 = vmatpush1.msra.mxu1 %v3520_v60  ;;  %v622_v60 = vld [vmem:[#allocation6 + $0x100] sm:$0xff]  ;;  %716 = vmatprep.subr.mxu0 %v623_v59 }
 0x15f   :  { %735 = vmatprep.subr.mxu1 %v3523_v61  ;;  %717 = vmatpush2.msra.mxu0 %v622_v60  ;;  %v2873_v61 = vld [vmem:[#allocation8 + $0x74] ss:$8 sps:$4 sm:$0xff]  }
 0x160   :  { %736 = vmatpush1.msra.mxu1 %v3526_v62  ;;  %1052 = vmatprep.subr.bf16.mxu0 %v2873_v61  ;;  %v2918_v61 = vld [vmem:[#allocation8 + $0x84] ss:$8 sps:$4 sm:$0xff]  }
 0x161   :  { %737 = vmatprep.subr.mxu1 %v3529_v63 }
 0x162   :  { %738 = vmatpush1.msra.mxu1 %v3532_v0 }
 0x163   :  { %739 = vmatprep.subr.mxu1 %v3535_v1 }
 0x164   :  { %740 = vmatpush1.msra.mxu1 %v3538_v2 }
 0x165   :  { %741 = vmatprep.subr.mxu1 %v3541_v3 }
 0x166   :  { %742 = vmatpush1.msra.mxu1 %v3544_v4 }
 0x167   :  { %743 = vmatprep.subr.mxu1 %v3547_v5 }
 0x168   :  { %744 = vmatpush1.msra.mxu1 %v3550_v6 }
 0x169   :  { %745 = vmatprep.subr.mxu1 %v3553_v7 }
 0x16a   :  { %746 = vmatpush1.msra.mxu1 %v3556_v8 }
 0x16b   :  { %747 = vmatprep.subr.mxu1 %v3559_v9 }
 0x16c   :  { %748 = vmatpush1.msra.mxu1 %v3562_v10 }
 0x16d   :  { %749 = vmatprep.subr.mxu1 %v3565_v11 }
 0x16e   :  { %750 = vmatpush1.msra.mxu1 %v3568_v12 }
 0x16f   :  { %751 = vmatprep.subr.mxu1 %v3571_v13 }
 0x170   :  { %752 = vmatpush1.msra.mxu1 %v3574_v14 }
 0x171   :  { %753 = vmatprep.subr.mxu1 %v3577_v15 }
 0x172   :  { %754 = vmatpush1.msra.mxu1 %v3580_v16 }
 0x173   :  { %755 = vmatprep.subr.mxu1 %v3583_v17 }
 0x174   :  { %756 = vmatpush1.msra.mxu1 %v3586_v18 }
 0x175   :  { %757 = vmatprep.subr.mxu1 %v3589_v19 }
 0x176   :  { %758 = vmatpush2.msra.mxu1 %v3592_v20 }
 0x177   :  { %759 = vmatprep.subr.mxu1 %v3595_v21 }
 0x178   :  { %760 = vmatpush2.msra.mxu1 %v3598_v22 }
 0x179   :  { %761 = vmatprep.subr.mxu1 %v3601_v23 }
 0x17a   :  { %762 = vmatpush2.msra.mxu1 %v3604_v24 }
 0x17b   :  { %763 = vmatprep.subr.mxu1 %v3607_v25 }
 0x17c   :  { %764 = vmatpush2.msra.mxu1 %v3610_v26 }
 0x17d   :  { %765 = vmatprep.subr.mxu1 %v3613_v27 }
 0x17e   :  { %766 = vmatpush2.msra.mxu1 %v3616_v28 }
 0x17f   :  { %767 = vmatprep.subr.mxu1 %v3619_v29  ;;  %v2871_v29 = vld [vmem:[#allocation8 + $0x70] ss:$8 sps:$4 sm:$0xff]  }
 0x180   :  { %768 = vmatpush2.msra.mxu1 %v3622_v30 }
 0x181   :  { %769 = vmatprep.subr.mxu1 %v3625_v31  ;;  %v2876_v31 = vld [vmem:[#allocation8 + $0x64] ss:$8 sps:$4 sm:$0xff]  }
 0x182   :  { %770 = vmatpush2.msra.mxu1 %v3628_v32 }
 0x183   :  { %771 = vmatprep.subr.mxu1 %v639_v33 }
 0x184   :  { %772 = vmatpush2.msra.mxu1 %v638_v44  ;;  %v2889_v44 = vld [vmem:[#allocation8 + $0x10] ss:$8 sps:$4 sm:$0xff]  }
 0x185   :  { %773 = vmatprep.subr.mxu1 %v637_v45  ;;  %v2894_v45 = vld [vmem:[#allocation8 + $0x4] ss:$8 sps:$4 sm:$0xff]  }
 0x186   :  { %774 = vmatpush2.msra.mxu1 %v636_v46  ;;  %v2892_v46 = vld [vmem:[#allocation8] ss:$8 sps:$4 sm:$0xff]  }
 0x187   :  { %775 = vmatprep.subr.mxu1 %v635_v47  ;;  %v2897_v47 = vld [vmem:[#allocation8 + $0xf4] ss:$8 sps:$4 sm:$0xff]  }
 0x188   :  { %776 = vmatpush2.msra.mxu1 %v634_v48  ;;  %v2895_v48 = vld [vmem:[#allocation8 + $0xf0] ss:$8 sps:$4 sm:$0xff]  }
 0x189   :  { %777 = vmatprep.subr.mxu1 %v633_v49  ;;  %v2900_v49 = vld [vmem:[#allocation8 + $0xe4] ss:$8 sps:$4 sm:$0xff]  }
 0x18a   :  { %778 = vmatpush2.msra.mxu1 %v632_v50  ;;  %v2898_v50 = vld [vmem:[#allocation8 + $0xe0] ss:$8 sps:$4 sm:$0xff]  }
 0x18b   :  { %779 = vmatprep.subr.mxu1 %v631_v51  ;;  %v2903_v51 = vld [vmem:[#allocation8 + $0xd4] ss:$8 sps:$4 sm:$0xff]  }
 0x18c   :  { %780 = vmatpush2.msra.mxu1 %v630_v52  ;;  %v2901_v52 = vld [vmem:[#allocation8 + $0xd0] ss:$8 sps:$4 sm:$0xff]  }
 0x18d   :  { %781 = vmatprep.subr.mxu1 %v629_v53  ;;  %v2906_v53 = vld [vmem:[#allocation8 + $0xc4] ss:$8 sps:$4 sm:$0xff]  }
 0x18e   :  { %782 = vmatpush2.msra.mxu1 %v628_v54  ;;  %v2904_v54 = vld [vmem:[#allocation8 + $0xc0] ss:$8 sps:$4 sm:$0xff]  }
 0x18f   :  { %783 = vmatprep.subr.mxu1 %v627_v55  ;;  %v2909_v55 = vld [vmem:[#allocation8 + $0xb4] ss:$8 sps:$4 sm:$0xff]  }
 0x190   :  { %784 = vmatpush2.msra.mxu1 %v626_v56  ;;  %v2907_v56 = vld [vmem:[#allocation8 + $0xb0] ss:$8 sps:$4 sm:$0xff]  }
 0x191   :  { %785 = vmatprep.subr.mxu1 %v625_v57  ;;  %v2912_v57 = vld [vmem:[#allocation8 + $0xa4] ss:$8 sps:$4 sm:$0xff]  }
 0x192   :  { %786 = vmatpush2.msra.mxu1 %v624_v58  ;;  %v2910_v58 = vld [vmem:[#allocation8 + $0xa0] ss:$8 sps:$4 sm:$0xff]  }
 0x193   :  { %787 = vmatprep.subr.mxu1 %v623_v59  ;;  %v2915_v59 = vld [vmem:[#allocation8 + $0x94] ss:$8 sps:$4 sm:$0xff]  }
 0x194   :  { %788 = vmatpush2.msra.mxu1 %v622_v60  ;;  %v2913_v60 = vld [vmem:[#allocation8 + $0x90] ss:$8 sps:$4 sm:$0xff]  }
 0x215   :  { %v3678_v62 = vpop.f32.mrf.mxu1 }
 0x216   :  { %v560_v63 = vsel %vm559_vm2, %v3678_v62, 0.0  ;;  %v574_v0 = vmul.f32 %v3678_v62, %v3678_v62 }
 0x217   :  { %v561_v1 = vrot.slane %v560_v63, 4  ;;  %v3684_v2 = vpop.f32.mrf.mxu1 }
 0x218   :  { %v576_v3 = vsel %vm559_vm2, %v574_v0, 0.0  ;;  %v567_v4 = vsel %vm559_vm2, %v3684_v2, 0.0  ;;  %v575_v5 = vmul.f32 %v3684_v2, %v3684_v2  ;;  %v1154_v0 = vld [vmem:[#allocation9 + $0xf8] sm:$0xff] }
 0x219   :  { %v562_v6 = vadd.f32 %v561_v1, %v560_v63  ;;  %v577_v7 = vrot.slane %v576_v3, 4  ;;  %v568_v8 = vrot.slane %v567_v4, 4  ;;  %v556_v9 = vpop.f32.mrf.mxu1  ;;  %v2916_v63 = vld [vmem:[#allocation8 + $0x80] ss:$8 sps:$4 sm:$0xff]   ;;  %v3692_v1 = vld [vmem:[#allocation9 + $0xf0] sm:$0xff]  ;;  %1187 = vmatprep.subr.mxu1 %v1154_v0 }
 0x21a   :  { %v583_v10 = vsel %vm559_vm2, %v575_v5, 0.0  ;;  %v3699_v5 = vld [vmem:[#allocation9 + $0xd8] sm:$0xff] }
 0x21b   :  { %v563_v11 = vrot.slane %v562_v6, 2  ;;  %v578_v12 = vadd.f32 %v577_v7, %v576_v3  ;;  %v569_v13 = vadd.f32 %v568_v8, %v567_v4  ;;  %v584_v14 = vrot.slane %v583_v10, 4  ;;  %v557_v15 = vpop.f32.mrf.mxu1  ;;  %v3694_v3 = vld [vmem:[#allocation9 + $0xe8] sm:$0xff]  ;;  %v3696_v4 = vld [vmem:[#allocation9 + $0xe0] sm:$0xff]  ;;  %v3711_v9 = vld [vmem:[#allocation9 + $0xb8] sm:$0xff] }
 0x21c   :  { %v3705_v7 = vld [vmem:[#allocation9 + $0xc8] sm:$0xff]  ;;  %v3708_v8 = vld [vmem:[#allocation9 + $0xc0] sm:$0xff] }
 0x21d   :  { %v564_v16 = vadd.f32 %v563_v11, %v562_v6  ;;  %v579_v17 = vrot.slane %v578_v12, 2  ;;  %v570_v18 = vrot.slane %v569_v13, 2  ;;  %v585_v19 = vadd.f32 %v584_v14, %v583_v10  ;;  %v3702_v6 = vld [vmem:[#allocation9 + $0xd0] sm:$0xff]  ;;  %v3717_v11 = vld [vmem:[#allocation9 + $0xa8] sm:$0xff] }
 0x21e   :  { %v3714_v10 = vld [vmem:[#allocation9 + $0xb0] sm:$0xff]  ;;  %v3729_v15 = vld [vmem:[#allocation9 + $0x88] sm:$0xff] }
 0x21f   :  { %v580_v20 = vadd.f32 %v579_v17, %v578_v12  ;;  %v571_v21 = vadd.f32 %v570_v18, %v569_v13  ;;  %v586_v22 = vrot.slane %v585_v19, 2  ;;  %v565_v23 = vrot.slane %v564_v16, 1  ;;  %v3720_v12 = vld [vmem:[#allocation9 + $0xa0] sm:$0xff]  ;;  %v3723_v13 = vld [vmem:[#allocation9 + $0x98] sm:$0xff]  ;;  %v3726_v14 = vld [vmem:[#allocation9 + $0x90] sm:$0xff] }
 0x220   :  { %v3735_v17 = vld [vmem:[#allocation9 + $0x78] sm:$0xff]  ;;  %v3738_v18 = vld [vmem:[#allocation9 + $0x70] sm:$0xff] }
 0x221   :  { %v572_v24 = vrot.slane %v571_v21, 1  ;;  %v587_v25 = vadd.f32 %v586_v22, %v585_v19  ;;  %v581_v26 = vrot.slane %v580_v20, 1  ;;  %v566_v30 = vadd.f32 %v565_v23, %v564_v16  ;;  %v3732_v16 = vld [vmem:[#allocation9 + $0x80] sm:$0xff]  ;;  %v3741_v19 = vld [vmem:[#allocation9 + $0x68] sm:$0xff]  ;;  %v3750_v22 = vld [vmem:[#allocation9 + $0x50] sm:$0xff] }
 0x222   :  { %v3753_v23 = vld [vmem:[#allocation9 + $0x48] sm:$0xff] }
 0x223   :  { %v573_v27 = vadd.f32 %v572_v24, %v571_v21  ;;  %v588_v28 = vrot.slane %v587_v25, 1  ;;  %v582_v33 = vadd.f32 %v581_v26, %v580_v20  ;;  %v3744_v20 = vld [vmem:[#allocation9 + $0x60] sm:$0xff]  ;;  %v3747_v21 = vld [vmem:[#allocation9 + $0x58] sm:$0xff]  ;;  %v3762_v26 = vld [vmem:[#allocation9 + $0x30] sm:$0xff] }
 0x224   :  { %v3756_v24 = vld [vmem:[#allocation9 + $0x40] sm:$0xff] }
 0x225   :  { %718 = vmatprep.mubr.f32.mxu0 %v573_v27  ;;  %v589_v32 = vadd.f32 %v588_v28, %v587_v25  ;;  %v3759_v25 = vld [vmem:[#allocation9 + $0x38] sm:$0xff]  ;;  %v3765_v27 = vld [vmem:[#allocation9 + $0x28] sm:$0xff]  ;;  %v3768_v28 = vld [vmem:[#allocation9 + $0x20] sm:$0xff] }
 0x226   :  { %719 = vmatmul.mubr.f32.vlgmr.msra.gmra.mxu0 %v566_v30  ;;  %v3774_v30 = vld [vmem:[#allocation9 + $0x10] sm:$0xff] }
 0x227   :  { %789 = vmatprep.mubr.f32.mxu1 %v589_v32  ;;  %1053 = vmatpush1.bf16.msra.mxu0 %v2871_v29  ;;  %v3771_v29 = vld [vmem:[#allocation9 + $0x18] sm:$0xff]  ;;  %v3780_v32 = vld [vmem:[#allocation9] sm:$0xff] }
 0x228   :  { %790 = vmatmul.mubr.f32.vlgmr.msra.gmra.mxu1 %v582_v33  ;;  %1054 = vmatprep.subr.bf16.mxu0 %v2876_v31  ;;  %v3777_v31 = vld [vmem:[#allocation9 + $0x8] sm:$0xff]  ;;  %v3783_v33 = vld [vmem:[#allocation9 + $0x1f8] sm:$0xff] }
 0x229   :  { %1188 = vmatpush1.msra.mxu1 %v3692_v1 }
 0x22a   :  { %1189 = vmatprep.subr.mxu1 %v3694_v3 }
 0x22b   :  { %1055 = vmatpush1.bf16.msra.mxu0 %v2874_v34  ;;  %1190 = vmatpush1.msra.mxu1 %v3696_v4  ;;  %v3786_v34 = vld [vmem:[#allocation9 + $0x1f0] sm:$0xff] }
 0x22c   :  { %1056 = vmatprep.subr.bf16.mxu0 %v2879_v35  ;;  %1191 = vmatprep.subr.mxu1 %v3699_v5  ;;  %v3789_v35 = vld [vmem:[#allocation9 + $0x1e8] sm:$0xff] }
 0x22d   :  { %1192 = vmatpush1.msra.mxu1 %v3702_v6 }
 0x22e   :  { %1193 = vmatprep.subr.mxu1 %v3705_v7 }
 0x22f   :  { %1057 = vmatpush1.bf16.msra.mxu0 %v2877_v36  ;;  %1194 = vmatpush1.msra.mxu1 %v3708_v8  ;;  %v3792_v36 = vld [vmem:[#allocation9 + $0x1e0] sm:$0xff] }
 0x230   :  { %1058 = vmatprep.subr.bf16.mxu0 %v2882_v37  ;;  %1195 = vmatprep.subr.mxu1 %v3711_v9  ;;  %v3795_v37 = vld [vmem:[#allocation9 + $0x1d8] sm:$0xff] }
 0x231   :  { %1196 = vmatpush1.msra.mxu1 %v3714_v10 }
 0x232   :  { %1197 = vmatprep.subr.mxu1 %v3717_v11 }
 0x233   :  { %1059 = vmatpush1.bf16.msra.mxu0 %v2880_v38  ;;  %1198 = vmatpush1.msra.mxu1 %v3720_v12  ;;  %v3798_v38 = vld [vmem:[#allocation9 + $0x1d0] sm:$0xff] }
 0x234   :  { %1060 = vmatprep.subr.bf16.mxu0 %v2885_v39  ;;  %1199 = vmatprep.subr.mxu1 %v3723_v13  ;;  %v3801_v39 = vld [vmem:[#allocation9 + $0x1c8] sm:$0xff] }
 0x235   :  { %1200 = vmatpush1.msra.mxu1 %v3726_v14 }
 0x236   :  { %1201 = vmatprep.subr.mxu1 %v3729_v15 }
 0x237   :  { %1061 = vmatpush1.bf16.msra.mxu0 %v2883_v40  ;;  %1202 = vmatpush1.msra.mxu1 %v3732_v16  ;;  %v3804_v40 = vld [vmem:[#allocation9 + $0x1c0] sm:$0xff] }
 0x238   :  { %1062 = vmatprep.subr.bf16.mxu0 %v2888_v41  ;;  %1203 = vmatprep.subr.mxu1 %v3735_v17  ;;  %v3807_v41 = vld [vmem:[#allocation9 + $0x1b8] sm:$0xff] }
 0x239   :  { %1204 = vmatpush1.msra.mxu1 %v3738_v18  ;;  %4513 = vst [vmem:[#allocation24_spill] sm:$0xff] %v3807_v41 }
 0x23a   :  { %1205 = vmatprep.subr.mxu1 %v3741_v19 }
 0x23b   :  { %1063 = vmatpush1.bf16.msra.mxu0 %v2886_v42  ;;  %1206 = vmatpush1.msra.mxu1 %v3744_v20  ;;  %v3810_v42 = vld [vmem:[#allocation9 + $0x1b0] sm:$0xff] }
 0x23c   :  { %1064 = vmatprep.subr.bf16.mxu0 %v2891_v43  ;;  %1207 = vmatprep.subr.mxu1 %v3747_v21  ;;  %4514 = vst [vmem:[#allocation25_spill] sm:$0xff] %v3810_v42  ;;  %v3813_v43 = vld [vmem:[#allocation9 + $0x1a8] sm:$0xff] }
 0x23d   :  { %1208 = vmatpush1.msra.mxu1 %v3750_v22  ;;  %4515 = vst [vmem:[#allocation26_spill] sm:$0xff] %v3813_v43 }
 0x23e   :  { %1209 = vmatprep.subr.mxu1 %v3753_v23 }
 0x23f   :  { %1065 = vmatpush1.bf16.msra.mxu0 %v2889_v44  ;;  %1210 = vmatpush1.msra.mxu1 %v3756_v24  ;;  %v3816_v44 = vld [vmem:[#allocation9 + $0x1a0] sm:$0xff] }
 0x240   :  { %1066 = vmatprep.subr.bf16.mxu0 %v2894_v45  ;;  %1211 = vmatprep.subr.mxu1 %v3759_v25  ;;  %4516 = vst [vmem:[#allocation27_spill] sm:$0xff] %v3816_v44  ;;  %v3819_v45 = vld [vmem:[#allocation9 + $0x198] sm:$0xff] }
 0x241   :  { %1212 = vmatpush1.msra.mxu1 %v3762_v26  ;;  %4517 = vst [vmem:[#allocation28_spill] sm:$0xff] %v3819_v45 }
 0x242   :  { %1213 = vmatprep.subr.mxu1 %v3765_v27 }
 0x243   :  { %1067 = vmatpush1.bf16.msra.mxu0 %v2892_v46  ;;  %1214 = vmatpush1.msra.mxu1 %v3768_v28  ;;  %v3822_v46 = vld [vmem:[#allocation9 + $0x190] sm:$0xff] }
 0x244   :  { %1068 = vmatprep.subr.bf16.mxu0 %v2897_v47  ;;  %1215 = vmatprep.subr.mxu1 %v3771_v29  ;;  %4518 = vst [vmem:[#allocation29_spill] sm:$0xff] %v3822_v46  ;;  %v3825_v47 = vld [vmem:[#allocation9 + $0x188] sm:$0xff] }
 0x245   :  { %1216 = vmatpush1.msra.mxu1 %v3774_v30  ;;  %4519 = vst [vmem:[#allocation30_spill] sm:$0xff] %v3825_v47 }
 0x246   :  { %1217 = vmatprep.subr.mxu1 %v3777_v31 }
 0x247   :  { %1069 = vmatpush2.bf16.msra.mxu0 %v2895_v48  ;;  %1218 = vmatpush1.msra.mxu1 %v3780_v32 }
 0x248   :  { %1070 = vmatprep.subr.bf16.mxu0 %v2900_v49  ;;  %1219 = vmatprep.subr.mxu1 %v3783_v33 }
 0x249   :  { %1220 = vmatpush2.msra.mxu1 %v3786_v34 }
 0x24a   :  { %1221 = vmatprep.subr.mxu1 %v3789_v35 }
 0x24b   :  { %1071 = vmatpush2.bf16.msra.mxu0 %v2898_v50  ;;  %1222 = vmatpush2.msra.mxu1 %v3792_v36 }
 0x24c   :  { %1072 = vmatprep.subr.bf16.mxu0 %v2903_v51  ;;  %1223 = vmatprep.subr.mxu1 %v3795_v37 }
 0x24d   :  { %1224 = vmatpush2.msra.mxu1 %v3798_v38 }
 0x24e   :  { %1225 = vmatprep.subr.mxu1 %v3801_v39 }
 0x24f   :  { %1073 = vmatpush2.bf16.msra.mxu0 %v2901_v52  ;;  %1226 = vmatpush2.msra.mxu1 %v3804_v40 }
 0x250   :  { %1074 = vmatprep.subr.bf16.mxu0 %v2906_v53  ;;  %1227 = vmatprep.subr.mxu1 %v3807_v41 }
 0x251   :  { %1228 = vmatpush2.msra.mxu1 %v3810_v42 }
 0x252   :  { %1229 = vmatprep.subr.mxu1 %v3813_v43 }
 0x253   :  { %1075 = vmatpush2.bf16.msra.mxu0 %v2904_v54  ;;  %1230 = vmatpush2.msra.mxu1 %v3816_v44 }
 0x254   :  { %1076 = vmatprep.subr.bf16.mxu0 %v2909_v55  ;;  %1231 = vmatprep.subr.mxu1 %v3819_v45  ;;  %v800_v55 = vlaneseq }
 0x255   :  { %1232 = vmatpush2.msra.mxu1 %v3822_v46 }
 0x256   :  { %1233 = vmatprep.subr.mxu1 %v3825_v47 }
 0x257   :  { %1077 = vmatpush2.bf16.msra.mxu0 %v2907_v56 }
 0x258   :  { %1078 = vmatprep.subr.bf16.mxu0 %v2912_v57 }
 0x25b   :  { %1079 = vmatpush2.bf16.msra.mxu0 %v2910_v58 }
 0x25c   :  { %1080 = vmatprep.subr.bf16.mxu0 %v2915_v59  ;;  %v801_v59 = vshrl.u32 %v800_v55, 7 }
 0x25f   :  { %1081 = vmatpush2.bf16.msra.mxu0 %v2913_v60  ;;  %v3830_v60 = vsub.s32 0, %v801_v59 }
 0x260   :  { %1082 = vmatprep.subr.bf16.mxu0 %v2918_v61 }
 0x263   :  { %1083 = vmatpush2.bf16.msra.mxu0 %v2916_v63  ;;  %v824_v63 = vld [vmem:[%s4520_s29] sm:$0x3] }
 0x264   :  { %1258 = vmatprep.subr.mxu0 %v1154_v0  ;;  %v3836_v0 = vsub.s32 1, %v801_v59  ;;  %v829_v55 = vrot.slane %v824_v63, %v3830_v60 }
 0x2e6   :  { %v720_v48 = vpop.f32.mrf.mxu0 }
 0x2e7   :  { %v796_v49 = vmul.f32 %v720_v48, %v720_v48  ;;  %v803_v61 = vrot.slane %v720_v48, %v3830_v60 }
 0x2e8   :  { %v722_v50 = vpop.f32.mrf.mxu0  ;;  %v791_v51 = vpop.f32.mrf.mxu1 }
 0x2e9   :  { %v797_v52 = vmul.f32 %v722_v50, %v722_v50  ;;  %v798_v53 = vsub.f32 %v791_v51, %v796_v49  ;;  %v807_v49 = vrot.slane %v722_v50, %v3830_v60 }
 0x2ea   :  { %v793_v54 = vpop.f32.mrf.mxu1 }
 0x2eb   :  { %v810_v56 = vadd.f32 1e-05, %v798_v53  ;;  %v799_v57 = vsub.f32 %v793_v54, %v797_v52  ;;  %v838_v52 = vld [vmem:[%s4521_s5] sm:$0x3]  ;;  %v808_v53 = vsub.f32 %v3678_v62, %v803_v61 }
 0x2ec   :  { %v843_v50 = vrot.slane %v838_v52, %v3830_v60  ;;  %v847_v46 = vrot.slane %v838_v52, %v3836_v0 }
 0x2ed   :  { %3015 = vrsqrt.f32 %v810_v56  ;;  %v811_v58 = vadd.f32 1e-05, %v799_v57  ;;  %v833_v56 = vrot.slane %v824_v63, %v3836_v0  ;;  %v809_v57 = vsub.f32 %v3684_v2, %v807_v49 }
 0x2ef   :  { %3017 = vrsqrt.f32 %v811_v58 }
 0x2fa   :  { %v3016_v51 = vpop.eup %3015 }
 0x2fb   :  { %v817_v54 = vrot.slane %v3016_v51, %v3830_v60 }
 0x2fc   :  { %v3018_v48 = vpop.eup %3017 }
 0x2fd   :  { %v821_v58 = vrot.slane %v3018_v48, %v3830_v60  ;;  %v822_v59 = vmul.f32 %v817_v54, %v808_v53 }
 0x2ff   :  { %v823_v47 = vmul.f32 %v821_v58, %v809_v57  ;;  %v836_v45 = vmul.f32 %v829_v55, %v822_v59  ;;  %v2919_v59 = vld [vmem:[#allocation11 + $0x70] ss:$8 sps:$4 sm:$0xff]  }
 0x301   :  { %v837_v44 = vmul.f32 %v833_v56, %v823_v47  ;;  %v850_v62 = vadd.f32 %v843_v50, %v836_v45 }
 0x303   :  { %v851_v61 = vadd.f32 %v847_v46, %v837_v44  ;;  %vm852_vm3 = vcmp.gt.f32.partialorder %v850_v62, 0.0  ;;  %v854_v51 = vmul.f32 0.2, %v850_v62 }
 0x305   :  { %vm853_vm4 = vcmp.gt.f32.partialorder %v851_v61, 0.0  ;;  %v855_v43 = vmul.f32 0.2, %v851_v61  ;;  %v856_v42 = vsel %vm852_vm3, %v850_v62, %v854_v51 }
 0x306   :  { %v858_v2 = vpack.c.bf16 %v856_v42, %v856_v42 }
 0x307   :  { %v857_v63 = vsel %vm853_vm4, %v851_v61, %v855_v43  ;;  %v2924_v61 = vld [vmem:[#allocation11 + $0x64] ss:$8 sps:$4 sm:$0xff]  }
 0x308   :  { %v859_v41 = vpack.c.bf16 %v857_v63, %v857_v63 }
 0x30a   :  { %1084 = vmatprep.mubr.bf16.mxu0 %v859_v41 }
 0x30b   :  { %1085 = vmatmul.mubr.bf16.vlgmr.msra.gmra.mxu0 %v858_v2  ;;  %v2922_v2 = vld [vmem:[#allocation11 + $0x60] ss:$8 sps:$4 sm:$0xff]  }
 0x30c   :  { %1259 = vmatpush1.msra.mxu0 %v3692_v1  ;;  %v4522_v1 = vld [vmem:[#allocation24_spill] sm:$0xff] }
 0x30d   :  { %1260 = vmatprep.subr.mxu0 %v3694_v3  ;;  %v4523_v3 = vld [vmem:[#allocation25_spill] sm:$0xff] }
 0x30e   :  { %1261 = vmatpush1.msra.mxu0 %v3696_v4  ;;  %v4524_v4 = vld [vmem:[#allocation26_spill] sm:$0xff] }
 0x30f   :  { %1262 = vmatprep.subr.mxu0 %v3699_v5  ;;  %v4525_v5 = vld [vmem:[#allocation27_spill] sm:$0xff] }
 0x310   :  { %1263 = vmatpush1.msra.mxu0 %v3702_v6  ;;  %v4526_v6 = vld [vmem:[#allocation28_spill] sm:$0xff] }
 0x311   :  { %1264 = vmatprep.subr.mxu0 %v3705_v7  ;;  %v4527_v7 = vld [vmem:[#allocation29_spill] sm:$0xff] }
 0x312   :  { %1265 = vmatpush1.msra.mxu0 %v3708_v8  ;;  %v4528_v8 = vld [vmem:[#allocation30_spill] sm:$0xff] }
 0x313   :  { %1266 = vmatprep.subr.mxu0 %v3711_v9  ;;  %v1171_v9 = vld [vmem:[#allocation9 + $0x180] sm:$0xff] }
 0x314   :  { %1267 = vmatpush1.msra.mxu0 %v3714_v10  ;;  %1234 = vmatpush2.msra.mxu1 %v1171_v9  ;;  %v1170_v10 = vld [vmem:[#allocation9 + $0x178] sm:$0xff] }
 0x315   :  { %1268 = vmatprep.subr.mxu0 %v3717_v11  ;;  %1235 = vmatprep.subr.mxu1 %v1170_v10  ;;  %v1169_v11 = vld [vmem:[#allocation9 + $0x170] sm:$0xff] }
 0x316   :  { %1269 = vmatpush1.msra.mxu0 %v3720_v12  ;;  %1236 = vmatpush2.msra.mxu1 %v1169_v11  ;;  %v1168_v12 = vld [vmem:[#allocation9 + $0x168] sm:$0xff] }
 0x317   :  { %1270 = vmatprep.subr.mxu0 %v3723_v13  ;;  %1237 = vmatprep.subr.mxu1 %v1168_v12  ;;  %v1167_v13 = vld [vmem:[#allocation9 + $0x160] sm:$0xff] }
 0x318   :  { %1271 = vmatpush1.msra.mxu0 %v3726_v14  ;;  %1238 = vmatpush2.msra.mxu1 %v1167_v13  ;;  %v1166_v14 = vld [vmem:[#allocation9 + $0x158] sm:$0xff] }
 0x319   :  { %1272 = vmatprep.subr.mxu0 %v3729_v15  ;;  %1239 = vmatprep.subr.mxu1 %v1166_v14  ;;  %v1165_v15 = vld [vmem:[#allocation9 + $0x150] sm:$0xff] }
 0x31a   :  { %1273 = vmatpush1.msra.mxu0 %v3732_v16  ;;  %1240 = vmatpush2.msra.mxu1 %v1165_v15  ;;  %v1164_v16 = vld [vmem:[#allocation9 + $0x148] sm:$0xff] }
 0x31b   :  { %1274 = vmatprep.subr.mxu0 %v3735_v17  ;;  %1241 = vmatprep.subr.mxu1 %v1164_v16  ;;  %v1163_v17 = vld [vmem:[#allocation9 + $0x140] sm:$0xff] }
 0x31c   :  { %1275 = vmatpush1.msra.mxu0 %v3738_v18  ;;  %1242 = vmatpush2.msra.mxu1 %v1163_v17  ;;  %v1162_v18 = vld [vmem:[#allocation9 + $0x138] sm:$0xff] }
 0x31d   :  { %1276 = vmatprep.subr.mxu0 %v3741_v19  ;;  %1243 = vmatprep.subr.mxu1 %v1162_v18  ;;  %v1161_v19 = vld [vmem:[#allocation9 + $0x130] sm:$0xff] }
 0x31e   :  { %1277 = vmatpush1.msra.mxu0 %v3744_v20  ;;  %1244 = vmatpush2.msra.mxu1 %v1161_v19  ;;  %v1160_v20 = vld [vmem:[#allocation9 + $0x128] sm:$0xff] }
 0x31f   :  { %1278 = vmatprep.subr.mxu0 %v3747_v21  ;;  %v1159_v21 = vld [vmem:[#allocation9 + $0x120] sm:$0xff]  ;;  %1245 = vmatprep.subr.mxu1 %v1160_v20 }
 0x320   :  { %1279 = vmatpush1.msra.mxu0 %v3750_v22  ;;  %v1158_v22 = vld [vmem:[#allocation9 + $0x118] sm:$0xff]  ;;  %1246 = vmatpush2.msra.mxu1 %v1159_v21 }
 0x321   :  { %1280 = vmatprep.subr.mxu0 %v3753_v23  ;;  %v1157_v23 = vld [vmem:[#allocation9 + $0x110] sm:$0xff]  ;;  %1247 = vmatprep.subr.mxu1 %v1158_v22 }
 0x322   :  { %1281 = vmatpush1.msra.mxu0 %v3756_v24  ;;  %v1156_v24 = vld [vmem:[#allocation9 + $0x108] sm:$0xff]  ;;  %1248 = vmatpush2.msra.mxu1 %v1157_v23 }
 0x323   :  { %1282 = vmatprep.subr.mxu0 %v3759_v25  ;;  %v1155_v25 = vld [vmem:[#allocation9 + $0x100] sm:$0xff]  ;;  %1249 = vmatprep.subr.mxu1 %v1156_v24 }
 0x324   :  { %1283 = vmatpush1.msra.mxu0 %v3762_v26  ;;  %1250 = vmatpush2.msra.mxu1 %v1155_v25  ;;  %v2921_v26 = vld [vmem:[#allocation11 + $0x74] ss:$8 sps:$4 sm:$0xff]  }
 0x325   :  { %1284 = vmatprep.subr.mxu0 %v3765_v27  ;;  %1585 = vmatprep.subr.bf16.mxu1 %v2921_v26  ;;  %v2963_v26 = vld [vmem:[#allocation11 + $0x94] ss:$8 sps:$4 sm:$0xff]  }
 0x326   :  { %1285 = vmatpush1.msra.mxu0 %v3768_v28 }
 0x327   :  { %1286 = vmatprep.subr.mxu0 %v3771_v29 }
 0x328   :  { %1287 = vmatpush1.msra.mxu0 %v3774_v30 }
 0x329   :  { %1288 = vmatprep.subr.mxu0 %v3777_v31 }
 0x32a   :  { %1289 = vmatpush1.msra.mxu0 %v3780_v32 }
 0x32b   :  { %1290 = vmatprep.subr.mxu0 %v3783_v33 }
 0x32c   :  { %1291 = vmatpush2.msra.mxu0 %v3786_v34 }
 0x32d   :  { %1292 = vmatprep.subr.mxu0 %v3789_v35 }
 0x32e   :  { %1293 = vmatpush2.msra.mxu0 %v3792_v36 }
 0x32f   :  { %1294 = vmatprep.subr.mxu0 %v3795_v37 }
 0x330   :  { %1295 = vmatpush2.msra.mxu0 %v3798_v38 }
 0x331   :  { %1296 = vmatprep.subr.mxu0 %v3801_v39 }
 0x332   :  { %1297 = vmatpush2.msra.mxu0 %v3804_v40 }
 0x333   :  { %1298 = vmatprep.subr.mxu0 %v4522_v1  ;;  %v2927_v1 = vld [vmem:[#allocation11 + $0x54] ss:$8 sps:$4 sm:$0xff]  }
 0x334   :  { %1299 = vmatpush2.msra.mxu0 %v4523_v3  ;;  %v2925_v3 = vld [vmem:[#allocation11 + $0x50] ss:$8 sps:$4 sm:$0xff]  }
 0x335   :  { %1300 = vmatprep.subr.mxu0 %v4524_v4  ;;  %v2930_v4 = vld [vmem:[#allocation11 + $0x44] ss:$8 sps:$4 sm:$0xff]  }
 0x336   :  { %1301 = vmatpush2.msra.mxu0 %v4525_v5  ;;  %v2928_v5 = vld [vmem:[#allocation11 + $0x40] ss:$8 sps:$4 sm:$0xff]  }
 0x337   :  { %1302 = vmatprep.subr.mxu0 %v4526_v6  ;;  %v2933_v6 = vld [vmem:[#allocation11 + $0x34] ss:$8 sps:$4 sm:$0xff]  }
 0x338   :  { %1303 = vmatpush2.msra.mxu0 %v4527_v7  ;;  %v2931_v7 = vld [vmem:[#allocation11 + $0x30] ss:$8 sps:$4 sm:$0xff]  }
 0x339   :  { %1304 = vmatprep.subr.mxu0 %v4528_v8  ;;  %v2936_v8 = vld [vmem:[#allocation11 + $0x24] ss:$8 sps:$4 sm:$0xff]  }
 0x33a   :  { %1305 = vmatpush2.msra.mxu0 %v1171_v9  ;;  %v2934_v9 = vld [vmem:[#allocation11 + $0x20] ss:$8 sps:$4 sm:$0xff]  }
 0x33b   :  { %1306 = vmatprep.subr.mxu0 %v1170_v10  ;;  %v2939_v10 = vld [vmem:[#allocation11 + $0x14] ss:$8 sps:$4 sm:$0xff]  }
 0x33c   :  { %1307 = vmatpush2.msra.mxu0 %v1169_v11  ;;  %v2937_v11 = vld [vmem:[#allocation11 + $0x10] ss:$8 sps:$4 sm:$0xff]  }
 0x33d   :  { %1308 = vmatprep.subr.mxu0 %v1168_v12  ;;  %v2942_v12 = vld [vmem:[#allocation11 + $0x4] ss:$8 sps:$4 sm:$0xff]  }
 0x33e   :  { %1309 = vmatpush2.msra.mxu0 %v1167_v13  ;;  %v2940_v13 = vld [vmem:[#allocation11] ss:$8 sps:$4 sm:$0xff]  }
 0x33f   :  { %1310 = vmatprep.subr.mxu0 %v1166_v14  ;;  %v2945_v14 = vld [vmem:[#allocation11 + $0xf4] ss:$8 sps:$4 sm:$0xff]  }
 0x340   :  { %1311 = vmatpush2.msra.mxu0 %v1165_v15  ;;  %v2943_v15 = vld [vmem:[#allocation11 + $0xf0] ss:$8 sps:$4 sm:$0xff]  }
 0x341   :  { %1312 = vmatprep.subr.mxu0 %v1164_v16  ;;  %v2948_v16 = vld [vmem:[#allocation11 + $0xe4] ss:$8 sps:$4 sm:$0xff]  }
 0x342   :  { %1313 = vmatpush2.msra.mxu0 %v1163_v17  ;;  %v2946_v17 = vld [vmem:[#allocation11 + $0xe0] ss:$8 sps:$4 sm:$0xff]  }
 0x343   :  { %1314 = vmatprep.subr.mxu0 %v1162_v18  ;;  %v2951_v18 = vld [vmem:[#allocation11 + $0xd4] ss:$8 sps:$4 sm:$0xff]  }
 0x344   :  { %1315 = vmatpush2.msra.mxu0 %v1161_v19  ;;  %v2949_v19 = vld [vmem:[#allocation11 + $0xd0] ss:$8 sps:$4 sm:$0xff]  }
 0x345   :  { %1316 = vmatprep.subr.mxu0 %v1160_v20  ;;  %v2954_v20 = vld [vmem:[#allocation11 + $0xc4] ss:$8 sps:$4 sm:$0xff]  }
 0x346   :  { %1317 = vmatpush2.msra.mxu0 %v1159_v21  ;;  %v2952_v21 = vld [vmem:[#allocation11 + $0xc0] ss:$8 sps:$4 sm:$0xff]  }
 0x347   :  { %1318 = vmatprep.subr.mxu0 %v1158_v22  ;;  %v2957_v22 = vld [vmem:[#allocation11 + $0xb4] ss:$8 sps:$4 sm:$0xff]  }
 0x348   :  { %1319 = vmatpush2.msra.mxu0 %v1157_v23  ;;  %v2955_v23 = vld [vmem:[#allocation11 + $0xb0] ss:$8 sps:$4 sm:$0xff]  }
 0x349   :  { %1320 = vmatprep.subr.mxu0 %v1156_v24  ;;  %v2960_v24 = vld [vmem:[#allocation11 + $0xa4] ss:$8 sps:$4 sm:$0xff]  }
 0x34a   :  { %1321 = vmatpush2.msra.mxu0 %v1155_v25  ;;  %v2958_v25 = vld [vmem:[#allocation11 + $0xa0] ss:$8 sps:$4 sm:$0xff]  }
 0x3cb   :  { %v3896_v27 = vpop.f32.mrf.mxu0 }
 0x3cc   :  { %v1093_v28 = vsel %vm559_vm2, %v3896_v27, 0.0  ;;  %v1107_v29 = vmul.f32 %v3896_v27, %v3896_v27 }
 0x3cd   :  { %v1094_v30 = vrot.slane %v1093_v28, 4  ;;  %v3902_v31 = vpop.f32.mrf.mxu0 }
 0x3ce   :  { %v1109_v32 = vsel %vm559_vm2, %v1107_v29, 0.0  ;;  %v1100_v33 = vsel %vm559_vm2, %v3902_v31, 0.0  ;;  %v1108_v34 = vmul.f32 %v3902_v31, %v3902_v31  ;;  %v2966_v29 = vld [vmem:[#allocation11 + $0x84] ss:$8 sps:$4 sm:$0xff]  }
 0x3cf   :  { %v1095_v35 = vadd.f32 %v1094_v30, %v1093_v28  ;;  %v1110_v36 = vrot.slane %v1109_v32, 4  ;;  %v1101_v37 = vrot.slane %v1100_v33, 4  ;;  %v1090_v38 = vpop.f32.mrf.mxu0  ;;  %v2961_v28 = vld [vmem:[#allocation11 + $0x90] ss:$8 sps:$4 sm:$0xff]   ;;  %v2964_v30 = vld [vmem:[#allocation11 + $0x80] ss:$8 sps:$4 sm:$0xff]  }
 0x3d0   :  { %v1116_v39 = vsel %vm559_vm2, %v1108_v34, 0.0  ;;  %v3912_v34 = vld [vmem:[#allocation12 + $0xe8] sm:$0xff] }
 0x3d1   :  { %v1096_v40 = vrot.slane %v1095_v35, 2  ;;  %v1111_v41 = vadd.f32 %v1110_v36, %v1109_v32  ;;  %v1102_v42 = vadd.f32 %v1101_v37, %v1100_v33  ;;  %v1117_v43 = vrot.slane %v1116_v39, 4  ;;  %v1091_v44 = vpop.f32.mrf.mxu0  ;;  %v1687_v32 = vld [vmem:[#allocation12 + $0xf8] sm:$0xff]  ;;  %v3910_v33 = vld [vmem:[#allocation12 + $0xf0] sm:$0xff]  ;;  %v3923_v38 = vld [vmem:[#allocation12 + $0xc8] sm:$0xff] }
 0x3d2   :  { %1720 = vmatprep.subr.mxu0 %v1687_v32  ;;  %v3917_v36 = vld [vmem:[#allocation12 + $0xd8] sm:$0xff]  ;;  %v3920_v37 = vld [vmem:[#allocation12 + $0xd0] sm:$0xff] }
 0x3d3   :  { %v1097_v45 = vadd.f32 %v1096_v40, %v1095_v35  ;;  %v1112_v46 = vrot.slane %v1111_v41, 2  ;;  %v1103_v47 = vrot.slane %v1102_v42, 2  ;;  %v1118_v49 = vadd.f32 %v1117_v43, %v1116_v39  ;;  %v3914_v35 = vld [vmem:[#allocation12 + $0xe0] sm:$0xff]  ;;  %v3929_v40 = vld [vmem:[#allocation12 + $0xb8] sm:$0xff] }
 0x3d4   :  { %v3926_v39 = vld [vmem:[#allocation12 + $0xc0] sm:$0xff]  ;;  %v3941_v44 = vld [vmem:[#allocation12 + $0x98] sm:$0xff] }
 0x3d5   :  { %v1113_v52 = vadd.f32 %v1112_v46, %v1111_v41  ;;  %v1104_v53 = vadd.f32 %v1103_v47, %v1102_v42  ;;  %v1119_v54 = vrot.slane %v1118_v49, 2  ;;  %v1098_v55 = vrot.slane %v1097_v45, 1  ;;  %v3932_v41 = vld [vmem:[#allocation12 + $0xb0] sm:$0xff]  ;;  %v3935_v42 = vld [vmem:[#allocation12 + $0xa8] sm:$0xff]  ;;  %v3938_v43 = vld [vmem:[#allocation12 + $0xa0] sm:$0xff] }
 0x3d6   :  { %v3947_v46 = vld [vmem:[#allocation12 + $0x88] sm:$0xff]  ;;  %v3950_v47 = vld [vmem:[#allocation12 + $0x80] sm:$0xff] }
 0x3d7   :  { %v1105_v48 = vrot.slane %v1104_v53, 1  ;;  %v1120_v56 = vadd.f32 %v1119_v54, %v1118_v49  ;;  %v1114_v57 = vrot.slane %v1113_v52, 1  ;;  %v1099_v62 = vadd.f32 %v1098_v55, %v1097_v45  ;;  %v3944_v45 = vld [vmem:[#allocation12 + $0x90] sm:$0xff]  ;;  %v3953_v49 = vld [vmem:[#allocation12 + $0x78] sm:$0xff]  ;;  %v3962_v54 = vld [vmem:[#allocation12 + $0x60] sm:$0xff] }
 0x3d8   :  { %v3965_v55 = vld [vmem:[#allocation12 + $0x58] sm:$0xff] }
 0x3d9   :  { %v1106_v58 = vadd.f32 %v1105_v48, %v1104_v53  ;;  %v1121_v50 = vrot.slane %v1120_v56, 1  ;;  %v1115_v63 = vadd.f32 %v1114_v57, %v1113_v52  ;;  %v3956_v52 = vld [vmem:[#allocation12 + $0x70] sm:$0xff]  ;;  %v3959_v53 = vld [vmem:[#allocation12 + $0x68] sm:$0xff]  ;;  %v3974_v57 = vld [vmem:[#allocation12 + $0x40] sm:$0xff] }
 0x3da   :  { %v3968_v48 = vld [vmem:[#allocation12 + $0x50] sm:$0xff] }
 0x3db   :  { %1251 = vmatprep.mubr.f32.mxu1 %v1106_v58  ;;  %v1122_v51 = vadd.f32 %v1121_v50, %v1120_v56  ;;  %v3971_v56 = vld [vmem:[#allocation12 + $0x48] sm:$0xff]  ;;  %v3977_v58 = vld [vmem:[#allocation12 + $0x38] sm:$0xff]  ;;  %v3980_v50 = vld [vmem:[#allocation12 + $0x30] sm:$0xff] }
 0x3dc   :  { %1252 = vmatmul.mubr.f32.vlgmr.msra.gmra.mxu1 %v1099_v62  ;;  %v3986_v62 = vld [vmem:[#allocation12 + $0x20] sm:$0xff] }
 0x3dd   :  { %1322 = vmatprep.mubr.f32.mxu0 %v1122_v51  ;;  %1586 = vmatpush1.bf16.msra.mxu1 %v2919_v59  ;;  %v3983_v59 = vld [vmem:[#allocation12 + $0x28] sm:$0xff]  ;;  %v3992_v51 = vld [vmem:[#allocation12 + $0x10] sm:$0xff] }
 0x3de   :  { %1323 = vmatmul.mubr.f32.vlgmr.msra.gmra.mxu0 %v1115_v63  ;;  %1587 = vmatprep.subr.bf16.mxu1 %v2924_v61  ;;  %v3989_v61 = vld [vmem:[#allocation12 + $0x18] sm:$0xff]  ;;  %v3995_v63 = vld [vmem:[#allocation12 + $0x8] sm:$0xff] }
 0x3df   :  { %1721 = vmatpush1.msra.mxu0 %v3910_v33 }
 0x3e0   :  { %1722 = vmatprep.subr.mxu0 %v3912_v34 }
 0x3e1   :  { %1588 = vmatpush1.bf16.msra.mxu1 %v2922_v2  ;;  %1723 = vmatpush1.msra.mxu0 %v3914_v35  ;;  %v3998_v2 = vld [vmem:[#allocation12] sm:$0xff] }
 0x3e2   :  { %1589 = vmatprep.subr.bf16.mxu1 %v2927_v1  ;;  %1724 = vmatprep.subr.mxu0 %v3917_v36  ;;  %v4001_v1 = vld [vmem:[#allocation12 + $0x1f8] sm:$0xff] }
 0x3e3   :  { %1725 = vmatpush1.msra.mxu0 %v3920_v37 }
 0x3e4   :  { %1726 = vmatprep.subr.mxu0 %v3923_v38 }
 0x3e5   :  { %1590 = vmatpush1.bf16.msra.mxu1 %v2925_v3  ;;  %1727 = vmatpush1.msra.mxu0 %v3926_v39  ;;  %v4004_v3 = vld [vmem:[#allocation12 + $0x1f0] sm:$0xff] }
 0x3e6   :  { %1591 = vmatprep.subr.bf16.mxu1 %v2930_v4  ;;  %1728 = vmatprep.subr.mxu0 %v3929_v40  ;;  %v4007_v4 = vld [vmem:[#allocation12 + $0x1e8] sm:$0xff] }
 0x3e7   :  { %1729 = vmatpush1.msra.mxu0 %v3932_v41 }
 0x3e8   :  { %1730 = vmatprep.subr.mxu0 %v3935_v42 }
 0x3e9   :  { %1592 = vmatpush1.bf16.msra.mxu1 %v2928_v5  ;;  %1731 = vmatpush1.msra.mxu0 %v3938_v43  ;;  %v4010_v5 = vld [vmem:[#allocation12 + $0x1e0] sm:$0xff] }
 0x3ea   :  { %1593 = vmatprep.subr.bf16.mxu1 %v2933_v6  ;;  %1732 = vmatprep.subr.mxu0 %v3941_v44  ;;  %v4013_v6 = vld [vmem:[#allocation12 + $0x1d8] sm:$0xff] }
 0x3eb   :  { %1733 = vmatpush1.msra.mxu0 %v3944_v45 }
 0x3ec   :  { %1734 = vmatprep.subr.mxu0 %v3947_v46 }
 0x3ed   :  { %1594 = vmatpush1.bf16.msra.mxu1 %v2931_v7  ;;  %1735 = vmatpush1.msra.mxu0 %v3950_v47  ;;  %v4016_v7 = vld [vmem:[#allocation12 + $0x1d0] sm:$0xff] }
 0x3ee   :  { %1595 = vmatprep.subr.bf16.mxu1 %v2936_v8  ;;  %1736 = vmatprep.subr.mxu0 %v3953_v49  ;;  %v4019_v8 = vld [vmem:[#allocation12 + $0x1c8] sm:$0xff] }
 0x3ef   :  { %1737 = vmatpush1.msra.mxu0 %v3956_v52 }
 0x3f0   :  { %1738 = vmatprep.subr.mxu0 %v3959_v53 }
 0x3f1   :  { %1596 = vmatpush1.bf16.msra.mxu1 %v2934_v9  ;;  %1739 = vmatpush1.msra.mxu0 %v3962_v54  ;;  %v4022_v9 = vld [vmem:[#allocation12 + $0x1c0] sm:$0xff] }
 0x3f2   :  { %1597 = vmatprep.subr.bf16.mxu1 %v2939_v10  ;;  %1740 = vmatprep.subr.mxu0 %v3965_v55  ;;  %v4025_v10 = vld [vmem:[#allocation12 + $0x1b8] sm:$0xff] }
 0x3f3   :  { %1741 = vmatpush1.msra.mxu0 %v3968_v48  ;;  %4529 = vst [vmem:[#allocation24_spill] sm:$0xff] %v4025_v10 }
 0x3f4   :  { %1742 = vmatprep.subr.mxu0 %v3971_v56 }
 0x3f5   :  { %1598 = vmatpush1.bf16.msra.mxu1 %v2937_v11  ;;  %1743 = vmatpush1.msra.mxu0 %v3974_v57  ;;  %v4028_v11 = vld [vmem:[#allocation12 + $0x1b0] sm:$0xff] }
 0x3f6   :  { %1599 = vmatprep.subr.bf16.mxu1 %v2942_v12  ;;  %1744 = vmatprep.subr.mxu0 %v3977_v58  ;;  %4530 = vst [vmem:[#allocation25_spill] sm:$0xff] %v4028_v11  ;;  %v4031_v12 = vld [vmem:[#allocation12 + $0x1a8] sm:$0xff] }
 0x3f7   :  { %1745 = vmatpush1.msra.mxu0 %v3980_v50  ;;  %4531 = vst [vmem:[#allocation26_spill] sm:$0xff] %v4031_v12 }
 0x3f8   :  { %1746 = vmatprep.subr.mxu0 %v3983_v59 }
 0x3f9   :  { %1600 = vmatpush1.bf16.msra.mxu1 %v2940_v13  ;;  %1747 = vmatpush1.msra.mxu0 %v3986_v62  ;;  %v4034_v13 = vld [vmem:[#allocation12 + $0x1a0] sm:$0xff] }
 0x3fa   :  { %1601 = vmatprep.subr.bf16.mxu1 %v2945_v14  ;;  %1748 = vmatprep.subr.mxu0 %v3989_v61  ;;  %4532 = vst [vmem:[#allocation27_spill] sm:$0xff] %v4034_v13  ;;  %v4037_v14 = vld [vmem:[#allocation12 + $0x198] sm:$0xff] }
 0x3fb   :  { %1749 = vmatpush1.msra.mxu0 %v3992_v51  ;;  %4533 = vst [vmem:[#allocation28_spill] sm:$0xff] %v4037_v14 }
 0x3fc   :  { %1750 = vmatprep.subr.mxu0 %v3995_v63 }
 0x3fd   :  { %1602 = vmatpush2.bf16.msra.mxu1 %v2943_v15  ;;  %1751 = vmatpush1.msra.mxu0 %v3998_v2  ;;  %v4040_v15 = vld [vmem:[#allocation12 + $0x190] sm:$0xff] }
 0x3fe   :  { %1603 = vmatprep.subr.bf16.mxu1 %v2948_v16  ;;  %1752 = vmatprep.subr.mxu0 %v4001_v1  ;;  %4534 = vst [vmem:[#allocation29_spill] sm:$0xff] %v4040_v15  ;;  %v4043_v16 = vld [vmem:[#allocation12 + $0x188] sm:$0xff] }
 0x3ff   :  { %1753 = vmatpush2.msra.mxu0 %v4004_v3  ;;  %4535 = vst [vmem:[#allocation30_spill] sm:$0xff] %v4043_v16 }
 0x400   :  { %1754 = vmatprep.subr.mxu0 %v4007_v4 }
 0x401   :  { %1604 = vmatpush2.bf16.msra.mxu1 %v2946_v17  ;;  %1755 = vmatpush2.msra.mxu0 %v4010_v5 }
 0x402   :  { %1605 = vmatprep.subr.bf16.mxu1 %v2951_v18  ;;  %1756 = vmatprep.subr.mxu0 %v4013_v6 }
 0x403   :  { %1757 = vmatpush2.msra.mxu0 %v4016_v7 }
 0x404   :  { %1758 = vmatprep.subr.mxu0 %v4019_v8 }
 0x405   :  { %1606 = vmatpush2.bf16.msra.mxu1 %v2949_v19  ;;  %1759 = vmatpush2.msra.mxu0 %v4022_v9 }
 0x406   :  { %1607 = vmatprep.subr.bf16.mxu1 %v2954_v20  ;;  %1760 = vmatprep.subr.mxu0 %v4025_v10 }
 0x407   :  { %1761 = vmatpush2.msra.mxu0 %v4028_v11 }
 0x408   :  { %1762 = vmatprep.subr.mxu0 %v4031_v12 }
 0x409   :  { %1608 = vmatpush2.bf16.msra.mxu1 %v2952_v21  ;;  %1763 = vmatpush2.msra.mxu0 %v4034_v13 }
 0x40a   :  { %1609 = vmatprep.subr.bf16.mxu1 %v2957_v22  ;;  %1764 = vmatprep.subr.mxu0 %v4037_v14 }
 0x40b   :  { %1765 = vmatpush2.msra.mxu0 %v4040_v15 }
 0x40c   :  { %1766 = vmatprep.subr.mxu0 %v4043_v16  ;;  %v1371_v16 = vld [vmem:[%s4468_s9] sm:$0x3] }
 0x40d   :  { %1610 = vmatpush2.bf16.msra.mxu1 %v2955_v23  ;;  %v1380_v15 = vrot.slane %v1371_v16, %v3836_v0 }
 0x40e   :  { %1611 = vmatprep.subr.bf16.mxu1 %v2960_v24 }
 0x411   :  { %1612 = vmatpush2.bf16.msra.mxu1 %v2958_v25 }
 0x412   :  { %1613 = vmatprep.subr.bf16.mxu1 %v2963_v26 }
 0x415   :  { %1614 = vmatpush2.bf16.msra.mxu1 %v2961_v28 }
 0x416   :  { %1615 = vmatprep.subr.bf16.mxu1 %v2966_v29  ;;  %v1357_v29 = vld [vmem:[%s4467_s8] sm:$0x3] }
 0x419   :  { %1616 = vmatpush2.bf16.msra.mxu1 %v2964_v30 }
 0x41a   :  { %1791 = vmatprep.subr.mxu1 %v1687_v32 }
 0x49c   :  { %v1253_v17 = vpop.f32.mrf.mxu1 }
 0x49d   :  { %v1329_v18 = vmul.f32 %v1253_v17, %v1253_v17  ;;  %v1336_v28 = vrot.slane %v1253_v17, %v3830_v60  ;;  %v1366_v17 = vrot.slane %v1357_v29, %v3836_v0 }
 0x49e   :  { %v1255_v19 = vpop.f32.mrf.mxu1  ;;  %v1324_v20 = vpop.f32.mrf.mxu0 }
 0x49f   :  { %v1330_v21 = vmul.f32 %v1255_v19, %v1255_v19  ;;  %v1331_v22 = vsub.f32 %v1324_v20, %v1329_v18  ;;  %v1340_v30 = vrot.slane %v1255_v19, %v3830_v60  ;;  %v1341_v18 = vsub.f32 %v3896_v27, %v1336_v28 }
 0x4a0   :  { %v1326_v23 = vpop.f32.mrf.mxu0  ;;  %v1376_v19 = vrot.slane %v1371_v16, %v3830_v60 }
 0x4a1   :  { %v1343_v24 = vadd.f32 1e-05, %v1331_v22  ;;  %v1332_v25 = vsub.f32 %v1326_v23, %v1330_v21  ;;  %v1362_v21 = vrot.slane %v1357_v29, %v3830_v60  ;;  %v1342_v23 = vsub.f32 %v3902_v31, %v1340_v30 }
 0x4a3   :  { %3019 = vrsqrt.f32 %v1343_v24  ;;  %v1344_v26 = vadd.f32 1e-05, %v1332_v25 }
 0x4a5   :  { %3021 = vrsqrt.f32 %v1344_v26 }
 0x4b0   :  { %v3020_v32 = vpop.eup %3019 }
 0x4b1   :  { %v1350_v20 = vrot.slane %v3020_v32, %v3830_v60 }
 0x4b2   :  { %v3022_v22 = vpop.eup %3021 }
 0x4b3   :  { %v1354_v24 = vrot.slane %v3022_v22, %v3830_v60  ;;  %v1355_v25 = vmul.f32 %v1350_v20, %v1341_v18 }
 0x4b5   :  { %v1356_v26 = vmul.f32 %v1354_v24, %v1342_v23  ;;  %v1369_v14 = vmul.f32 %v1362_v21, %v1355_v25 }
 0x4b7   :  { %v1370_v13 = vmul.f32 %v1366_v17, %v1356_v26  ;;  %v1383_v27 = vadd.f32 %v1376_v19, %v1369_v14  ;;  %v2967_v26 = vld [vmem:[#allocation14 + $0x70] ss:$8 sps:$4 sm:$0xff]  }
 0x4b9   :  { %v1384_v28 = vadd.f32 %v1380_v15, %v1370_v13  ;;  %vm1385_vm5 = vcmp.gt.f32.partialorder %v1383_v27, 0.0  ;;  %v1387_v32 = vmul.f32 0.2, %v1383_v27 }
 0x4bb   :  { %vm1386_vm6 = vcmp.gt.f32.partialorder %v1384_v28, 0.0  ;;  %v1388_v12 = vmul.f32 0.2, %v1384_v28  ;;  %v1389_v11 = vsel %vm1385_vm5, %v1383_v27, %v1387_v32 }
 0x4bc   :  { %v1391_v31 = vpack.c.bf16 %v1389_v11, %v1389_v11 }
 0x4bd   :  { %v1390_v29 = vsel %vm1386_vm6, %v1384_v28, %v1388_v12  ;;  %v2972_v28 = vld [vmem:[#allocation14 + $0x64] ss:$8 sps:$4 sm:$0xff]  }
 0x4be   :  { %v1392_v10 = vpack.c.bf16 %v1390_v29, %v1390_v29 }
 0x4c0   :  { %1617 = vmatprep.mubr.bf16.mxu1 %v1392_v10 }
 0x4c1   :  { %1618 = vmatmul.mubr.bf16.vlgmr.msra.gmra.mxu1 %v1391_v31  ;;  %v2970_v31 = vld [vmem:[#allocation14 + $0x60] ss:$8 sps:$4 sm:$0xff]  }
 0x4c2   :  { %1792 = vmatpush1.msra.mxu1 %v3910_v33  ;;  %v4536_v33 = vld [vmem:[#allocation24_spill] sm:$0xff] }
 0x4c3   :  { %1793 = vmatprep.subr.mxu1 %v3912_v34  ;;  %v4537_v34 = vld [vmem:[#allocation25_spill] sm:$0xff] }
 0x4c4   :  { %1794 = vmatpush1.msra.mxu1 %v3914_v35  ;;  %v4538_v35 = vld [vmem:[#allocation26_spill] sm:$0xff] }
 0x4c5   :  { %1795 = vmatprep.subr.mxu1 %v3917_v36  ;;  %v4539_v36 = vld [vmem:[#allocation27_spill] sm:$0xff] }
 0x4c6   :  { %1796 = vmatpush1.msra.mxu1 %v3920_v37  ;;  %v4540_v37 = vld [vmem:[#allocation28_spill] sm:$0xff] }
 0x4c7   :  { %1797 = vmatprep.subr.mxu1 %v3923_v38  ;;  %v4541_v38 = vld [vmem:[#allocation29_spill] sm:$0xff] }
 0x4c8   :  { %1798 = vmatpush1.msra.mxu1 %v3926_v39  ;;  %v4542_v39 = vld [vmem:[#allocation30_spill] sm:$0xff] }
 0x4c9   :  { %1799 = vmatprep.subr.mxu1 %v3929_v40  ;;  %v1704_v40 = vld [vmem:[#allocation12 + $0x180] sm:$0xff] }
 0x4ca   :  { %1800 = vmatpush1.msra.mxu1 %v3932_v41  ;;  %1767 = vmatpush2.msra.mxu0 %v1704_v40  ;;  %v1703_v41 = vld [vmem:[#allocation12 + $0x178] sm:$0xff] }
 0x4cb   :  { %1801 = vmatprep.subr.mxu1 %v3935_v42  ;;  %1768 = vmatprep.subr.mxu0 %v1703_v41  ;;  %v1702_v42 = vld [vmem:[#allocation12 + $0x170] sm:$0xff] }
 0x4cc   :  { %1802 = vmatpush1.msra.mxu1 %v3938_v43  ;;  %1769 = vmatpush2.msra.mxu0 %v1702_v42  ;;  %v1701_v43 = vld [vmem:[#allocation12 + $0x168] sm:$0xff] }
 0x4cd   :  { %1803 = vmatprep.subr.mxu1 %v3941_v44  ;;  %1770 = vmatprep.subr.mxu0 %v1701_v43  ;;  %v1700_v44 = vld [vmem:[#allocation12 + $0x160] sm:$0xff] }
 0x4ce   :  { %1804 = vmatpush1.msra.mxu1 %v3944_v45  ;;  %1771 = vmatpush2.msra.mxu0 %v1700_v44  ;;  %v1699_v45 = vld [vmem:[#allocation12 + $0x158] sm:$0xff] }
 0x4cf   :  { %1805 = vmatprep.subr.mxu1 %v3947_v46  ;;  %1772 = vmatprep.subr.mxu0 %v1699_v45  ;;  %v1698_v46 = vld [vmem:[#allocation12 + $0x150] sm:$0xff] }
 0x4d0   :  { %1806 = vmatpush1.msra.mxu1 %v3950_v47  ;;  %1773 = vmatpush2.msra.mxu0 %v1698_v46  ;;  %v1697_v47 = vld [vmem:[#allocation12 + $0x148] sm:$0xff] }
 0x4d1   :  { %1807 = vmatprep.subr.mxu1 %v3953_v49  ;;  %1774 = vmatprep.subr.mxu0 %v1697_v47  ;;  %v1696_v49 = vld [vmem:[#allocation12 + $0x140] sm:$0xff] }
 0x4d2   :  { %1808 = vmatpush1.msra.mxu1 %v3956_v52  ;;  %1775 = vmatpush2.msra.mxu0 %v1696_v49  ;;  %v1695_v52 = vld [vmem:[#allocation12 + $0x138] sm:$0xff] }
 0x4d3   :  { %1809 = vmatprep.subr.mxu1 %v3959_v53  ;;  %1776 = vmatprep.subr.mxu0 %v1695_v52  ;;  %v1694_v53 = vld [vmem:[#allocation12 + $0x130] sm:$0xff] }
 0x4d4   :  { %1810 = vmatpush1.msra.mxu1 %v3962_v54  ;;  %1777 = vmatpush2.msra.mxu0 %v1694_v53  ;;  %v1693_v54 = vld [vmem:[#allocation12 + $0x128] sm:$0xff] }
 0x4d5   :  { %1811 = vmatprep.subr.mxu1 %v3965_v55  ;;  %v1692_v55 = vld [vmem:[#allocation12 + $0x120] sm:$0xff]  ;;  %1778 = vmatprep.subr.mxu0 %v1693_v54 }
 0x4d6   :  { %1812 = vmatpush1.msra.mxu1 %v3968_v48  ;;  %v1691_v48 = vld [vmem:[#allocation12 + $0x118] sm:$0xff]  ;;  %1779 = vmatpush2.msra.mxu0 %v1692_v55 }
 0x4d7   :  { %1813 = vmatprep.subr.mxu1 %v3971_v56  ;;  %v1690_v56 = vld [vmem:[#allocation12 + $0x110] sm:$0xff]  ;;  %1780 = vmatprep.subr.mxu0 %v1691_v48 }
 0x4d8   :  { %1814 = vmatpush1.msra.mxu1 %v3974_v57  ;;  %v1689_v57 = vld [vmem:[#allocation12 + $0x108] sm:$0xff]  ;;  %1781 = vmatpush2.msra.mxu0 %v1690_v56 }
 0x4d9   :  { %1815 = vmatprep.subr.mxu1 %v3977_v58  ;;  %v1688_v58 = vld [vmem:[#allocation12 + $0x100] sm:$0xff]  ;;  %1782 = vmatprep.subr.mxu0 %v1689_v57 }
 0x4da   :  { %1816 = vmatpush1.msra.mxu1 %v3980_v50  ;;  %1783 = vmatpush2.msra.mxu0 %v1688_v58  ;;  %v2969_v50 = vld [vmem:[#allocation14 + $0x74] ss:$8 sps:$4 sm:$0xff]  }
 0x4db   :  { %1817 = vmatprep.subr.mxu1 %v3983_v59  ;;  %2118 = vmatprep.subr.bf16.mxu0 %v2969_v50  ;;  %v3011_v50 = vld [vmem:[#allocation14 + $0x94] ss:$8 sps:$4 sm:$0xff]  }
 0x4dc   :  { %1818 = vmatpush1.msra.mxu1 %v3986_v62 }
 0x4dd   :  { %1819 = vmatprep.subr.mxu1 %v3989_v61 }
 0x4de   :  { %1820 = vmatpush1.msra.mxu1 %v3992_v51 }
 0x4df   :  { %1821 = vmatprep.subr.mxu1 %v3995_v63 }
 0x4e0   :  { %1822 = vmatpush1.msra.mxu1 %v3998_v2 }
 0x4e1   :  { %1823 = vmatprep.subr.mxu1 %v4001_v1 }
 0x4e2   :  { %1824 = vmatpush2.msra.mxu1 %v4004_v3 }
 0x4e3   :  { %1825 = vmatprep.subr.mxu1 %v4007_v4 }
 0x4e4   :  { %1826 = vmatpush2.msra.mxu1 %v4010_v5 }
 0x4e5   :  { %1827 = vmatprep.subr.mxu1 %v4013_v6 }
 0x4e6   :  { %1828 = vmatpush2.msra.mxu1 %v4016_v7 }
 0x4e7   :  { %1829 = vmatprep.subr.mxu1 %v4019_v8 }
 0x4e8   :  { %1830 = vmatpush2.msra.mxu1 %v4022_v9 }
 0x4e9   :  { %1831 = vmatprep.subr.mxu1 %v4536_v33  ;;  %v2975_v33 = vld [vmem:[#allocation14 + $0x54] ss:$8 sps:$4 sm:$0xff]  }
 0x4ea   :  { %1832 = vmatpush2.msra.mxu1 %v4537_v34  ;;  %v2973_v34 = vld [vmem:[#allocation14 + $0x50] ss:$8 sps:$4 sm:$0xff]  }
 0x4eb   :  { %1833 = vmatprep.subr.mxu1 %v4538_v35  ;;  %v2978_v35 = vld [vmem:[#allocation14 + $0x44] ss:$8 sps:$4 sm:$0xff]  }
 0x4ec   :  { %1834 = vmatpush2.msra.mxu1 %v4539_v36  ;;  %v2976_v36 = vld [vmem:[#allocation14 + $0x40] ss:$8 sps:$4 sm:$0xff]  }
 0x4ed   :  { %1835 = vmatprep.subr.mxu1 %v4540_v37  ;;  %v2981_v37 = vld [vmem:[#allocation14 + $0x34] ss:$8 sps:$4 sm:$0xff]  }
 0x4ee   :  { %1836 = vmatpush2.msra.mxu1 %v4541_v38  ;;  %v2979_v38 = vld [vmem:[#allocation14 + $0x30] ss:$8 sps:$4 sm:$0xff]  }
 0x4ef   :  { %1837 = vmatprep.subr.mxu1 %v4542_v39  ;;  %v2984_v39 = vld [vmem:[#allocation14 + $0x24] ss:$8 sps:$4 sm:$0xff]  }
 0x4f0   :  { %1838 = vmatpush2.msra.mxu1 %v1704_v40  ;;  %v2982_v40 = vld [vmem:[#allocation14 + $0x20] ss:$8 sps:$4 sm:$0xff]  }
 0x4f1   :  { %1839 = vmatprep.subr.mxu1 %v1703_v41  ;;  %v2987_v41 = vld [vmem:[#allocation14 + $0x14] ss:$8 sps:$4 sm:$0xff]  }
 0x4f2   :  { %1840 = vmatpush2.msra.mxu1 %v1702_v42  ;;  %v2985_v42 = vld [vmem:[#allocation14 + $0x10] ss:$8 sps:$4 sm:$0xff]  }
 0x4f3   :  { %1841 = vmatprep.subr.mxu1 %v1701_v43  ;;  %v2990_v43 = vld [vmem:[#allocation14 + $0x4] ss:$8 sps:$4 sm:$0xff]  }
 0x4f4   :  { %1842 = vmatpush2.msra.mxu1 %v1700_v44  ;;  %v2988_v44 = vld [vmem:[#allocation14] ss:$8 sps:$4 sm:$0xff]  }
 0x4f5   :  { %1843 = vmatprep.subr.mxu1 %v1699_v45  ;;  %v2993_v45 = vld [vmem:[#allocation14 + $0xf4] ss:$8 sps:$4 sm:$0xff]  }
 0x4f6   :  { %1844 = vmatpush2.msra.mxu1 %v1698_v46  ;;  %v2991_v46 = vld [vmem:[#allocation14 + $0xf0] ss:$8 sps:$4 sm:$0xff]  }
 0x4f7   :  { %1845 = vmatprep.subr.mxu1 %v1697_v47  ;;  %v2996_v47 = vld [vmem:[#allocation14 + $0xe4] ss:$8 sps:$4 sm:$0xff]  }
 0x4f8   :  { %1846 = vmatpush2.msra.mxu1 %v1696_v49  ;;  %v2994_v49 = vld [vmem:[#allocation14 + $0xe0] ss:$8 sps:$4 sm:$0xff]  }
 0x4f9   :  { %1847 = vmatprep.subr.mxu1 %v1695_v52  ;;  %v2999_v52 = vld [vmem:[#allocation14 + $0xd4] ss:$8 sps:$4 sm:$0xff]  }
 0x4fa   :  { %1848 = vmatpush2.msra.mxu1 %v1694_v53  ;;  %v2997_v53 = vld [vmem:[#allocation14 + $0xd0] ss:$8 sps:$4 sm:$0xff]  }
 0x4fb   :  { %1849 = vmatprep.subr.mxu1 %v1693_v54  ;;  %v3002_v54 = vld [vmem:[#allocation14 + $0xc4] ss:$8 sps:$4 sm:$0xff]  }
 0x4fc   :  { %1850 = vmatpush2.msra.mxu1 %v1692_v55  ;;  %v3000_v55 = vld [vmem:[#allocation14 + $0xc0] ss:$8 sps:$4 sm:$0xff]  }
 0x4fd   :  { %1851 = vmatprep.subr.mxu1 %v1691_v48  ;;  %v3005_v48 = vld [vmem:[#allocation14 + $0xb4] ss:$8 sps:$4 sm:$0xff]  }
 0x4fe   :  { %1852 = vmatpush2.msra.mxu1 %v1690_v56  ;;  %v3003_v56 = vld [vmem:[#allocation14 + $0xb0] ss:$8 sps:$4 sm:$0xff]  }
 0x4ff   :  { %1853 = vmatprep.subr.mxu1 %v1689_v57  ;;  %v3008_v57 = vld [vmem:[#allocation14 + $0xa4] ss:$8 sps:$4 sm:$0xff]  }
 0x500   :  { %1854 = vmatpush2.msra.mxu1 %v1688_v58  ;;  %v3006_v58 = vld [vmem:[#allocation14 + $0xa0] ss:$8 sps:$4 sm:$0xff]  }
 0x581   :  { %v4110_v59 = vpop.f32.mrf.mxu1 }
 0x582   :  { %v1626_v62 = vsel %vm559_vm2, %v4110_v59, 0.0  ;;  %v1640_v61 = vmul.f32 %v4110_v59, %v4110_v59 }
 0x583   :  { %v1627_v51 = vrot.slane %v1626_v62, 4  ;;  %v4116_v63 = vpop.f32.mrf.mxu1 }
 0x584   :  { %v1642_v2 = vsel %vm559_vm2, %v1640_v61, 0.0  ;;  %v1633_v1 = vsel %vm559_vm2, %v4116_v63, 0.0  ;;  %v1641_v3 = vmul.f32 %v4116_v63, %v4116_v63  ;;  %v3014_v61 = vld [vmem:[#allocation14 + $0x84] ss:$8 sps:$4 sm:$0xff]  }
 0x585   :  { %v1628_v4 = vadd.f32 %v1627_v51, %v1626_v62  ;;  %v1643_v5 = vrot.slane %v1642_v2, 4  ;;  %v1634_v6 = vrot.slane %v1633_v1, 4  ;;  %v1623_v7 = vpop.f32.mrf.mxu1  ;;  %v3009_v62 = vld [vmem:[#allocation14 + $0x90] ss:$8 sps:$4 sm:$0xff]   ;;  %v3012_v51 = vld [vmem:[#allocation14 + $0x80] ss:$8 sps:$4 sm:$0xff]  }
 0x586   :  { %v1649_v8 = vsel %vm559_vm2, %v1641_v3, 0.0  ;;  %v4126_v3 = vld [vmem:[#allocation15 + $0xe8] sm:$0xff] }
 0x587   :  { %v1629_v9 = vrot.slane %v1628_v4, 2  ;;  %v1644_v10 = vadd.f32 %v1643_v5, %v1642_v2  ;;  %v1635_v11 = vadd.f32 %v1634_v6, %v1633_v1  ;;  %v1650_v12 = vrot.slane %v1649_v8, 4  ;;  %v1624_v13 = vpop.f32.mrf.mxu1  ;;  %v2220_v2 = vld [vmem:[#allocation15 + $0xf8] sm:$0xff]  ;;  %v4124_v1 = vld [vmem:[#allocation15 + $0xf0] sm:$0xff]  ;;  %v4137_v7 = vld [vmem:[#allocation15 + $0xc8] sm:$0xff] }
 0x588   :  { %2253 = vmatprep.subr.mxu1 %v2220_v2  ;;  %v4131_v5 = vld [vmem:[#allocation15 + $0xd8] sm:$0xff]  ;;  %v4134_v6 = vld [vmem:[#allocation15 + $0xd0] sm:$0xff] }
 0x589   :  { %v1630_v14 = vadd.f32 %v1629_v9, %v1628_v4  ;;  %v1645_v15 = vrot.slane %v1644_v10, 2  ;;  %v1636_v16 = vrot.slane %v1635_v11, 2  ;;  %v1651_v30 = vadd.f32 %v1650_v12, %v1649_v8  ;;  %v4128_v4 = vld [vmem:[#allocation15 + $0xe0] sm:$0xff]  ;;  %v4143_v9 = vld [vmem:[#allocation15 + $0xb8] sm:$0xff] }
 0x58a   :  { %v4140_v8 = vld [vmem:[#allocation15 + $0xc0] sm:$0xff]  ;;  %v4155_v13 = vld [vmem:[#allocation15 + $0x98] sm:$0xff] }
 0x58b   :  { %v1646_v18 = vadd.f32 %v1645_v15, %v1644_v10  ;;  %v1637_v20 = vadd.f32 %v1636_v16, %v1635_v11  ;;  %v1652_v21 = vrot.slane %v1651_v30, 2  ;;  %v1631_v22 = vrot.slane %v1630_v14, 1  ;;  %v4146_v10 = vld [vmem:[#allocation15 + $0xb0] sm:$0xff]  ;;  %v4149_v11 = vld [vmem:[#allocation15 + $0xa8] sm:$0xff]  ;;  %v4152_v12 = vld [vmem:[#allocation15 + $0xa0] sm:$0xff] }
 0x58c   :  { %v4161_v15 = vld [vmem:[#allocation15 + $0x88] sm:$0xff]  ;;  %v4164_v16 = vld [vmem:[#allocation15 + $0x80] sm:$0xff] }
 0x58d   :  { %v1638_v17 = vrot.slane %v1637_v20, 1  ;;  %v1653_v23 = vadd.f32 %v1652_v21, %v1651_v30  ;;  %v1647_v24 = vrot.slane %v1646_v18, 1  ;;  %v1632_v27 = vadd.f32 %v1631_v22, %v1630_v14  ;;  %v4158_v14 = vld [vmem:[#allocation15 + $0x90] sm:$0xff]  ;;  %v4167_v30 = vld [vmem:[#allocation15 + $0x78] sm:$0xff]  ;;  %v4176_v21 = vld [vmem:[#allocation15 + $0x60] sm:$0xff] }
 0x58e   :  { %v4179_v22 = vld [vmem:[#allocation15 + $0x58] sm:$0xff] }
 0x58f   :  { %v1639_v19 = vadd.f32 %v1638_v17, %v1637_v20  ;;  %v1654_v25 = vrot.slane %v1653_v23, 1  ;;  %v1648_v29 = vadd.f32 %v1647_v24, %v1646_v18  ;;  %v4170_v18 = vld [vmem:[#allocation15 + $0x70] sm:$0xff]  ;;  %v4173_v20 = vld [vmem:[#allocation15 + $0x68] sm:$0xff]  ;;  %v4188_v24 = vld [vmem:[#allocation15 + $0x40] sm:$0xff] }
 0x590   :  { %v4182_v17 = vld [vmem:[#allocation15 + $0x50] sm:$0xff] }
 0x591   :  { %1784 = vmatprep.mubr.f32.mxu0 %v1639_v19  ;;  %v1655_v32 = vadd.f32 %v1654_v25, %v1653_v23  ;;  %v4185_v23 = vld [vmem:[#allocation15 + $0x48] sm:$0xff]  ;;  %v4191_v19 = vld [vmem:[#allocation15 + $0x38] sm:$0xff]  ;;  %v4194_v25 = vld [vmem:[#allocation15 + $0x30] sm:$0xff] }
 0x592   :  { %1785 = vmatmul.mubr.f32.vlgmr.msra.gmra.mxu0 %v1632_v27  ;;  %v4200_v27 = vld [vmem:[#allocation15 + $0x20] sm:$0xff] }
 0x593   :  { %1855 = vmatprep.mubr.f32.mxu1 %v1655_v32  ;;  %2119 = vmatpush1.bf16.msra.mxu0 %v2967_v26  ;;  %v4197_v26 = vld [vmem:[#allocation15 + $0x28] sm:$0xff]  ;;  %v4206_v32 = vld [vmem:[#allocation15 + $0x10] sm:$0xff] }
 0x594   :  { %1856 = vmatmul.mubr.f32.vlgmr.msra.gmra.mxu1 %v1648_v29  ;;  %2120 = vmatprep.subr.bf16.mxu0 %v2972_v28  ;;  %v4203_v28 = vld [vmem:[#allocation15 + $0x18] sm:$0xff]  ;;  %v4209_v29 = vld [vmem:[#allocation15 + $0x8] sm:$0xff] }
 0x595   :  { %2254 = vmatpush1.msra.mxu1 %v4124_v1 }
 0x596   :  { %2255 = vmatprep.subr.mxu1 %v4126_v3 }
 0x597   :  { %2121 = vmatpush1.bf16.msra.mxu0 %v2970_v31  ;;  %2256 = vmatpush1.msra.mxu1 %v4128_v4  ;;  %v4212_v31 = vld [vmem:[#allocation15] sm:$0xff] }
 0x598   :  { %2122 = vmatprep.subr.bf16.mxu0 %v2975_v33  ;;  %2257 = vmatprep.subr.mxu1 %v4131_v5  ;;  %v4215_v33 = vld [vmem:[#allocation15 + $0x1f8] sm:$0xff] }
 0x599   :  { %2258 = vmatpush1.msra.mxu1 %v4134_v6 }
 0x59a   :  { %2259 = vmatprep.subr.mxu1 %v4137_v7 }
 0x59b   :  { %2123 = vmatpush1.bf16.msra.mxu0 %v2973_v34  ;;  %2260 = vmatpush1.msra.mxu1 %v4140_v8  ;;  %v4218_v34 = vld [vmem:[#allocation15 + $0x1f0] sm:$0xff] }
 0x59c   :  { %2124 = vmatprep.subr.bf16.mxu0 %v2978_v35  ;;  %2261 = vmatprep.subr.mxu1 %v4143_v9  ;;  %v4221_v35 = vld [vmem:[#allocation15 + $0x1e8] sm:$0xff] }
 0x59d   :  { %2262 = vmatpush1.msra.mxu1 %v4146_v10 }
 0x59e   :  { %2263 = vmatprep.subr.mxu1 %v4149_v11 }
 0x59f   :  { %2125 = vmatpush1.bf16.msra.mxu0 %v2976_v36  ;;  %2264 = vmatpush1.msra.mxu1 %v4152_v12  ;;  %v4224_v36 = vld [vmem:[#allocation15 + $0x1e0] sm:$0xff] }
 0x5a0   :  { %2126 = vmatprep.subr.bf16.mxu0 %v2981_v37  ;;  %2265 = vmatprep.subr.mxu1 %v4155_v13  ;;  %v4227_v37 = vld [vmem:[#allocation15 + $0x1d8] sm:$0xff] }
 0x5a1   :  { %2266 = vmatpush1.msra.mxu1 %v4158_v14 }
 0x5a2   :  { %2267 = vmatprep.subr.mxu1 %v4161_v15 }
 0x5a3   :  { %2127 = vmatpush1.bf16.msra.mxu0 %v2979_v38  ;;  %2268 = vmatpush1.msra.mxu1 %v4164_v16  ;;  %v4230_v38 = vld [vmem:[#allocation15 + $0x1d0] sm:$0xff] }
 0x5a4   :  { %2128 = vmatprep.subr.bf16.mxu0 %v2984_v39  ;;  %2269 = vmatprep.subr.mxu1 %v4167_v30  ;;  %v4233_v39 = vld [vmem:[#allocation15 + $0x1c8] sm:$0xff] }
 0x5a5   :  { %2270 = vmatpush1.msra.mxu1 %v4170_v18 }
 0x5a6   :  { %2271 = vmatprep.subr.mxu1 %v4173_v20 }
 0x5a7   :  { %2129 = vmatpush1.bf16.msra.mxu0 %v2982_v40  ;;  %2272 = vmatpush1.msra.mxu1 %v4176_v21  ;;  %v4236_v40 = vld [vmem:[#allocation15 + $0x1c0] sm:$0xff] }
 0x5a8   :  { %2130 = vmatprep.subr.bf16.mxu0 %v2987_v41  ;;  %2273 = vmatprep.subr.mxu1 %v4179_v22  ;;  %v4239_v41 = vld [vmem:[#allocation15 + $0x1b8] sm:$0xff] }
 0x5a9   :  { %2274 = vmatpush1.msra.mxu1 %v4182_v17  ;;  %4543 = vst [vmem:[#allocation24_spill] sm:$0xff] %v4239_v41 }
 0x5aa   :  { %2275 = vmatprep.subr.mxu1 %v4185_v23 }
 0x5ab   :  { %2131 = vmatpush1.bf16.msra.mxu0 %v2985_v42  ;;  %2276 = vmatpush1.msra.mxu1 %v4188_v24  ;;  %v4242_v42 = vld [vmem:[#allocation15 + $0x1b0] sm:$0xff] }
 0x5ac   :  { %2132 = vmatprep.subr.bf16.mxu0 %v2990_v43  ;;  %2277 = vmatprep.subr.mxu1 %v4191_v19  ;;  %4544 = vst [vmem:[#allocation25_spill] sm:$0xff] %v4242_v42  ;;  %v4245_v43 = vld [vmem:[#allocation15 + $0x1a8] sm:$0xff] }
 0x5ad   :  { %2278 = vmatpush1.msra.mxu1 %v4194_v25  ;;  %4545 = vst [vmem:[#allocation26_spill] sm:$0xff] %v4245_v43 }
 0x5ae   :  { %2279 = vmatprep.subr.mxu1 %v4197_v26 }
 0x5af   :  { %2133 = vmatpush1.bf16.msra.mxu0 %v2988_v44  ;;  %2280 = vmatpush1.msra.mxu1 %v4200_v27  ;;  %v4248_v44 = vld [vmem:[#allocation15 + $0x1a0] sm:$0xff] }
 0x5b0   :  { %2134 = vmatprep.subr.bf16.mxu0 %v2993_v45  ;;  %2281 = vmatprep.subr.mxu1 %v4203_v28  ;;  %4546 = vst [vmem:[#allocation27_spill] sm:$0xff] %v4248_v44  ;;  %v4251_v45 = vld [vmem:[#allocation15 + $0x198] sm:$0xff] }
 0x5b1   :  { %2282 = vmatpush1.msra.mxu1 %v4206_v32  ;;  %4547 = vst [vmem:[#allocation28_spill] sm:$0xff] %v4251_v45 }
 0x5b2   :  { %2283 = vmatprep.subr.mxu1 %v4209_v29 }
 0x5b3   :  { %2135 = vmatpush2.bf16.msra.mxu0 %v2991_v46  ;;  %2284 = vmatpush1.msra.mxu1 %v4212_v31  ;;  %v4254_v46 = vld [vmem:[#allocation15 + $0x190] sm:$0xff] }
 0x5b4   :  { %2136 = vmatprep.subr.bf16.mxu0 %v2996_v47  ;;  %2285 = vmatprep.subr.mxu1 %v4215_v33  ;;  %4548 = vst [vmem:[#allocation29_spill] sm:$0xff] %v4254_v46  ;;  %v4257_v47 = vld [vmem:[#allocation15 + $0x188] sm:$0xff] }
 0x5b5   :  { %2286 = vmatpush2.msra.mxu1 %v4218_v34  ;;  %4549 = vst [vmem:[#allocation30_spill] sm:$0xff] %v4257_v47 }
 0x5b6   :  { %2287 = vmatprep.subr.mxu1 %v4221_v35 }
 0x5b7   :  { %2137 = vmatpush2.bf16.msra.mxu0 %v2994_v49  ;;  %2288 = vmatpush2.msra.mxu1 %v4224_v36 }
 0x5b8   :  { %2138 = vmatprep.subr.bf16.mxu0 %v2999_v52  ;;  %2289 = vmatprep.subr.mxu1 %v4227_v37 }
 0x5b9   :  { %2290 = vmatpush2.msra.mxu1 %v4230_v38 }
 0x5ba   :  { %2291 = vmatprep.subr.mxu1 %v4233_v39 }
 0x5bb   :  { %2139 = vmatpush2.bf16.msra.mxu0 %v2997_v53  ;;  %2292 = vmatpush2.msra.mxu1 %v4236_v40 }
 0x5bc   :  { %2140 = vmatprep.subr.bf16.mxu0 %v3002_v54  ;;  %2293 = vmatprep.subr.mxu1 %v4239_v41 }
 0x5bd   :  { %2294 = vmatpush2.msra.mxu1 %v4242_v42 }
 0x5be   :  { %2295 = vmatprep.subr.mxu1 %v4245_v43 }
 0x5bf   :  { %2141 = vmatpush2.bf16.msra.mxu0 %v3000_v55  ;;  %2296 = vmatpush2.msra.mxu1 %v4248_v44 }
 0x5c0   :  { %2142 = vmatprep.subr.bf16.mxu0 %v3005_v48  ;;  %2297 = vmatprep.subr.mxu1 %v4251_v45 }
 0x5c1   :  { %2298 = vmatpush2.msra.mxu1 %v4254_v46 }
 0x5c2   :  { %2299 = vmatprep.subr.mxu1 %v4257_v47  ;;  %v1904_v47 = vld [vmem:[%s4472_s13] sm:$0x3] }
 0x5c3   :  { %2143 = vmatpush2.bf16.msra.mxu0 %v3003_v56  ;;  %v1913_v46 = vrot.slane %v1904_v47, %v3836_v0 }
 0x5c4   :  { %2144 = vmatprep.subr.bf16.mxu0 %v3008_v57 }
 0x5c7   :  { %2145 = vmatpush2.bf16.msra.mxu0 %v3006_v58 }
 0x5c8   :  { %2146 = vmatprep.subr.bf16.mxu0 %v3011_v50 }
 0x5cb   :  { %2147 = vmatpush2.bf16.msra.mxu0 %v3009_v62 }
 0x5cc   :  { %2148 = vmatprep.subr.bf16.mxu0 %v3014_v61  ;;  %v1890_v61 = vld [vmem:[%s4471_s12] sm:$0x3] }
 0x5cf   :  { %2149 = vmatpush2.bf16.msra.mxu0 %v3012_v51 }
 0x5d0   :  { %2324 = vmatprep.subr.mxu0 %v2220_v2 }
 0x652   :  { %v1786_v49 = vpop.f32.mrf.mxu0 }
 0x653   :  { %v1862_v52 = vmul.f32 %v1786_v49, %v1786_v49  ;;  %v1869_v62 = vrot.slane %v1786_v49, %v3830_v60  ;;  %v1899_v49 = vrot.slane %v1890_v61, %v3836_v0 }
 0x654   :  { %v1788_v53 = vpop.f32.mrf.mxu0  ;;  %v1857_v54 = vpop.f32.mrf.mxu1 }
 0x655   :  { %v1863_v55 = vmul.f32 %v1788_v53, %v1788_v53  ;;  %v1864_v48 = vsub.f32 %v1857_v54, %v1862_v52  ;;  %v1873_v51 = vrot.slane %v1788_v53, %v3830_v60  ;;  %v1874_v52 = vsub.f32 %v4110_v59, %v1869_v62 }
 0x656   :  { %v1859_v56 = vpop.f32.mrf.mxu1  ;;  %v1909_v53 = vrot.slane %v1904_v47, %v3830_v60 }
 0x657   :  { %v1876_v57 = vadd.f32 1e-05, %v1864_v48  ;;  %v1865_v58 = vsub.f32 %v1859_v56, %v1863_v55  ;;  %v1895_v55 = vrot.slane %v1890_v61, %v3830_v60  ;;  %v1875_v56 = vsub.f32 %v4116_v63, %v1873_v51 }
 0x659   :  { %3023 = vrsqrt.f32 %v1876_v57  ;;  %v1877_v50 = vadd.f32 1e-05, %v1865_v58 }
 0x65b   :  { %3025 = vrsqrt.f32 %v1877_v50 }
 0x666   :  { %v3024_v2 = vpop.eup %3023 }
 0x667   :  { %v1883_v54 = vrot.slane %v3024_v2, %v3830_v60 }
 0x668   :  { %v3026_v48 = vpop.eup %3025 }
 0x669   :  { %v1887_v57 = vrot.slane %v3026_v48, %v3830_v60  ;;  %v1888_v58 = vmul.f32 %v1883_v54, %v1874_v52 }
 0x66b   :  { %v1889_v50 = vmul.f32 %v1887_v57, %v1875_v56  ;;  %v1902_v45 = vmul.f32 %v1895_v55, %v1888_v58 }
 0x66d   :  { %v1903_v44 = vmul.f32 %v1899_v49, %v1889_v50  ;;  %v1916_v59 = vadd.f32 %v1909_v53, %v1902_v45 }
 0x66f   :  { %v1917_v62 = vadd.f32 %v1913_v46, %v1903_v44  ;;  %vm1918_vm7 = vcmp.gt.f32.partialorder %v1916_v59, 0.0  ;;  %v1920_v2 = vmul.f32 0.2, %v1916_v59 }
 0x671   :  { %vm1919_vm8 = vcmp.gt.f32.partialorder %v1917_v62, 0.0  ;;  %v1921_v43 = vmul.f32 0.2, %v1917_v62  ;;  %v1922_v42 = vsel %vm1918_vm7, %v1916_v59, %v1920_v2  ;;  %v2484_v2 = vld [vmem:[%s4477_s18 + $0x78] sm:$0xff] }
 0x672   :  { %v1924_v63 = vpack.c.bf16 %v1922_v42, %v1922_v42 }
 0x673   :  { %v1923_v61 = vsel %vm1919_vm8, %v1917_v62, %v1921_v43  ;;  %v2500_v62 = vld [vmem:[%s4477_s18 + $0xf8] sm:$0xff] }
 0x674   :  { %v1925_v41 = vpack.c.bf16 %v1923_v61, %v1923_v61  ;;  %v2499_v61 = vld [vmem:[%s4477_s18 + $0xf0] sm:$0xff] }
 0x676   :  { %2150 = vmatprep.mubr.bf16.mxu0 %v1925_v41 }
 0x677   :  { %2151 = vmatmul.mubr.bf16.vlgmr.msra.gmra.mxu0 %v1924_v63  ;;  %v2483_v63 = vld [vmem:[%s4477_s18 + $0x70] sm:$0xff] }
 0x678   :  { %2325 = vmatpush1.msra.mxu0 %v4124_v1  ;;  %v4550_v1 = vld [vmem:[#allocation24_spill] sm:$0xff] }
 0x679   :  { %2326 = vmatprep.subr.mxu0 %v4126_v3  ;;  %v4551_v3 = vld [vmem:[#allocation25_spill] sm:$0xff] }
 0x67a   :  { %2327 = vmatpush1.msra.mxu0 %v4128_v4  ;;  %v4552_v4 = vld [vmem:[#allocation26_spill] sm:$0xff] }
 0x67b   :  { %2328 = vmatprep.subr.mxu0 %v4131_v5  ;;  %v4553_v5 = vld [vmem:[#allocation27_spill] sm:$0xff] }
 0x67c   :  { %2329 = vmatpush1.msra.mxu0 %v4134_v6  ;;  %v4554_v6 = vld [vmem:[#allocation28_spill] sm:$0xff] }
 0x67d   :  { %2330 = vmatprep.subr.mxu0 %v4137_v7  ;;  %v4555_v7 = vld [vmem:[#allocation29_spill] sm:$0xff] }
 0x67e   :  { %2331 = vmatpush1.msra.mxu0 %v4140_v8  ;;  %v4556_v8 = vld [vmem:[#allocation30_spill] sm:$0xff] }
 0x67f   :  { %2332 = vmatprep.subr.mxu0 %v4143_v9  ;;  %v2237_v9 = vld [vmem:[#allocation15 + $0x180] sm:$0xff] }
 0x680   :  { %2333 = vmatpush1.msra.mxu0 %v4146_v10  ;;  %2300 = vmatpush2.msra.mxu1 %v2237_v9  ;;  %v2236_v10 = vld [vmem:[#allocation15 + $0x178] sm:$0xff] }
 0x681   :  { %2334 = vmatprep.subr.mxu0 %v4149_v11  ;;  %2301 = vmatprep.subr.mxu1 %v2236_v10  ;;  %v2235_v11 = vld [vmem:[#allocation15 + $0x170] sm:$0xff] }
 0x682   :  { %2335 = vmatpush1.msra.mxu0 %v4152_v12  ;;  %2302 = vmatpush2.msra.mxu1 %v2235_v11  ;;  %v2234_v12 = vld [vmem:[#allocation15 + $0x168] sm:$0xff] }
 0x683   :  { %2336 = vmatprep.subr.mxu0 %v4155_v13  ;;  %2303 = vmatprep.subr.mxu1 %v2234_v12  ;;  %v2233_v13 = vld [vmem:[#allocation15 + $0x160] sm:$0xff] }
 0x684   :  { %2337 = vmatpush1.msra.mxu0 %v4158_v14  ;;  %2304 = vmatpush2.msra.mxu1 %v2233_v13  ;;  %v2232_v14 = vld [vmem:[#allocation15 + $0x158] sm:$0xff] }
 0x685   :  { %2338 = vmatprep.subr.mxu0 %v4161_v15  ;;  %2305 = vmatprep.subr.mxu1 %v2232_v14  ;;  %v2231_v15 = vld [vmem:[#allocation15 + $0x150] sm:$0xff] }
 0x686   :  { %2339 = vmatpush1.msra.mxu0 %v4164_v16  ;;  %2306 = vmatpush2.msra.mxu1 %v2231_v15  ;;  %v2230_v16 = vld [vmem:[#allocation15 + $0x148] sm:$0xff] }
 0x687   :  { %2340 = vmatprep.subr.mxu0 %v4167_v30  ;;  %2307 = vmatprep.subr.mxu1 %v2230_v16  ;;  %v2229_v30 = vld [vmem:[#allocation15 + $0x140] sm:$0xff] }
 0x688   :  { %2341 = vmatpush1.msra.mxu0 %v4170_v18  ;;  %2308 = vmatpush2.msra.mxu1 %v2229_v30  ;;  %v2228_v18 = vld [vmem:[#allocation15 + $0x138] sm:$0xff] }
 0x689   :  { %2342 = vmatprep.subr.mxu0 %v4173_v20  ;;  %2309 = vmatprep.subr.mxu1 %v2228_v18  ;;  %v2227_v20 = vld [vmem:[#allocation15 + $0x130] sm:$0xff] }
 0x68a   :  { %2343 = vmatpush1.msra.mxu0 %v4176_v21  ;;  %2310 = vmatpush2.msra.mxu1 %v2227_v20  ;;  %v2226_v21 = vld [vmem:[#allocation15 + $0x128] sm:$0xff] }
 0x68b   :  { %2344 = vmatprep.subr.mxu0 %v4179_v22  ;;  %v2225_v22 = vld [vmem:[#allocation15 + $0x120] sm:$0xff]  ;;  %2311 = vmatprep.subr.mxu1 %v2226_v21 }
 0x68c   :  { %2345 = vmatpush1.msra.mxu0 %v4182_v17  ;;  %v2224_v17 = vld [vmem:[#allocation15 + $0x118] sm:$0xff]  ;;  %2312 = vmatpush2.msra.mxu1 %v2225_v22 }
 0x68d   :  { %2346 = vmatprep.subr.mxu0 %v4185_v23  ;;  %v2223_v23 = vld [vmem:[#allocation15 + $0x110] sm:$0xff]  ;;  %2313 = vmatprep.subr.mxu1 %v2224_v17 }
 0x68e   :  { %2347 = vmatpush1.msra.mxu0 %v4188_v24  ;;  %v2222_v24 = vld [vmem:[#allocation15 + $0x108] sm:$0xff]  ;;  %2314 = vmatpush2.msra.mxu1 %v2223_v23 }
 0x68f   :  { %2348 = vmatprep.subr.mxu0 %v4191_v19  ;;  %v2221_v19 = vld [vmem:[#allocation15 + $0x100] sm:$0xff]  ;;  %2315 = vmatprep.subr.mxu1 %v2222_v24 }
 0x690   :  { %2349 = vmatpush1.msra.mxu0 %v4194_v25  ;;  %2316 = vmatpush2.msra.mxu1 %v2221_v19 }
 0x691   :  { %2350 = vmatprep.subr.mxu0 %v4197_v26  ;;  %2750 = vmatprep.subr.mxu1 %v2500_v62 }
 0x692   :  { %2351 = vmatpush1.msra.mxu0 %v4200_v27 }
 0x693   :  { %2352 = vmatprep.subr.mxu0 %v4203_v28 }
 0x694   :  { %2353 = vmatpush1.msra.mxu0 %v4206_v32 }
 0x695   :  { %2354 = vmatprep.subr.mxu0 %v4209_v29 }
 0x696   :  { %2355 = vmatpush1.msra.mxu0 %v4212_v31 }
 0x697   :  { %2356 = vmatprep.subr.mxu0 %v4215_v33 }
 0x698   :  { %2357 = vmatpush2.msra.mxu0 %v4218_v34 }
 0x699   :  { %2358 = vmatprep.subr.mxu0 %v4221_v35 }
 0x69a   :  { %2359 = vmatpush2.msra.mxu0 %v4224_v36 }
 0x69b   :  { %2360 = vmatprep.subr.mxu0 %v4227_v37 }
 0x69c   :  { %2361 = vmatpush2.msra.mxu0 %v4230_v38 }
 0x69d   :  { %2362 = vmatprep.subr.mxu0 %v4233_v39 }
 0x69e   :  { %2363 = vmatpush2.msra.mxu0 %v4236_v40 }
 0x69f   :  { %2364 = vmatprep.subr.mxu0 %v4550_v1  ;;  %v2498_v1 = vld [vmem:[%s4477_s18 + $0xe8] sm:$0xff] }
 0x6a0   :  { %2365 = vmatpush2.msra.mxu0 %v4551_v3  ;;  %v2482_v3 = vld [vmem:[%s4477_s18 + $0x68] sm:$0xff] }
 0x6a1   :  { %2366 = vmatprep.subr.mxu0 %v4552_v4  ;;  %v2497_v4 = vld [vmem:[%s4477_s18 + $0xe0] sm:$0xff] }
 0x6a2   :  { %2367 = vmatpush2.msra.mxu0 %v4553_v5  ;;  %v2481_v5 = vld [vmem:[%s4477_s18 + $0x60] sm:$0xff] }
 0x6a3   :  { %2368 = vmatprep.subr.mxu0 %v4554_v6  ;;  %v2496_v6 = vld [vmem:[%s4477_s18 + $0xd8] sm:$0xff] }
 0x6a4   :  { %2369 = vmatpush2.msra.mxu0 %v4555_v7  ;;  %v2480_v7 = vld [vmem:[%s4477_s18 + $0x58] sm:$0xff] }
 0x6a5   :  { %2370 = vmatprep.subr.mxu0 %v4556_v8  ;;  %v2495_v8 = vld [vmem:[%s4477_s18 + $0xd0] sm:$0xff] }
 0x6a6   :  { %2371 = vmatpush2.msra.mxu0 %v2237_v9  ;;  %v2479_v9 = vld [vmem:[%s4477_s18 + $0x50] sm:$0xff] }
 0x6a7   :  { %2372 = vmatprep.subr.mxu0 %v2236_v10  ;;  %v2494_v10 = vld [vmem:[%s4477_s18 + $0xc8] sm:$0xff] }
 0x6a8   :  { %2373 = vmatpush2.msra.mxu0 %v2235_v11  ;;  %v2478_v11 = vld [vmem:[%s4477_s18 + $0x48] sm:$0xff] }
 0x6a9   :  { %2374 = vmatprep.subr.mxu0 %v2234_v12  ;;  %v2493_v12 = vld [vmem:[%s4477_s18 + $0xc0] sm:$0xff] }
 0x6aa   :  { %2375 = vmatpush2.msra.mxu0 %v2233_v13  ;;  %v2477_v13 = vld [vmem:[%s4477_s18 + $0x40] sm:$0xff] }
 0x6ab   :  { %2376 = vmatprep.subr.mxu0 %v2232_v14  ;;  %v2492_v14 = vld [vmem:[%s4477_s18 + $0xb8] sm:$0xff] }
 0x6ac   :  { %2377 = vmatpush2.msra.mxu0 %v2231_v15  ;;  %v2476_v15 = vld [vmem:[%s4477_s18 + $0x38] sm:$0xff] }
 0x6ad   :  { %2378 = vmatprep.subr.mxu0 %v2230_v16  ;;  %v2491_v16 = vld [vmem:[%s4477_s18 + $0xb0] sm:$0xff] }
 0x6ae   :  { %2379 = vmatpush2.msra.mxu0 %v2229_v30  ;;  %v2475_v30 = vld [vmem:[%s4477_s18 + $0x30] sm:$0xff] }
 0x6af   :  { %2380 = vmatprep.subr.mxu0 %v2228_v18  ;;  %v2490_v18 = vld [vmem:[%s4477_s18 + $0xa8] sm:$0xff] }
 0x6b0   :  { %2381 = vmatpush2.msra.mxu0 %v2227_v20  ;;  %v2474_v20 = vld [vmem:[%s4477_s18 + $0x28] sm:$0xff] }
 0x6b1   :  { %2382 = vmatprep.subr.mxu0 %v2226_v21  ;;  %v2489_v21 = vld [vmem:[%s4477_s18 + $0xa0] sm:$0xff] }
 0x6b2   :  { %2383 = vmatpush2.msra.mxu0 %v2225_v22  ;;  %v2473_v22 = vld [vmem:[%s4477_s18 + $0x20] sm:$0xff] }
 0x6b3   :  { %2384 = vmatprep.subr.mxu0 %v2224_v17  ;;  %v2488_v17 = vld [vmem:[%s4477_s18 + $0x98] sm:$0xff] }
 0x6b4   :  { %2385 = vmatpush2.msra.mxu0 %v2223_v23  ;;  %v2472_v23 = vld [vmem:[%s4477_s18 + $0x18] sm:$0xff] }
 0x6b5   :  { %2386 = vmatprep.subr.mxu0 %v2222_v24  ;;  %v2487_v24 = vld [vmem:[%s4477_s18 + $0x90] sm:$0xff] }
 0x6b6   :  { %2387 = vmatpush2.msra.mxu0 %v2221_v19  ;;  %v2471_v19 = vld [vmem:[%s4477_s18 + $0x10] sm:$0xff] }
 0x737   :  { %v4324_v25 = vpop.f32.mrf.mxu0 }
 0x738   :  { %v2159_v26 = vsel %vm559_vm2, %v4324_v25, 0.0  ;;  %v2173_v27 = vmul.f32 %v4324_v25, %v4324_v25 }
 0x739   :  { %v2160_v28 = vrot.slane %v2159_v26, 4  ;;  %v4330_v32 = vpop.f32.mrf.mxu0 }
 0x73a   :  { %v2175_v29 = vsel %vm559_vm2, %v2173_v27, 0.0  ;;  %v2166_v31 = vsel %vm559_vm2, %v4330_v32, 0.0  ;;  %v2174_v33 = vmul.f32 %v4330_v32, %v4330_v32  ;;  %v2470_v27 = vld [vmem:[%s4477_s18 + $0x8] sm:$0xff] }
 0x73b   :  { %v2161_v34 = vadd.f32 %v2160_v28, %v2159_v26  ;;  %v2176_v35 = vrot.slane %v2175_v29, 4  ;;  %v2167_v36 = vrot.slane %v2166_v31, 4  ;;  %v2156_v37 = vpop.f32.mrf.mxu0  ;;  %v2486_v26 = vld [vmem:[%s4477_s18 + $0x88] sm:$0xff]  ;;  %v2485_v28 = vld [vmem:[%s4477_s18 + $0x80] sm:$0xff] }
 0x73c   :  { %v2182_v38 = vsel %vm559_vm2, %v2174_v33, 0.0 }
 0x73d   :  { %v2162_v39 = vrot.slane %v2161_v34, 2  ;;  %v2177_v40 = vadd.f32 %v2176_v35, %v2175_v29  ;;  %v2168_v41 = vadd.f32 %v2167_v36, %v2166_v31  ;;  %v2183_v42 = vrot.slane %v2182_v38, 4  ;;  %v2157_v43 = vpop.f32.mrf.mxu0  ;;  %v2469_v29 = vld [vmem:[%s4477_s18] sm:$0xff] }
 0x73e   :  { %v2423_v43 = vld [vmem:[%s4475_s16] sm:$0x3]  ;;  %s3240_s16 = smov [#allocation17]  }
 0x73f   :  { %v2163_v44 = vadd.f32 %v2162_v39, %v2161_v34  ;;  %v2178_v45 = vrot.slane %v2177_v40, 2  ;;  %v2169_v46 = vrot.slane %v2168_v41, 2  ;;  %v2184_v47 = vadd.f32 %v2183_v42, %v2182_v38 }
 0x741   :  { %v2179_v51 = vadd.f32 %v2178_v45, %v2177_v40  ;;  %v2170_v52 = vadd.f32 %v2169_v46, %v2168_v41  ;;  %v2185_v54 = vrot.slane %v2184_v47, 2  ;;  %v2164_v55 = vrot.slane %v2163_v44, 1  ;;  %v2437_v46 = vld [vmem:[%s4476_s17] sm:$0x3]  ;;  %s2589_s17 = sshll.u32 %s3240_s16, 4  ;;  %s2590_s17 = int_to_ptr.vmem [resolvable:$true] %s2589_s17 }
 0x742   :  { %s3195_s23 = scalar_lea.vmem %s2590_s17, 64  ;;  %p3200_p13 = scmp.lt.s32.totalorder %s2590_s17, %s2590_s17 }
 0x743   :  { %v2171_v48 = vrot.slane %v2170_v52, 1  ;;  %v2186_v49 = vadd.f32 %v2185_v54, %v2184_v47  ;;  %v2180_v56 = vrot.slane %v2179_v51, 1  ;;  %v2165_v58 = vadd.f32 %v2164_v55, %v2163_v44  ;;  %p3196_p12 = scmp.ne.s32.totalorder %s2590_s17, %s3195_s23  ;;  %p3201_p0 = scmp.lt.s32.totalorder %s3195_s23, %s3195_s23 }
 0x744   :  { %v2432_v55 = vrot.slane %v2423_v43, %v3836_v0 }
 0x745   :  { %v2172_v57 = vadd.f32 %v2171_v48, %v2170_v52  ;;  %v2187_v53 = vrot.slane %v2186_v49, 1  ;;  %v2181_v59 = vadd.f32 %v2180_v56, %v2179_v51  ;;  %v2428_v52 = vrot.slane %v2423_v43, %v3830_v60  ;;  %p3202_p1 = por %p3201_p0, %p3200_p13 }
 0x747   :  { %2317 = vmatprep.mubr.f32.mxu1 %v2172_v57  ;;  %v2188_v50 = vadd.f32 %v2187_v53, %v2186_v49  ;;  %v2442_v57 = vrot.slane %v2437_v46, %v3830_v60  ;;  %p3203_p2 = pnand %p3202_p1, %p3196_p12 }
 0x748   :  { %2318 = vmatmul.mubr.f32.vlgmr.msra.gmra.mxu1 %v2165_v58 }
 0x749   :  { %2388 = vmatprep.mubr.f32.mxu0 %v2188_v50  ;;  %2751 = vmatpush3.msra.mxu1 %v2484_v2  ;;  %v2446_v50 = vrot.slane %v2437_v46, %v3836_v0 }
 0x74a   :  { %2389 = vmatmul.mubr.f32.vlgmr.msra.gmra.mxu0 %v2181_v59  ;;  %2752 = vmatprep.subr.mxu1 %v2499_v61 }
 0x74b   :  { %2753 = vmatpush3.msra.mxu1 %v2483_v63 }
 0x74c   :  { %2754 = vmatprep.subr.mxu1 %v2498_v1 }
 0x74d   :  { %2755 = vmatpush3.msra.mxu1 %v2482_v3 }
 0x74e   :  { %2756 = vmatprep.subr.mxu1 %v2497_v4 }
 0x74f   :  { %2757 = vmatpush3.msra.mxu1 %v2481_v5 }
 0x750   :  { %2758 = vmatprep.subr.mxu1 %v2496_v6 }
 0x751   :  { %2759 = vmatpush3.msra.mxu1 %v2480_v7 }
 0x752   :  { %2760 = vmatprep.subr.mxu1 %v2495_v8 }
 0x753   :  { %2761 = vmatpush3.msra.mxu1 %v2479_v9 }
 0x754   :  { %2762 = vmatprep.subr.mxu1 %v2494_v10 }
 0x755   :  { %2763 = vmatpush3.msra.mxu1 %v2478_v11 }
 0x756   :  { %2764 = vmatprep.subr.mxu1 %v2493_v12 }
 0x757   :  { %2765 = vmatpush3.msra.mxu1 %v2477_v13 }
 0x758   :  { %2766 = vmatprep.subr.mxu1 %v2492_v14 }
 0x759   :  { %2767 = vmatpush3.msra.mxu1 %v2476_v15 }
 0x75a   :  { %2768 = vmatprep.subr.mxu1 %v2491_v16 }
 0x75b   :  { %2769 = vmatpush3.msra.mxu1 %v2475_v30 }
 0x75c   :  { %2770 = vmatprep.subr.mxu1 %v2490_v18 }
 0x75d   :  { %2771 = vmatpush3.msra.mxu1 %v2474_v20 }
 0x75e   :  { %2772 = vmatprep.subr.mxu1 %v2489_v21 }
 0x75f   :  { %2773 = vmatpush3.msra.mxu1 %v2473_v22 }
 0x760   :  { %2774 = vmatprep.subr.mxu1 %v2488_v17 }
 0x761   :  { %2775 = vmatpush3.msra.mxu1 %v2472_v23 }
 0x762   :  { %2776 = vmatprep.subr.mxu1 %v2487_v24 }
 0x763   :  { %2777 = vmatpush3.msra.mxu1 %v2471_v19 }
 0x764   :  { %2778 = vmatprep.subr.mxu1 %v2486_v26 }
 0x765   :  { %2779 = vmatpush3.msra.mxu1 %v2470_v27 }
 0x766   :  { %2780 = vmatprep.subr.mxu1 %v2485_v28 }
 0x767   :  { %2781 = vmatpush3.msra.mxu1 %v2469_v29 }
 0x808   :  { %v2319_v31 = vpop.f32.mrf.mxu1 }
 0x809   :  { %v2395_v33 = vmul.f32 %v2319_v31, %v2319_v31  ;;  %v2402_v42 = vrot.slane %v2319_v31, %v3830_v60 }
 0x80a   :  { %v2321_v34 = vpop.f32.mrf.mxu1  ;;  %v2390_v35 = vpop.f32.mrf.mxu0 }
 0x80b   :  { %v2396_v36 = vmul.f32 %v2321_v34, %v2321_v34  ;;  %v2397_v37 = vsub.f32 %v2390_v35, %v2395_v33  ;;  %v2406_v44 = vrot.slane %v2321_v34, %v3830_v60  ;;  %v2407_v47 = vsub.f32 %v4324_v25, %v2402_v42 }
 0x80c   :  { %v2392_v38 = vpop.f32.mrf.mxu0 }
 0x80d   :  { %v2409_v39 = vadd.f32 1e-05, %v2397_v37  ;;  %v2398_v40 = vsub.f32 %v2392_v38, %v2396_v36  ;;  %v2408_v48 = vsub.f32 %v4330_v32, %v2406_v44 }
 0x80f   :  { %3027 = vrsqrt.f32 %v2409_v39  ;;  %v2410_v41 = vadd.f32 1e-05, %v2398_v40 }
 0x811   :  { %3029 = vrsqrt.f32 %v2410_v41 }
 0x81c   :  { %v3028_v45 = vpop.eup %3027 }
 0x81d   :  { %v2416_v51 = vrot.slane %v3028_v45, %v3830_v60 }
 0x81e   :  { %v3030_v54 = vpop.eup %3029 }
 0x81f   :  { %v2420_v49 = vrot.slane %v3030_v54, %v3830_v60  ;;  %v2421_v56 = vmul.f32 %v2416_v51, %v2407_v47 }
 0x821   :  { %v2422_v53 = vmul.f32 %v2420_v49, %v2408_v48  ;;  %v2435_v58 = vmul.f32 %v2428_v52, %v2421_v56 }
 0x823   :  { %v2436_v59 = vmul.f32 %v2432_v55, %v2422_v53  ;;  %v2449_v25 = vadd.f32 %v2442_v57, %v2435_v58 }
 0x825   :  { %v2450_v62 = vadd.f32 %v2446_v50, %v2436_v59  ;;  %v2453_v2 = vmul.f32 0.2, %v2449_v25  ;;  %vm2451_vm9 = vcmp.gt.f32.partialorder %v2449_v25, 0.0 }
 0x827   :  { %vm2452_vm10 = vcmp.gt.f32.partialorder %v2450_v62, 0.0  ;;  %v2454_v61 = vmul.f32 0.2, %v2450_v62  ;;  %v2455_v63 = vsel %vm2451_vm9, %v2449_v25, %v2453_v2 }
 0x829   :  { %v2456_v1 = vsel %vm2452_vm10, %v2450_v62, %v2454_v61 }
 0x82a   :  { %v2459_v3 = vcombine.low %v2455_v63, %v2456_v1  ;;  %2567 = vmatprep.mubr.f32.mxu1 %v2456_v1 }
 0x82b   :  { %2568 = vmatmul.mubr.f32.vlgmr.msra.gmra.mxu1 %v2455_v63 }
 0x82c   :  { %2748 = vst.sshfl [vmem:[#allocation17] sm:$0x33 pattern:$0x76325410] %v2459_v3 }
 0x82d   :  { %3206 = shalt.err (!%p3203_p2)
}
 0x82e   :  { %2592 = dma.vmem_to_hbm [thread:$0]  %s2590_s17, 64, %s4480_s21, [#allocation5]   ;;  %v2502_v0 = vstv %s4478_s19  ;;  %vm2579_vm11 = vcmask 1024  }
 0x8eb   :  { %v2782_v60 = vpop.f32.mrf.mxu1 }
 0x8ed   :  { %v2783_v32 = vpop.f32.mrf.mxu1 }
 0x8ee   :  { %v2784_v4 = vadd.f32 %v2783_v32, %v2782_v60 }
 0x8f0   :  { %v2570_v5 = vadd.f32 %v2784_v4, %v2502_v0 }
 0x8f2   :  { %v2749_v6 = vmul.f32 -1.442695, %v2570_v5 }
 0x8f4   :  { %3031 = vpow2.f32 %v2749_v6 }
 0x901   :  { %v3032_v7 = vpop.eup %3031 }
 0x902   :  { %v2576_v8 = vadd.f32 1.0, %v3032_v7 }
 0x904   :  { %3033 = vrcp.f32 %v2576_v8 }
 0x911   :  { %v3034_v9 = vpop.eup %3033 }
 0x912   :  { %2580 = vst.msk [vmem:[%s4479_s20] sm:$0x3] %vm2579_vm11, %v3034_v9 }
 0x913   :  { %3225 = dma.done.wait [#allocation5], 64  }
 0x914   :  { %3226 = vsyncadd [#allocation5], 4294967232 }
 0x915   :  { %2598 = vsyncpa [#allocation4], 1 }
 0x916   :  { %2599 = vsyncpa [#allocation7], 1 }
 0x917   :  { %2600 = vsyncpa [#allocation10], 1 }
 0x918   :  { %2601 = vsyncpa [#allocation13], 1 }
 0x919   :  { %2602 = vsyncpa [#allocation16], 1 }
 0x91a   :  { %2603 = vsyncpa [#allocation5], 1 }

</bundles_post_ra>
